<compile_context>
chip_gen: v7x
topology: tpu7x:2x2x1
jax: 0.10.0
libtpu: 0.0.40
codegen_flags: <defaults>
</compile_context>

<pallas_src>
import functools

import numpy as np
import jax
import jax.numpy as jnp
from jax import lax
from jax.experimental import pallas as pl
from jax.experimental.pallas import tpu as pltpu

IMAGE_WIDTH = 28
IMAGE_HEIGHT = 28
IMAGE_SIZE = IMAGE_WIDTH * IMAGE_HEIGHT
CODE_SIZE = 20

_SELU_ALPHA = 1.6732632423543772
_SELU_SCALE = 1.0507009873554805


def _selu(x):
    return _SELU_SCALE * jnp.where(
        x > 0, x, _SELU_ALPHA * (jnp.exp(jnp.minimum(x, 0.0)) - 1.0))


def _sigmoid(x):
    # exp on the EUP; approx reciprocal also rides the EUP slot (review item 12).
    e = jnp.exp(-jnp.abs(x))
    r = pl.reciprocal(1.0 + e, approx=True)
    return jnp.where(x >= 0, r, 1.0 - r)


def mnist_ae_kernel(xh_ref, m1_ref, b1_ref, m2_ref, b2_ref, w3_ref, b3_ref,
                    w4_ref, b4_ref, w5_ref, b5_ref, w6_ref, b6_ref,
                    out_ref, code_ref):
    f32 = jnp.float32
    bf16 = jnp.bfloat16

    R0 = xh_ref.shape[1]          # 8 * (nb + 1): nb images + one zero pad image
    nb = R0 // 8 - 1              # images in this block
    R1 = R0 - 1                   # rows carried through conv1 / pool1
    R2 = R0 - 3                   # rows carried through conv2 / pool2

    xc = xh_ref[0]                # [R0, 128] bf16, lanes = (H mod 4)*28 + W (+pad)
    x0 = xc[0:R1, :]              # H-block shift 0
    x1 = xc[1:R1 + 1, :]          # H-block shift 1

    # ---- enc_cnn_1 (5x5, 1->10) + max_pool2d(2) + selu : ONE fused matmul ----
    # slab1 lanes: [0,128) = x0, [128,256) = x1  (both 128-lane tile aligned)
    slab1 = jnp.concatenate([x0, x1], axis=-1)                   # [R1, 256]
    c1 = jnp.dot(slab1, m1_ref[...], preferred_element_type=f32)  # [R1, 1024]
    b1 = b1_ref[...]                                             # [1, 128]
    q1_halves = []
    for p in range(2):            # p = pooled-H row parity; slices m=2p,2p+1 x beta
        base = 512 * p
        mx = jnp.maximum(
            jnp.maximum(c1[:, base:base + 128], c1[:, base + 128:base + 256]),
            jnp.maximum(c1[:, base + 256:base + 384],
                        c1[:, base + 384:base + 512]))
        q1_halves.append(_selu(mx + b1).astype(bf16))            # [R1, 128]
    q1 = jnp.concatenate(q1_halves, axis=-1)                     # [R1, 256] bf16

    # ---- enc_cnn_2 (5x5, 10->20) + max_pool2d(2) + selu : ONE fused matmul ----
    q1_0 = q1[0:R2, :]            # pooled-H shift 0
    q1_1 = q1[1:R2 + 1, :]        # shift 1
    q1_2 = q1[2:R2 + 2, :]        # shift 2
    slab2 = jnp.concatenate([q1_0, q1_1, q1_2], axis=-1)         # [R2, 768] bf16
    c2 = jnp.dot(slab2, m2_ref[...], preferred_element_type=f32)  # [R2, 512]
    mx = jnp.maximum(jnp.maximum(c2[:, 0:128], c2[:, 128:256]),
                     jnp.maximum(c2[:, 256:384], c2[:, 384:512]))
    p2 = _selu(mx + b2_ref[...]).astype(bf16)                    # [R2, 128] bf16

    # ---- gather the nb valid rows (stride 8) BEFORE the FC / decoder stack ----
    p2v = p2[:8 * nb, :].reshape(nb, 8, 128)
    p2g = jnp.concatenate([p2v[:, h, :] for h in range(4)],
                          axis=-1)                               # [nb, 512] bf16

    # enc_linear_1 (NCHW flatten folded into w3, padded to 128 lanes) + selu
    h1 = _selu(jnp.dot(p2g, w3_ref[...], preferred_element_type=f32)
               + b3_ref[...])                                    # [nb, 128]
    # enc_linear_2 -> code (padded to 128 lanes for a lane-dense store)
    code = jnp.dot(h1.astype(bf16), w4_ref[...],
                   preferred_element_type=f32) + b4_ref[...]     # [nb, 128]
    code_ref[...] = code

    # decoder: linear -> selu -> linear -> sigmoid (all lane-padded)
    d1 = _selu(jnp.dot(code.astype(bf16), w5_ref[...],
                       preferred_element_type=f32) + b5_ref[...])    # [nb, 256]
    o = jnp.dot(d1.astype(bf16), w6_ref[...],
                preferred_element_type=f32) + b6_ref[...]            # [nb, 896]
    out_ref[...] = _sigmoid(o).astype(out_ref.dtype)


# ---------------------------------------------------------------------------
# Parameter setup (deterministic, PyTorch-layout shapes) and kernel operands
# ---------------------------------------------------------------------------
def build_params(key):
    ks = jax.random.split(key, 12)

    def uni(k, shape, fan_in):
        bound = 1.0 / np.sqrt(fan_in)
        return jax.random.uniform(k, shape, jnp.float32, -bound, bound)

    return dict(
        K1=uni(ks[0], (10, 1, 5, 5), 25),   b1=uni(ks[1], (10,), 25),
        K2=uni(ks[2], (20, 10, 5, 5), 250), b2=uni(ks[3], (20,), 250),
        W3=uni(ks[4], (50, 320), 320),      b3=uni(ks[5], (50,), 320),
        W4=uni(ks[6], (CODE_SIZE, 50), 50), b4=uni(ks[7], (CODE_SIZE,), 50),
        W5=uni(ks[8], (160, CODE_SIZE), CODE_SIZE), b5=uni(ks[9], (160,), CODE_SIZE),
        W6=uni(ks[10], (IMAGE_SIZE, 160), 160),     b6=uni(ks[11], (IMAGE_SIZE,), 160),
    )


def make_kernel_operands(params):
    K1 = np.asarray(params["K1"], np.float32)   # [10, 1, 5, 5]
    K2 = np.asarray(params["K2"], np.float32)   # [20, 10, 5, 5]
    W3 = np.asarray(params["W3"], np.float32)   # [50, 320]
    W4 = np.asarray(params["W4"], np.float32)   # [20, 50]
    W5 = np.asarray(params["W5"], np.float32)   # [160, 20]
    W6 = np.asarray(params["W6"], np.float32)   # [784, 160]
    b1 = np.asarray(params["b1"], np.float32)
    b2 = np.asarray(params["b2"], np.float32)

    # conv1, fully fused over H taps, W parities AND output-H phases:
    #   LHS lane  k = half*128 + (H_in mod 4)*28 + W_in   (half: x0/x1 slab)
    #   RHS lane  n = m*256 + beta*128 + j1*10 + c   (m = conv-out H mod 4,
    #   W_out = 2*j1 + beta)
    M1big = np.zeros((256, 1024), np.float32)
    for m in range(4):
        for beta in range(2):
            for j1 in range(12):
                n_base = m * 256 + beta * 128 + j1 * 10
                for di in range(5):
                    half, nsub = divmod(m + di, 4)
                    for dj in range(5):
                        w_in = 2 * j1 + beta + dj
                        k_idx = half * 128 + nsub * 28 + w_in
                        M1big[k_idx, n_base:n_base + 10] = K1[:, 0, di, dj]
    b1p = np.zeros((1, 128), np.float32)
    b1p[0, :120] = np.tile(b1, 12)

    # conv2, fully fused:
    #   LHS lane  k = s*256 + p'*128 + j1*10 + ci   (s = q1 row shift 0..2,
    #   pooled1 H = 2*(h+s)+p', j1 = pooled1 W)
    #   RHS lane  n = alpha*256 + beta*128 + j2*20 + co   (conv2 H = 2h+alpha,
    #   W = 2*j2+beta)
    M2big = np.zeros((768, 512), np.float32)
    for alpha in range(2):
        for beta in range(2):
            for j2 in range(4):
                n_base = alpha * 256 + beta * 128 + j2 * 20
                for di in range(5):
                    s, pp = divmod(alpha + di, 2)
                    for dj in range(5):
                        j1 = 2 * j2 + beta + dj
                        k_base = s * 256 + pp * 128 + j1 * 10
                        M2big[k_base:k_base + 10, n_base:n_base + 20] = K2[:, :, di, dj].T
    b2p = np.zeros((1, 128), np.float32)
    b2p[0, :80] = np.tile(b2, 4)

    # enc_linear_1 with the torch NCHW flatten folded in: LHS lane = h*128 + w*20 + c
    W3r = W3.reshape(50, 20, 4, 4)                       # [k, c, h, w]
    W3f = np.zeros((512, 128), np.float32)
    for h in range(4):
        for w in range(4):
            W3f[h * 128 + w * 20:h * 128 + (w + 1) * 20, :50] = W3r[:, :, h, w].T
    b3p = np.zeros((1, 128), np.float32)
    b3p[0, :50] = np.asarray(params["b3"], np.float32)

    W4p = np.zeros((128, 128), np.float32)
    W4p[:50, :CODE_SIZE] = W4.T
    b4p = np.zeros((1, 128), np.float32)
    b4p[0, :CODE_SIZE] = np.asarray(params["b4"], np.float32)

    W5p = np.zeros((128, 256), np.float32)
    W5p[:CODE_SIZE, :160] = W5.T
    b5p = np.zeros((1, 256), np.float32)
    b5p[0, :160] = np.asarray(params["b5"], np.float32)

    W6p = np.zeros((256, 896), np.float32)               # 896 = 7*128 lane-dense out
    W6p[:160, :IMAGE_SIZE] = W6.T
    b6p = np.zeros((1, 896), np.float32)
    b6p[0, :IMAGE_SIZE] = np.asarray(params["b6"], np.float32)

    bf = jnp.bfloat16
    return dict(
        M1=jnp.asarray(M1big, bf), b1=jnp.asarray(b1p),
        M2=jnp.asarray(M2big, bf), b2=jnp.asarray(b2p),
        W3=jnp.asarray(W3f, bf), b3=jnp.asarray(b3p),
        W4=jnp.asarray(W4p, bf), b4=jnp.asarray(b4p),
        W5=jnp.asarray(W5p, bf), b5=jnp.asarray(b5p),
        W6=jnp.asarray(W6p, bf), b6=jnp.asarray(b6p),
    )


def pack_input(images, nb, nblk):
    """NCHW [nb*nblk, 1, 28, 28] -> [nblk, 8*(nb+1), 128] bf16.

    Rows: image_in_block*8 + (H // 4); one zero pad row per image and one zero
    pad image per block keep every in-kernel row slice in bounds.
    Lanes: (H mod 4)*28 + W, zero-padded 112 -> 128 (unmasked vreg loads).
    """
    x = images[:, 0].astype(jnp.bfloat16)                  # [Bpad, 28, 28]
    x = x.reshape(nblk, nb, 7, 4, 28)                      # H = 4*k + n
    x = jnp.pad(x, ((0, 0), (0, 1), (0, 1), (0, 0), (0, 0)))
    x = x.reshape(nblk, 8 * (nb + 1), 4 * 28)
    return jnp.pad(x, ((0, 0), (0, 0), (0, 16)))           # lanes 112..127 = 0


def _choose_blocking(batch, block_batch):
    cdiv = lambda a, b: -(-a // b)
    block_batch = max(8, (block_batch // 8) * 8)
    # Blocks are multiples of 8 (sublane-aligned outputs) and the grid always
    # has >= 2 steps so both v7x TensorCores run and DMA pipelining overlaps.
    nb = 8 * cdiv(cdiv(batch, 2), 8)
    nb = max(8, min(nb, block_batch))
    nblk = max(2, cdiv(batch, nb))
    return nb, nblk


@functools.partial(jax.jit, static_argnames=("block_batch",))
def mnist_ae_forward(images, ops, block_batch=32):
    """Autoencoder forward. Returns (out [B,1,28,28] f32, code [B,20] f32)."""
    B = images.shape[0]
    nb, nblk = _choose_blocking(B, block_batch)
    Bpad = nb * nblk
    if Bpad != B:
        images = jnp.pad(images, ((0, Bpad - B), (0, 0), (0, 0), (0, 0)))

    xh = pack_input(images, nb, nblk)                      # [nblk, R0, 128]
    R0 = 8 * (nb + 1)

    weights = (ops["M1"], ops["b1"], ops["M2"], ops["b2"],
               ops["W3"], ops["b3"], ops["W4"], ops["b4"],
               ops["W5"], ops["b5"], ops["W6"], ops["b6"])

    in_specs = [pl.BlockSpec((1, R0, 128), lambda i: (i, 0, 0))]
    in_specs += [pl.BlockSpec(w.shape, lambda i: (0, 0)) for w in weights]
    out_specs = (pl.BlockSpec((nb, 896), lambda i: (i, 0)),
                 pl.BlockSpec((nb, 128), lambda i: (i, 0)))

    out_flat, code = pl.pallas_call(
        mnist_ae_kernel,
        grid=(nblk,),
        out_shape=(jax.ShapeDtypeStruct((Bpad, 896), jnp.bfloat16),
                   jax.ShapeDtypeStruct((Bpad, 128), jnp.float32)),
        in_specs=in_specs,
        out_specs=out_specs,
        compiler_params=pltpu.CompilerParams(
            dimension_semantics=("parallel",)),
    )(xh, *weights)

    out = out_flat[:B, :IMAGE_SIZE].astype(jnp.float32)
    out = out.reshape(B, 1, IMAGE_HEIGHT, IMAGE_WIDTH)
    return out, code[:B, :CODE_SIZE]


# Pure-JAX reference of the torch forward (for a sanity check only).
def reference_forward(images, p):
    dn = ("NCHW", "OIHW", "NCHW")
    y = lax.conv_general_dilated(images, p["K1"], (1, 1), "VALID",
                                 dimension_numbers=dn) + p["b1"][None, :, None, None]
    y = lax.reduce_window(y, -jnp.inf, lax.max, (1, 1, 2, 2), (1, 1, 2, 2), "VALID")
    y = jax.nn.selu(y)
    y = lax.conv_general_dilated(y, p["K2"], (1, 1), "VALID",
                                 dimension_numbers=dn) + p["b2"][None, :, None, None]
    y = lax.reduce_window(y, -jnp.inf, lax.max, (1, 1, 2, 2), (1, 1, 2, 2), "VALID")
    y = jax.nn.selu(y)
    flat = y.reshape(images.shape[0], -1)
    h = jax.nn.selu(flat @ p["W3"].T + p["b3"])
    code = h @ p["W4"].T + p["b4"]
    d = jax.nn.selu(code @ p["W5"].T + p["b5"])
    o = jax.nn.sigmoid(d @ p["W6"].T + p["b6"])
    return o.reshape(images.shape[0], 1, IMAGE_HEIGHT, IMAGE_WIDTH), code


if __name__ == "__main__":
    key = jax.random.PRNGKey(0)
    pkey, xkey = jax.random.split(key)
    params = build_params(pkey)
    operands = make_kernel_operands(params)

    # B=2: small-batch path; B=70: multi-block path with B % 8 != 0 and padding.
    for B in (2, 70):
        images = jax.random.normal(jax.random.fold_in(xkey, B),
                                   (B, 1, 28, 28), jnp.float32)
        out, code = mnist_ae_forward(images, operands)
        jax.block_until_ready((out, code))

        assert out.shape == (B, 1, 28, 28) and code.shape == (B, CODE_SIZE)

        ref_out, ref_code = reference_forward(images, params)
        assert jnp.allclose(out, ref_out, atol=3e-2, rtol=3e-2), \
            (B, float(jnp.max(jnp.abs(out - ref_out))))
        assert jnp.allclose(code, ref_code, atol=3e-2, rtol=3e-2), \
            (B, float(jnp.max(jnp.abs(code - ref_code))))

    print("KERNEL_OK")
</pallas_src>

<mosaic_0001>
module attributes {stable_mosaic.version = 11 : i64} {
  func.func @mnist_ae_kernel(%arg0: i32, %arg1: memref<1x72x128xbf16, #tpu.memory_space<vmem>>, %arg2: memref<256x1024xbf16, #tpu.memory_space<vmem>>, %arg3: memref<1x128xf32, #tpu.memory_space<vmem>>, %arg4: memref<768x512xbf16, #tpu.memory_space<vmem>>, %arg5: memref<1x128xf32, #tpu.memory_space<vmem>>, %arg6: memref<512x128xbf16, #tpu.memory_space<vmem>>, %arg7: memref<1x128xf32, #tpu.memory_space<vmem>>, %arg8: memref<128x128xbf16, #tpu.memory_space<vmem>>, %arg9: memref<1x128xf32, #tpu.memory_space<vmem>>, %arg10: memref<128x256xbf16, #tpu.memory_space<vmem>>, %arg11: memref<1x256xf32, #tpu.memory_space<vmem>>, %arg12: memref<256x896xbf16, #tpu.memory_space<vmem>>, %arg13: memref<1x896xf32, #tpu.memory_space<vmem>>, %arg14: memref<8x896xbf16, #tpu.memory_space<vmem>>, %arg15: memref<8x128xf32, #tpu.memory_space<vmem>>) attributes {dimension_semantics = [#tpu.dimension_semantics<parallel>], iteration_bounds = array<i64: 2>, scalar_prefetch = 0 : i64, scratch_operands = 0 : i64, tpu.core_type = #tpu.core_type<tc>, window_params = [{transform_indices = @transform_0, window_bounds = array<i64: 1, 72, 128>}, {pipeline_mode = #tpu.pipeline_mode<synchronous>, transform_indices = @transform_1, window_bounds = array<i64: 256, 1024>}, {pipeline_mode = #tpu.pipeline_mode<synchronous>, transform_indices = @transform_2, window_bounds = array<i64: 1, 128>}, {pipeline_mode = #tpu.pipeline_mode<synchronous>, transform_indices = @transform_3, window_bounds = array<i64: 768, 512>}, {pipeline_mode = #tpu.pipeline_mode<synchronous>, transform_indices = @transform_4, window_bounds = array<i64: 1, 128>}, {pipeline_mode = #tpu.pipeline_mode<synchronous>, transform_indices = @transform_5, window_bounds = array<i64: 512, 128>}, {pipeline_mode = #tpu.pipeline_mode<synchronous>, transform_indices = @transform_6, window_bounds = array<i64: 1, 128>}, {pipeline_mode = #tpu.pipeline_mode<synchronous>, transform_indices = @transform_7, window_bounds = array<i64: 128, 128>}, {pipeline_mode = #tpu.pipeline_mode<synchronous>, transform_indices = @transform_8, window_bounds = array<i64: 1, 128>}, {pipeline_mode = #tpu.pipeline_mode<synchronous>, transform_indices = @transform_9, window_bounds = array<i64: 128, 256>}, {pipeline_mode = #tpu.pipeline_mode<synchronous>, transform_indices = @transform_10, window_bounds = array<i64: 1, 256>}, {pipeline_mode = #tpu.pipeline_mode<synchronous>, transform_indices = @transform_11, window_bounds = array<i64: 256, 896>}, {pipeline_mode = #tpu.pipeline_mode<synchronous>, transform_indices = @transform_12, window_bounds = array<i64: 1, 896>}, {transform_indices = @transform_13, window_bounds = array<i64: 8, 896>}, {transform_indices = @transform_14, window_bounds = array<i64: 8, 128>}]} {
    %c0 = arith.constant 0 : index
    %c0_0 = arith.constant 0 : index
    %c0_1 = arith.constant 0 : index
    %0 = vector.load %arg1[%c0, %c0_0, %c0_1] : memref<1x72x128xbf16, #tpu.memory_space<vmem>>, vector<1x72x128xbf16>
    %1 = vector.shape_cast %0 : vector<1x72x128xbf16> to vector<72x128xbf16>
    %2 = vector.extract_strided_slice %1 {offsets = [0, 0], sizes = [71, 128], strides = [1, 1]} : vector<72x128xbf16> to vector<71x128xbf16>
    %3 = vector.extract_strided_slice %1 {offsets = [1, 0], sizes = [71, 128], strides = [1, 1]} : vector<72x128xbf16> to vector<71x128xbf16>
    %4 = tpu.concatenate %2, %3 in 1 : vector<71x128xbf16>, vector<71x128xbf16> -> vector<71x256xbf16>
    %c0_2 = arith.constant 0 : index
    %c0_3 = arith.constant 0 : index
    %5 = vector.load %arg2[%c0_2, %c0_3] : memref<256x1024xbf16, #tpu.memory_space<vmem>>, vector<256x1024xbf16>
    %cst = arith.constant dense<0.000000e+00> : vector<71x1024xf32>
    %6 = tpu.matmul %4, %5, %cst {dimension_numbers = #tpu.dot_dimension_numbers<[1], [0], [0], [1], [0, 0, 1, 1], [], []>} : vector<71x256xbf16>, vector<256x1024xbf16>, vector<71x1024xf32> -> vector<71x1024xf32>
    %c0_4 = arith.constant 0 : index
    %c0_5 = arith.constant 0 : index
    %7 = vector.load %arg3[%c0_4, %c0_5] : memref<1x128xf32, #tpu.memory_space<vmem>>, vector<1x128xf32>
    %8 = vector.extract_strided_slice %6 {offsets = [0, 0], sizes = [71, 128], strides = [1, 1]} : vector<71x1024xf32> to vector<71x128xf32>
    %9 = vector.extract_strided_slice %6 {offsets = [0, 128], sizes = [71, 128], strides = [1, 1]} : vector<71x1024xf32> to vector<71x128xf32>
    %10 = arith.maximumf %8, %9 : vector<71x128xf32>
    %11 = vector.extract_strided_slice %6 {offsets = [0, 256], sizes = [71, 128], strides = [1, 1]} : vector<71x1024xf32> to vector<71x128xf32>
    %12 = vector.extract_strided_slice %6 {offsets = [0, 384], sizes = [71, 128], strides = [1, 1]} : vector<71x1024xf32> to vector<71x128xf32>
    %13 = arith.maximumf %11, %12 : vector<71x128xf32>
    %14 = arith.maximumf %10, %13 : vector<71x128xf32>
    %15 = vector.broadcast %7 : vector<1x128xf32> to vector<71x128xf32>
    %16 = arith.addf %14, %15 : vector<71x128xf32>
    %cst_6 = arith.constant 0.000000e+00 : f32
    %17 = vector.broadcast %cst_6 : f32 to vector<71x128xf32>
    %18 = arith.cmpf ogt, %16, %17 : vector<71x128xf32>
    %cst_7 = arith.constant 0.000000e+00 : f32
    %19 = vector.broadcast %cst_7 : f32 to vector<71x128xf32>
    %20 = arith.minimumf %16, %19 : vector<71x128xf32>
    %21 = math.exp %20 : vector<71x128xf32>
    %cst_8 = arith.constant 1.000000e+00 : f32
    %22 = vector.broadcast %cst_8 : f32 to vector<71x128xf32>
    %23 = arith.subf %21, %22 : vector<71x128xf32>
    %cst_9 = arith.constant 1.67326319 : f32
    %24 = vector.broadcast %cst_9 : f32 to vector<71x128xf32>
    %25 = arith.mulf %24, %23 : vector<71x128xf32>
    %26 = arith.select %18, %16, %25 : vector<71x128xi1>, vector<71x128xf32>
    %cst_10 = arith.constant 1.05070102 : f32
    %27 = vector.broadcast %cst_10 : f32 to vector<71x128xf32>
    %28 = arith.mulf %27, %26 : vector<71x128xf32>
    %29 = arith.truncf %28 : vector<71x128xf32> to vector<71x128xbf16>
    %30 = vector.extract_strided_slice %6 {offsets = [0, 512], sizes = [71, 128], strides = [1, 1]} : vector<71x1024xf32> to vector<71x128xf32>
    %31 = vector.extract_strided_slice %6 {offsets = [0, 640], sizes = [71, 128], strides = [1, 1]} : vector<71x1024xf32> to vector<71x128xf32>
    %32 = arith.maximumf %30, %31 : vector<71x128xf32>
    %33 = vector.extract_strided_slice %6 {offsets = [0, 768], sizes = [71, 128], strides = [1, 1]} : vector<71x1024xf32> to vector<71x128xf32>
    %34 = vector.extract_strided_slice %6 {offsets = [0, 896], sizes = [71, 128], strides = [1, 1]} : vector<71x1024xf32> to vector<71x128xf32>
    %35 = arith.maximumf %33, %34 : vector<71x128xf32>
    %36 = arith.maximumf %32, %35 : vector<71x128xf32>
    %37 = vector.broadcast %7 : vector<1x128xf32> to vector<71x128xf32>
    %38 = arith.addf %36, %37 : vector<71x128xf32>
    %cst_11 = arith.constant 0.000000e+00 : f32
    %39 = vector.broadcast %cst_11 : f32 to vector<71x128xf32>
    %40 = arith.cmpf ogt, %38, %39 : vector<71x128xf32>
    %cst_12 = arith.constant 0.000000e+00 : f32
    %41 = vector.broadcast %cst_12 : f32 to vector<71x128xf32>
    %42 = arith.minimumf %38, %41 : vector<71x128xf32>
    %43 = math.exp %42 : vector<71x128xf32>
    %cst_13 = arith.constant 1.000000e+00 : f32
    %44 = vector.broadcast %cst_13 : f32 to vector<71x128xf32>
    %45 = arith.subf %43, %44 : vector<71x128xf32>
    %cst_14 = arith.constant 1.67326319 : f32
    %46 = vector.broadcast %cst_14 : f32 to vector<71x128xf32>
    %47 = arith.mulf %46, %45 : vector<71x128xf32>
    %48 = arith.select %40, %38, %47 : vector<71x128xi1>, vector<71x128xf32>
    %cst_15 = arith.constant 1.05070102 : f32
    %49 = vector.broadcast %cst_15 : f32 to vector<71x128xf32>
    %50 = arith.mulf %49, %48 : vector<71x128xf32>
    %51 = arith.truncf %50 : vector<71x128xf32> to vector<71x128xbf16>
    %52 = tpu.concatenate %29, %51 in 1 : vector<71x128xbf16>, vector<71x128xbf16> -> vector<71x256xbf16>
    %53 = vector.extract_strided_slice %52 {offsets = [0, 0], sizes = [69, 256], strides = [1, 1]} : vector<71x256xbf16> to vector<69x256xbf16>
    %54 = vector.extract_strided_slice %52 {offsets = [1, 0], sizes = [69, 256], strides = [1, 1]} : vector<71x256xbf16> to vector<69x256xbf16>
    %55 = vector.extract_strided_slice %52 {offsets = [2, 0], sizes = [69, 256], strides = [1, 1]} : vector<71x256xbf16> to vector<69x256xbf16>
    %56 = tpu.concatenate %53, %54, %55 in 1 : vector<69x256xbf16>, vector<69x256xbf16>, vector<69x256xbf16> -> vector<69x768xbf16>
    %c0_16 = arith.constant 0 : index
    %c0_17 = arith.constant 0 : index
    %57 = vector.load %arg4[%c0_16, %c0_17] : memref<768x512xbf16, #tpu.memory_space<vmem>>, vector<768x512xbf16>
    %cst_18 = arith.constant dense<0.000000e+00> : vector<69x512xf32>
    %58 = tpu.matmul %56, %57, %cst_18 {dimension_numbers = #tpu.dot_dimension_numbers<[1], [0], [0], [1], [0, 0, 1, 1], [], []>} : vector<69x768xbf16>, vector<768x512xbf16>, vector<69x512xf32> -> vector<69x512xf32>
    %59 = vector.extract_strided_slice %58 {offsets = [0, 0], sizes = [69, 128], strides = [1, 1]} : vector<69x512xf32> to vector<69x128xf32>
    %60 = vector.extract_strided_slice %58 {offsets = [0, 128], sizes = [69, 128], strides = [1, 1]} : vector<69x512xf32> to vector<69x128xf32>
    %61 = arith.maximumf %59, %60 : vector<69x128xf32>
    %62 = vector.extract_strided_slice %58 {offsets = [0, 256], sizes = [69, 128], strides = [1, 1]} : vector<69x512xf32> to vector<69x128xf32>
    %63 = vector.extract_strided_slice %58 {offsets = [0, 384], sizes = [69, 128], strides = [1, 1]} : vector<69x512xf32> to vector<69x128xf32>
    %64 = arith.maximumf %62, %63 : vector<69x128xf32>
    %65 = arith.maximumf %61, %64 : vector<69x128xf32>
    %c0_19 = arith.constant 0 : index
    %c0_20 = arith.constant 0 : index
    %66 = vector.load %arg5[%c0_19, %c0_20] : memref<1x128xf32, #tpu.memory_space<vmem>>, vector<1x128xf32>
    %67 = vector.broadcast %66 : vector<1x128xf32> to vector<69x128xf32>
    %68 = arith.addf %65, %67 : vector<69x128xf32>
    %cst_21 = arith.constant 0.000000e+00 : f32
    %69 = vector.broadcast %cst_21 : f32 to vector<69x128xf32>
    %70 = arith.cmpf ogt, %68, %69 : vector<69x128xf32>
    %cst_22 = arith.constant 0.000000e+00 : f32
    %71 = vector.broadcast %cst_22 : f32 to vector<69x128xf32>
    %72 = arith.minimumf %68, %71 : vector<69x128xf32>
    %73 = math.exp %72 : vector<69x128xf32>
    %cst_23 = arith.constant 1.000000e+00 : f32
    %74 = vector.broadcast %cst_23 : f32 to vector<69x128xf32>
    %75 = arith.subf %73, %74 : vector<69x128xf32>
    %cst_24 = arith.constant 1.67326319 : f32
    %76 = vector.broadcast %cst_24 : f32 to vector<69x128xf32>
    %77 = arith.mulf %76, %75 : vector<69x128xf32>
    %78 = arith.select %70, %68, %77 : vector<69x128xi1>, vector<69x128xf32>
    %cst_25 = arith.constant 1.05070102 : f32
    %79 = vector.broadcast %cst_25 : f32 to vector<69x128xf32>
    %80 = arith.mulf %79, %78 : vector<69x128xf32>
    %81 = arith.truncf %80 : vector<69x128xf32> to vector<69x128xbf16>
    %82 = vector.extract_strided_slice %81 {offsets = [0, 0], sizes = [64, 128], strides = [1, 1]} : vector<69x128xbf16> to vector<64x128xbf16>
    %83 = vector.shape_cast %82 : vector<64x128xbf16> to vector<8x8x128xbf16>
    %84 = vector.extract_strided_slice %83 {offsets = [0, 0, 0], sizes = [8, 1, 128], strides = [1, 1, 1]} : vector<8x8x128xbf16> to vector<8x1x128xbf16>
    %85 = vector.shape_cast %84 : vector<8x1x128xbf16> to vector<8x128xbf16>
    %86 = vector.extract_strided_slice %83 {offsets = [0, 1, 0], sizes = [8, 1, 128], strides = [1, 1, 1]} : vector<8x8x128xbf16> to vector<8x1x128xbf16>
    %87 = vector.shape_cast %86 : vector<8x1x128xbf16> to vector<8x128xbf16>
    %88 = vector.extract_strided_slice %83 {offsets = [0, 2, 0], sizes = [8, 1, 128], strides = [1, 1, 1]} : vector<8x8x128xbf16> to vector<8x1x128xbf16>
    %89 = vector.shape_cast %88 : vector<8x1x128xbf16> to vector<8x128xbf16>
    %90 = vector.extract_strided_slice %83 {offsets = [0, 3, 0], sizes = [8, 1, 128], strides = [1, 1, 1]} : vector<8x8x128xbf16> to vector<8x1x128xbf16>
    %91 = vector.shape_cast %90 : vector<8x1x128xbf16> to vector<8x128xbf16>
    %92 = tpu.concatenate %85, %87, %89, %91 in 1 : vector<8x128xbf16>, vector<8x128xbf16>, vector<8x128xbf16>, vector<8x128xbf16> -> vector<8x512xbf16>
    %c0_26 = arith.constant 0 : index
    %c0_27 = arith.constant 0 : index
    %93 = vector.load %arg6[%c0_26, %c0_27] : memref<512x128xbf16, #tpu.memory_space<vmem>>, vector<512x128xbf16>
    %cst_28 = arith.constant dense<0.000000e+00> : vector<8x128xf32>
    %94 = tpu.matmul %92, %93, %cst_28 {dimension_numbers = #tpu.dot_dimension_numbers<[1], [0], [0], [1], [0, 0, 1, 1], [], []>} : vector<8x512xbf16>, vector<512x128xbf16>, vector<8x128xf32> -> vector<8x128xf32>
    %c0_29 = arith.constant 0 : index
    %c0_30 = arith.constant 0 : index
    %95 = vector.load %arg7[%c0_29, %c0_30] : memref<1x128xf32, #tpu.memory_space<vmem>>, vector<1x128xf32>
    %96 = vector.broadcast %95 : vector<1x128xf32> to vector<8x128xf32>
    %97 = arith.addf %94, %96 : vector<8x128xf32>
    %cst_31 = arith.constant 0.000000e+00 : f32
    %98 = vector.broadcast %cst_31 : f32 to vector<8x128xf32>
    %99 = arith.cmpf ogt, %97, %98 : vector<8x128xf32>
    %cst_32 = arith.constant 0.000000e+00 : f32
    %100 = vector.broadcast %cst_32 : f32 to vector<8x128xf32>
    %101 = arith.minimumf %97, %100 : vector<8x128xf32>
    %102 = math.exp %101 : vector<8x128xf32>
    %cst_33 = arith.constant 1.000000e+00 : f32
    %103 = vector.broadcast %cst_33 : f32 to vector<8x128xf32>
    %104 = arith.subf %102, %103 : vector<8x128xf32>
    %cst_34 = arith.constant 1.67326319 : f32
    %105 = vector.broadcast %cst_34 : f32 to vector<8x128xf32>
    %106 = arith.mulf %105, %104 : vector<8x128xf32>
    %107 = arith.select %99, %97, %106 : vector<8x128xi1>, vector<8x128xf32>
    %cst_35 = arith.constant 1.05070102 : f32
    %108 = vector.broadcast %cst_35 : f32 to vector<8x128xf32>
    %109 = arith.mulf %108, %107 : vector<8x128xf32>
    %110 = arith.truncf %109 : vector<8x128xf32> to vector<8x128xbf16>
    %c0_36 = arith.constant 0 : index
    %c0_37 = arith.constant 0 : index
    %111 = vector.load %arg8[%c0_36, %c0_37] : memref<128x128xbf16, #tpu.memory_space<vmem>>, vector<128x128xbf16>
    %cst_38 = arith.constant dense<0.000000e+00> : vector<8x128xf32>
    %112 = tpu.matmul %110, %111, %cst_38 {dimension_numbers = #tpu.dot_dimension_numbers<[1], [0], [0], [1], [0, 0, 1, 1], [], []>} : vector<8x128xbf16>, vector<128x128xbf16>, vector<8x128xf32> -> vector<8x128xf32>
    %c0_39 = arith.constant 0 : index
    %c0_40 = arith.constant 0 : index
    %113 = vector.load %arg9[%c0_39, %c0_40] : memref<1x128xf32, #tpu.memory_space<vmem>>, vector<1x128xf32>
    %114 = vector.broadcast %113 : vector<1x128xf32> to vector<8x128xf32>
    %115 = arith.addf %112, %114 : vector<8x128xf32>
    %c0_41 = arith.constant 0 : index
    %c0_42 = arith.constant 0 : index
    %116 = vector.load %arg15[%c0_41, %c0_42] : memref<8x128xf32, #tpu.memory_space<vmem>>, vector<8x128xf32>
    tpu.vector_store %arg15[%c0_41, %c0_42], %115 {strides = array<i32>} : memref<8x128xf32, #tpu.memory_space<vmem>>, vector<8x128xf32>,
    %117 = arith.truncf %115 : vector<8x128xf32> to vector<8x128xbf16>
    %c0_43 = arith.constant 0 : index
    %c0_44 = arith.constant 0 : index
    %118 = vector.load %arg10[%c0_43, %c0_44] : memref<128x256xbf16, #tpu.memory_space<vmem>>, vector<128x256xbf16>
    %cst_45 = arith.constant dense<0.000000e+00> : vector<8x256xf32>
    %119 = tpu.matmul %117, %118, %cst_45 {dimension_numbers = #tpu.dot_dimension_numbers<[1], [0], [0], [1], [0, 0, 1, 1], [], []>} : vector<8x128xbf16>, vector<128x256xbf16>, vector<8x256xf32> -> vector<8x256xf32>
    %c0_46 = arith.constant 0 : index
    %c0_47 = arith.constant 0 : index
    %120 = vector.load %arg11[%c0_46, %c0_47] : memref<1x256xf32, #tpu.memory_space<vmem>>, vector<1x256xf32>
    %121 = vector.broadcast %120 : vector<1x256xf32> to vector<8x256xf32>
    %122 = arith.addf %119, %121 : vector<8x256xf32>
    %cst_48 = arith.constant 0.000000e+00 : f32
    %123 = vector.broadcast %cst_48 : f32 to vector<8x256xf32>
    %124 = arith.cmpf ogt, %122, %123 : vector<8x256xf32>
    %cst_49 = arith.constant 0.000000e+00 : f32
    %125 = vector.broadcast %cst_49 : f32 to vector<8x256xf32>
    %126 = arith.minimumf %122, %125 : vector<8x256xf32>
    %127 = math.exp %126 : vector<8x256xf32>
    %cst_50 = arith.constant 1.000000e+00 : f32
    %128 = vector.broadcast %cst_50 : f32 to vector<8x256xf32>
    %129 = arith.subf %127, %128 : vector<8x256xf32>
    %cst_51 = arith.constant 1.67326319 : f32
    %130 = vector.broadcast %cst_51 : f32 to vector<8x256xf32>
    %131 = arith.mulf %130, %129 : vector<8x256xf32>
    %132 = arith.select %124, %122, %131 : vector<8x256xi1>, vector<8x256xf32>
    %cst_52 = arith.constant 1.05070102 : f32
    %133 = vector.broadcast %cst_52 : f32 to vector<8x256xf32>
    %134 = arith.mulf %133, %132 : vector<8x256xf32>
    %135 = arith.truncf %134 : vector<8x256xf32> to vector<8x256xbf16>
    %c0_53 = arith.constant 0 : index
    %c0_54 = arith.constant 0 : index
    %136 = vector.load %arg12[%c0_53, %c0_54] : memref<256x896xbf16, #tpu.memory_space<vmem>>, vector<256x896xbf16>
    %cst_55 = arith.constant dense<0.000000e+00> : vector<8x896xf32>
    %137 = tpu.matmul %135, %136, %cst_55 {dimension_numbers = #tpu.dot_dimension_numbers<[1], [0], [0], [1], [0, 0, 1, 1], [], []>} : vector<8x256xbf16>, vector<256x896xbf16>, vector<8x896xf32> -> vector<8x896xf32>
    %c0_56 = arith.constant 0 : index
    %c0_57 = arith.constant 0 : index
    %138 = vector.load %arg13[%c0_56, %c0_57] : memref<1x896xf32, #tpu.memory_space<vmem>>, vector<1x896xf32>
    %139 = vector.broadcast %138 : vector<1x896xf32> to vector<8x896xf32>
    %140 = arith.addf %137, %139 : vector<8x896xf32>
    %141 = math.absf %140 : vector<8x896xf32>
    %cst_58 = arith.constant 0.000000e+00 : f32
    %142 = vector.broadcast %cst_58 : f32 to vector<8x896xf32>
    %143 = arith.subf %142, %141 : vector<8x896xf32>
    %144 = math.exp %143 : vector<8x896xf32>
    %cst_59 = arith.constant 1.000000e+00 : f32
    %145 = vector.broadcast %cst_59 : f32 to vector<8x896xf32>
    %146 = arith.addf %145, %144 : vector<8x896xf32>
    %147 = tpu.reciprocal %146 {approx = true} : vector<8x896xf32> -> vector<8x896xf32>
    %cst_60 = arith.constant 0.000000e+00 : f32
    %148 = vector.broadcast %cst_60 : f32 to vector<8x896xf32>
    %149 = arith.cmpf oge, %140, %148 : vector<8x896xf32>
    %cst_61 = arith.constant 1.000000e+00 : f32
    %150 = vector.broadcast %cst_61 : f32 to vector<8x896xf32>
    %151 = arith.subf %150, %147 : vector<8x896xf32>
    %152 = arith.select %149, %147, %151 : vector<8x896xi1>, vector<8x896xf32>
    %153 = arith.truncf %152 : vector<8x896xf32> to vector<8x896xbf16>
    %c0_62 = arith.constant 0 : index
    %c0_63 = arith.constant 0 : index
    %154 = vector.load %arg14[%c0_62, %c0_63] : memref<8x896xbf16, #tpu.memory_space<vmem>>, vector<8x896xbf16>
    tpu.vector_store %arg14[%c0_62, %c0_63], %153 {strides = array<i32>} : memref<8x896xbf16, #tpu.memory_space<vmem>>, vector<8x896xbf16>,
    return
  }
  func.func @transform_0(%arg0: i32) -> (i32, i32, i32) {
    %c0_i32 = arith.constant 0 : i32
    %c0_i32_0 = arith.constant 0 : i32
    %c0_i32_1 = arith.constant 0 : i32
    return %arg0, %c0_i32, %c0_i32_0 : i32, i32, i32
  }
  func.func @transform_1(%arg0: i32) -> (i32, i32) {
    %c0_i32 = arith.constant 0 : i32
    %c0_i32_0 = arith.constant 0 : i32
    %c0_i32_1 = arith.constant 0 : i32
    return %c0_i32, %c0_i32_0 : i32, i32
  }
  func.func @transform_2(%arg0: i32) -> (i32, i32) {
    %c0_i32 = arith.constant 0 : i32
    %c0_i32_0 = arith.constant 0 : i32
    %c0_i32_1 = arith.constant 0 : i32
    return %c0_i32, %c0_i32_0 : i32, i32
  }
  func.func @transform_3(%arg0: i32) -> (i32, i32) {
    %c0_i32 = arith.constant 0 : i32
    %c0_i32_0 = arith.constant 0 : i32
    %c0_i32_1 = arith.constant 0 : i32
    return %c0_i32, %c0_i32_0 : i32, i32
  }
  func.func @transform_4(%arg0: i32) -> (i32, i32) {
    %c0_i32 = arith.constant 0 : i32
    %c0_i32_0 = arith.constant 0 : i32
    %c0_i32_1 = arith.constant 0 : i32
    return %c0_i32, %c0_i32_0 : i32, i32
  }
  func.func @transform_5(%arg0: i32) -> (i32, i32) {
    %c0_i32 = arith.constant 0 : i32
    %c0_i32_0 = arith.constant 0 : i32
    %c0_i32_1 = arith.constant 0 : i32
    return %c0_i32, %c0_i32_0 : i32, i32
  }
  func.func @transform_6(%arg0: i32) -> (i32, i32) {
    %c0_i32 = arith.constant 0 : i32
    %c0_i32_0 = arith.constant 0 : i32
    %c0_i32_1 = arith.constant 0 : i32
    return %c0_i32, %c0_i32_0 : i32, i32
  }
  func.func @transform_7(%arg0: i32) -> (i32, i32) {
    %c0_i32 = arith.constant 0 : i32
    %c0_i32_0 = arith.constant 0 : i32
    %c0_i32_1 = arith.constant 0 : i32
    return %c0_i32, %c0_i32_0 : i32, i32
  }
  func.func @transform_8(%arg0: i32) -> (i32, i32) {
    %c0_i32 = arith.constant 0 : i32
    %c0_i32_0 = arith.constant 0 : i32
    %c0_i32_1 = arith.constant 0 : i32
    return %c0_i32, %c0_i32_0 : i32, i32
  }
  func.func @transform_9(%arg0: i32) -> (i32, i32) {
    %c0_i32 = arith.constant 0 : i32
    %c0_i32_0 = arith.constant 0 : i32
    %c0_i32_1 = arith.constant 0 : i32
    return %c0_i32, %c0_i32_0 : i32, i32
  }
  func.func @transform_10(%arg0: i32) -> (i32, i32) {
    %c0_i32 = arith.constant 0 : i32
    %c0_i32_0 = arith.constant 0 : i32
    %c0_i32_1 = arith.constant 0 : i32
    return %c0_i32, %c0_i32_0 : i32, i32
  }
  func.func @transform_11(%arg0: i32) -> (i32, i32) {
    %c0_i32 = arith.constant 0 : i32
    %c0_i32_0 = arith.constant 0 : i32
    %c0_i32_1 = arith.constant 0 : i32
    return %c0_i32, %c0_i32_0 : i32, i32
  }
  func.func @transform_12(%arg0: i32) -> (i32, i32) {
    %c0_i32 = arith.constant 0 : i32
    %c0_i32_0 = arith.constant 0 : i32
    %c0_i32_1 = arith.constant 0 : i32
    return %c0_i32, %c0_i32_0 : i32, i32
  }
  func.func @transform_13(%arg0: i32) -> (i32, i32) {
    %c0_i32 = arith.constant 0 : i32
    %c0_i32_0 = arith.constant 0 : i32
    return %arg0, %c0_i32 : i32, i32
  }
  func.func @transform_14(%arg0: i32) -> (i32, i32) {
    %c0_i32 = arith.constant 0 : i32
    %c0_i32_0 = arith.constant 0 : i32
    return %arg0, %c0_i32 : i32, i32
  }
}

</mosaic_0001>

<bundles_post_ra>
// kernel: mnist_ae_forward.1
= control target key start
LH: loop header
LB: loop body
LE: loop exit
PB: predicated region body
PF: predicated region fallthrough
CT: control target
= control target key end

     0   :  { %s8501_s0 = inlined_call_operand.vmem [shape: bf16[2,72,128], index: 0, kind: input, shape index: {}]   ;;  %s8502_s1 = inlined_call_operand.hbm [shape: bf16[256,1024], index: 1, kind: input, shape index: {}]   ;;  %s8503_s2 = inlined_call_operand.vmem [shape: f32[1,128], index: 2, kind: input, shape index: {}]   ;;  %s8504_s3 = inlined_call_operand.vmem [shape: bf16[768,512], index: 3, kind: input, shape index: {}]   ;;  %s8505_s4 = inlined_call_operand.vmem [shape: f32[1,128], index: 4, kind: input, shape index: {}]   ;;  %s8506_s5 = inlined_call_operand.vmem [shape: bf16[512,128], index: 5, kind: input, shape index: {}]   ;;  %s8507_s6 = inlined_call_operand.vmem [shape: f32[1,128], index: 6, kind: input, shape index: {}]   ;;  %s8508_s7 = inlined_call_operand.hbm [shape: bf16[128,128], index: 7, kind: input, shape index: {}]   ;;  %s8509_s8 = inlined_call_operand.vmem [shape: f32[1,128], index: 8, kind: input, shape index: {}]   ;;  %s8510_s9 = inlined_call_operand.vmem [shape: bf16[128,256], index: 9, kind: input, shape index: {}]   ;;  %s8511_s10 = inlined_call_operand.vmem [shape: f32[1,256], index: 10, kind: input, shape index: {}]   ;;  %s8512_s11 = inlined_call_operand.hbm [shape: bf16[256,896], index: 11, kind: input, shape index: {}]   ;;  %s8513_s12 = inlined_call_operand.vmem [shape: f32[1,896], index: 12, kind: input, shape index: {}]   ;;  %s8514_s13 = inlined_call_operand.vmem [shape: bf16[16,896], index: 13, kind: output, shape index: {0}]   ;;  %s8515_s14 = inlined_call_operand.vmem [shape: f32[16,128], index: 14, kind: output, shape index: {1}]  }
   0x1   :  { %8519 = sst [smem:[#allocation10_spill]] %s8513_s12 }
   0x2   :  { %8520 = sst [smem:[#allocation11_spill]] %s8514_s13 }
   0x3   :  { %20 = vsyncpa [#allocation3], 0 }
   0x4   :  { %21 = vsyncpa [#allocation5], 0  ;;  %s7208_s29 = smov 0  }
   0x5 LB: > { %8521 = sst [smem:[#allocation9_spill]] %s7119_s29  ;;  %s7121_s30 = smov [#allocation4]   ;;  %s7119_s29 = sphi %s7208_s29, %s27_s29  }
   0x6   : > { %s402_s15 = sshll.u32 %s7121_s30, 4  ;;  %s7214_s16 = sadd.s32 4294967295, %s7119_s29   ;;  %s7219_s15 = int_to_ptr.vmem [resolvable:$true] %s402_s15 }
   0x7   : > { %p5641_p0 = scmp.ge.s32.totalorder %s7119_s29, 1  ;;  %p362_p1 = scmp.lt.s32.totalorder %s7119_s29, 3 }
   0x8   : > { %p8517_p2 = scmp.eq.s32.totalorder %s7214_s16, 0  ;;  %s7122_s18 = smov [#allocation2]  }
   0x9   : > { %p7221_p3 = pnand %p5641_p0, %p362_p1  ;;  %s374_s19 = sshll.u32 %s7122_s18, 4  ;;  %s7227_s19 = int_to_ptr.vmem [resolvable:$true] %s374_s19 }
   0xa   : > { %s7123_s21 = smov [#allocation6]   ;;  %s7021_s25 = scalar_lea.hbm %s8508_s7, 1024 }
   0xb   : > { %s8522_s17 = scalar_select %p7221_p3, 1, 0 }
   0xc   : > { %p6378_p4 = pneg %p7221_p3  ;;  %s7235_s22 = sshll.u32 %s7123_s21, 4  ;;  %s425_s22 = int_to_ptr.vmem [resolvable:$true] %s7235_s22 }
   0xd   : > { %p7022_p6 = scmp.ne.s32.totalorder %s8508_s7, %s7021_s25  ;;  %p7028_p10 = scmp.lt.u32.totalorder %s7021_s25, %s8508_s7 }
   0xe   : > { %p7231_p5 = pnand %p8517_p2, %p6378_p4 }
  0x10   : > { %p7245_p7 = pneg %p7231_p5 }
  0x12   : > { %p7024_p8 = pnand %p7245_p7, %p7022_p6 }
  0x14   : > { %p7025_p9 = pneg %p7024_p8 }
  0x16   : > { %p7030_p11 = pnand %p7028_p10, %p7025_p9 }
  0x18   : > { %7033 = shalt.err (!%p7030_p11)
}
  0x19   : > { %s7034_s21 = scalar_lea.vmem %s7219_s15, 1024  ;;  %p7042_p1 = scmp.lt.s32.totalorder %s7219_s15, %s7219_s15 }
  0x1a   : > { %p7035_p12 = scmp.ne.s32.totalorder %s7219_s15, %s7034_s21  ;;  %p7043_p4 = scmp.lt.s32.totalorder %s7034_s21, %s7034_s21 }
  0x1c   : > { %p7037_p13 = pnand %p7035_p12, %p7245_p7  ;;  %p7044_p6 = por %p7043_p4, %p7042_p1 }
  0x1e   : > { %p7038_p0 = pneg %p7037_p13 }
  0x20   : > { %p7045_p8 = pnand %p7044_p6, %p7038_p0 }
  0x22   : > { %7048 = shalt.err (!%p7045_p8)
}
  0x23   : > { %s7124_s23 = smov 64   ;;  %s7125_s24 = smov 4  }
  0x24   : > { %6384 = dma.hbm_to_vmem [thread:$0]  (!%p7231_p5), %s8508_s7, 1024, %s7219_s15, [#allocation5], %s7124_s23, %s7124_s23, %s7125_s24  }
  0x25   : > { %s7049_s18 = scalar_lea.hbm %s8502_s1, 16384 }
  0x26   : > { %p7050_p9 = scmp.ne.s32.totalorder %s8502_s1, %s7049_s18  ;;  %p7056_p12 = scmp.lt.u32.totalorder %s7049_s18, %s8502_s1 }
  0x28   : > { %p7052_p10 = pnand %p7050_p9, %p7245_p7 }
  0x2a   : > { %p7053_p11 = pneg %p7052_p10 }
  0x2c   : > { %p7058_p13 = pnand %p7056_p12, %p7053_p11 }
  0x2e   : > { %7061 = shalt.err (!%p7058_p13)
}
  0x2f   : > { %s7062_s15 = scalar_lea.vmem %s7227_s19, 16384  ;;  %p7070_p6 = scmp.lt.s32.totalorder %s7227_s19, %s7227_s19 }
  0x30   : > { %p7063_p0 = scmp.ne.s32.totalorder %s7227_s19, %s7062_s15  ;;  %p7071_p8 = scmp.lt.s32.totalorder %s7062_s15, %s7062_s15 }
  0x32   : > { %p7065_p1 = pnand %p7063_p0, %p7245_p7  ;;  %p7072_p9 = por %p7071_p8, %p7070_p6 }
  0x34   : > { %p7066_p4 = pneg %p7065_p1 }
  0x36   : > { %p7073_p10 = pnand %p7072_p9, %p7066_p4 }
  0x38   : > { %7076 = shalt.err (!%p7073_p10)
}
  0x39   : > { %s7126_s13 = smov 512   ;;  %s7127_s12 = smov 32  }
  0x3a   : > { %6381 = dma.hbm_to_vmem [thread:$0]  (!%p7231_p5), %s8502_s1, 16384, %s7227_s19, [#allocation3], %s7126_s13, %s7126_s13, %s7127_s12  }
  0x3b   : > { %s7077_s26 = scalar_lea.hbm %s8512_s11, 14336 }
  0x3c   : > { %p7078_p11 = scmp.ne.s32.totalorder %s8512_s11, %s7077_s26  ;;  %p7084_p0 = scmp.lt.u32.totalorder %s7077_s26, %s8512_s11 }
  0x3e   : > { %p7080_p12 = pnand %p7078_p11, %p7245_p7 }
  0x40   : > { %p7081_p13 = pneg %p7080_p12 }
  0x42   : > { %p7086_p1 = pnand %p7084_p0, %p7081_p13 }
  0x44   : > { %7089 = shalt.err (!%p7086_p1)
}
  0x45   : > { %s7090_s15 = scalar_lea.vmem %s425_s22, 14336  ;;  %p7098_p9 = scmp.lt.s32.totalorder %s425_s22, %s425_s22 }
  0x46   : > { %p7091_p4 = scmp.ne.s32.totalorder %s425_s22, %s7090_s15  ;;  %p7099_p10 = scmp.lt.s32.totalorder %s7090_s15, %s7090_s15 }
  0x48   : > { %p7093_p6 = pnand %p7091_p4, %p7245_p7  ;;  %p7100_p2 = por %p7099_p10, %p7098_p9 }
  0x4a   : > { %p7094_p8 = pneg %p7093_p6 }
  0x4c   : > { %p7101_p3 = pnand %p7100_p2, %p7094_p8 }
  0x4e   : > { %7104 = shalt.err (!%p7101_p3)
}
  0x4f   : > { %s7128_s19 = smov 448   ;;  %s7129_s13 = smov 28  }
  0x50   : > { %6387 = dma.hbm_to_vmem [thread:$0]  (!%p7231_p5), %s8512_s11, 14336, %s425_s22, [#allocation5], %s7128_s19, %s7128_s19, %s7129_s13  }
  0x51   : > { %p8525_p11 = scmp.ne.s32.totalorder %s8522_s17, 0 }
  0x52   : > { %p8526_p12 = scmp.eq.s32.totalorder (!%p8525_p11), %s7214_s16, 0 }
  0x53   : > { %451 = sbr.rel (%p8525_p11) target bundleno = 1898 (0x76a), region = 72 }
  0x5a   : > { %7110 = dma.done.wait (%p8526_p12), [#allocation3], 16384   ;;  %p8527_p7 = pmov %p8526_p12 }
  0x5c   : > { %7112 = vsyncadd (%p8527_p7), [#allocation3], 4294950912  ;;  %p8528_p2 = pmov %p8527_p7 }
  0x5e   : > { %7114 = dma.done.wait (%p8528_p2), [#allocation5], 15360   ;;  %p8529_p3 = pmov %p8528_p2 }
  0x5f   : > { %v606_v0 = vld [vmem:[#allocation2] sm:$0xff]  ;;  %v607_v2 = vld [vmem:[#allocation2 + $0x8] sm:$0xff]  ;;  %p509_p5 = scmp.lt.s32.totalorder %s7214_s16, 1  ;;  %vm561_vm0 = vsmask.f32 7424  ;;  %vm2029_vm15 = vcmask 1046528  }
  0x60   : > { %7116 = vsyncadd (%p8529_p3), [#allocation5], 4294951936  ;;  %v610_v1 = vld [vmem:[#allocation2 + $0x20] sm:$0xff]  ;;  %v611_v4 = vld [vmem:[#allocation2 + $0x28] sm:$0xff]  ;;  %s8530_s26 = sld [smem:[#allocation10_spill]]  ;;  %s8531_s21 = sld [smem:[#allocation11_spill]] }
  0x61   : > { %v5659_v3 = vcombine.high %v606_v0, %v610_v1  ;;  %v5658_v5 = vcombine.low %v606_v0, %v610_v1  ;;  %v614_v6 = vld [vmem:[#allocation2 + $0x40] sm:$0xff]  ;;  %v5661_v8 = vcombine.high %v607_v2, %v611_v4  ;;  %v5660_v9 = vcombine.low %v607_v2, %v611_v4  ;;  %v615_v11 = vld [vmem:[#allocation2 + $0x48] sm:$0xff]  ;;  %s8534_s16 = smov (!%p509_p5, %s7214_s16), 1 }
  0x62   : > { %v618_v7 = vld [vmem:[#allocation2 + $0x60] sm:$0xff]  ;;  %v619_v12 = vld [vmem:[#allocation2 + $0x68] sm:$0xff]  ;;  %s6364_s17 = smul.u32 36, %s8534_s16  ;;  %s5652_s13 = sshll.u32 %s8534_s16, 3 }
  0x63   : > { %v5667_v10 = vcombine.high %v614_v6, %v618_v7  ;;  %v622_v13 = vld [vmem:[#allocation2 + $0x80] sm:$0xff]  ;;  %1374 = vmatprep.subr.bf16.mxu0 %v5659_v3  ;;  %v5669_v14 = vcombine.high %v615_v11, %v619_v12  ;;  %v623_v16 = vld [vmem:[#allocation2 + $0x88] sm:$0xff]  ;;  %1455 = vmatprep.subr.bf16.mxu1 %v5661_v8  ;;  %v5666_v18 = vcombine.low %v614_v6, %v618_v7  ;;  %s522_s22 = scalar_lea.vmem %s8515_s14, %s5652_s13  ;;  %s6365_s27 = smul.u32 28, %s8534_s16 }
  0x64   : > { %v626_v15 = vld [vmem:[#allocation2 + $0xa0] sm:$0xff]  ;;  %v627_v17 = vld [vmem:[#allocation2 + $0xa8] sm:$0xff]  ;;  %1375 = vmatpush1.bf16.msra.mxu0 %v5658_v5  ;;  %1456 = vmatpush1.bf16.msra.mxu1 %v5660_v9  ;;  %v5668_v19 = vcombine.low %v615_v11, %v619_v12  ;;  %s7326_s28 = scalar_lea.vmem %s8501_s0, %s6364_s17 }
  0x65   : > { %1376 = vmatprep.subr.bf16.mxu0 %v5667_v10  ;;  %v5675_v20 = vcombine.high %v622_v13, %v626_v15  ;;  %1457 = vmatprep.subr.bf16.mxu1 %v5669_v14  ;;  %v5677_v21 = vcombine.high %v623_v16, %v627_v17  ;;  %v630_v22 = vld [vmem:[#allocation2 + $0xc0] sm:$0xff]  ;;  %v631_v24 = vld [vmem:[#allocation2 + $0xc8] sm:$0xff]  ;;  %v5674_v26 = vcombine.low %v622_v13, %v626_v15 }
  0x66   : > { %v634_v23 = vld [vmem:[#allocation2 + $0xe0] sm:$0xff]  ;;  %v635_v25 = vld [vmem:[#allocation2 + $0xe8] sm:$0xff]  ;;  %v5676_v27 = vcombine.low %v623_v16, %v627_v17  ;;  %s8488_s15 = scalar_lea.vmem %s8531_s21, %s6365_s27 }
  0x67   : > { %v5683_v28 = vcombine.high %v630_v22, %v634_v23  ;;  %v5685_v29 = vcombine.high %v631_v24, %v635_v25  ;;  %v638_v30 = vld [vmem:[#allocation2 + $0x100] sm:$0xff]  ;;  %v639_v32 = vld [vmem:[#allocation2 + $0x108] sm:$0xff]  ;;  %v5682_v34 = vcombine.low %v630_v22, %v634_v23  ;;  %v5684_v35 = vcombine.low %v631_v24, %v635_v25 }
  0x68   : > { %1377 = vmatpush1.bf16.msra.mxu0 %v5666_v18  ;;  %1458 = vmatpush1.bf16.msra.mxu1 %v5668_v19  ;;  %v642_v31 = vld [vmem:[#allocation2 + $0x120] sm:$0xff]  ;;  %v643_v33 = vld [vmem:[#allocation2 + $0x128] sm:$0xff] }
  0x69   : > { %1378 = vmatprep.subr.bf16.mxu0 %v5675_v20  ;;  %1459 = vmatprep.subr.bf16.mxu1 %v5677_v21  ;;  %v5691_v36 = vcombine.high %v638_v30, %v642_v31  ;;  %v5693_v37 = vcombine.high %v639_v32, %v643_v33  ;;  %v646_v38 = vld [vmem:[#allocation2 + $0x140] sm:$0xff]  ;;  %v647_v40 = vld [vmem:[#allocation2 + $0x148] sm:$0xff]  ;;  %v5690_v42 = vcombine.low %v638_v30, %v642_v31 }
  0x6a   : > { %v650_v39 = vld [vmem:[#allocation2 + $0x160] sm:$0xff]  ;;  %v651_v41 = vld [vmem:[#allocation2 + $0x168] sm:$0xff]  ;;  %v5692_v43 = vcombine.low %v639_v32, %v643_v33 }
  0x6b   : > { %v5699_v44 = vcombine.high %v646_v38, %v650_v39  ;;  %v5701_v45 = vcombine.high %v647_v40, %v651_v41  ;;  %v654_v46 = vld [vmem:[#allocation2 + $0x180] sm:$0xff]  ;;  %v655_v48 = vld [vmem:[#allocation2 + $0x188] sm:$0xff]  ;;  %v5698_v50 = vcombine.low %v646_v38, %v650_v39  ;;  %v5700_v52 = vcombine.low %v647_v40, %v651_v41 }
  0x6c   : > { %1379 = vmatpush1.bf16.msra.mxu0 %v5674_v26  ;;  %1460 = vmatpush1.bf16.msra.mxu1 %v5676_v27  ;;  %v658_v47 = vld [vmem:[#allocation2 + $0x1a0] sm:$0xff]  ;;  %v659_v49 = vld [vmem:[#allocation2 + $0x1a8] sm:$0xff] }
  0x6d   : > { %1380 = vmatprep.subr.bf16.mxu0 %v5683_v28  ;;  %1461 = vmatprep.subr.bf16.mxu1 %v5685_v29  ;;  %v662_v51 = vld [vmem:[#allocation2 + $0x1c0] sm:$0xff]  ;;  %v5707_v53 = vcombine.high %v654_v46, %v658_v47  ;;  %v5709_v55 = vcombine.high %v655_v48, %v659_v49  ;;  %v663_v57 = vld [vmem:[#allocation2 + $0x1c8] sm:$0xff]  ;;  %v5706_v60 = vcombine.low %v654_v46, %v658_v47 }
  0x6e   : > { %v666_v54 = vld [vmem:[#allocation2 + $0x1e0] sm:$0xff]  ;;  %v667_v58 = vld [vmem:[#allocation2 + $0x1e8] sm:$0xff]  ;;  %v5708_v63 = vcombine.low %v655_v48, %v659_v49 }
  0x6f   : > { %v7329_v56 = vld [vmem:[%s7326_s28] sm:$0xff]   ;;  %v7332_v59 = vld [vmem:[%s7326_s28 + $0x8] sm:$0xff]   ;;  %v5715_v0 = vcombine.high %v662_v51, %v666_v54  ;;  %v5717_v3 = vcombine.high %v663_v57, %v667_v58  ;;  %v5714_v9 = vcombine.low %v662_v51, %v666_v54  ;;  %v5716_v11 = vcombine.low %v663_v57, %v667_v58 }
  0x70   : > { %1381 = vmatpush1.bf16.msra.mxu0 %v5682_v34  ;;  %1462 = vmatpush1.bf16.msra.mxu1 %v5684_v35  ;;  %v563_v61 = vshrl.u32 %v7329_v56, 16  ;;  %v565_v62 = vshll.u32 %v7329_v56, 16  ;;  %v670_v1 = vld [vmem:[#allocation2 + $0x200] sm:$0xff]  ;;  %v570_v2 = vshll.u32 %v7332_v59, 16  ;;  %v671_v6 = vld [vmem:[#allocation2 + $0x208] sm:$0xff] }
  0x71   : > { %1382 = vmatprep.subr.bf16.mxu0 %v5691_v36  ;;  %1463 = vmatprep.subr.bf16.mxu1 %v5693_v37  ;;  %v674_v4 = vld [vmem:[#allocation2 + $0x220] sm:$0xff]  ;;  %v675_v7 = vld [vmem:[#allocation2 + $0x228] sm:$0xff] }
  0x72   : > { %v567_v5 = vrot.slane %v565_v62, 1  ;;  %v7337_v8 = vrot.slane %v570_v2, 1  ;;  %v5723_v12 = vcombine.high %v670_v1, %v674_v4  ;;  %v5725_v13 = vcombine.high %v671_v6, %v675_v7  ;;  %v678_v14 = vld [vmem:[#allocation2 + $0x240] sm:$0xff]  ;;  %v679_v17 = vld [vmem:[#allocation2 + $0x248] sm:$0xff] }
  0x73   : > { %v682_v15 = vld [vmem:[#allocation2 + $0x260] sm:$0xff]  ;;  %v683_v18 = vld [vmem:[#allocation2 + $0x268] sm:$0xff]  ;;  %v5722_v19 = vcombine.low %v670_v1, %v674_v4  ;;  %v5724_v20 = vcombine.low %v671_v6, %v675_v7  ;;  %v7346_v4 = vld [vmem:[%s7326_s28 + $0x10] sm:$0xff]  }
  0x74   : > { %1383 = vmatpush1.bf16.msra.mxu0 %v5690_v42  ;;  %1464 = vmatpush1.bf16.msra.mxu1 %v5692_v43  ;;  %v568_v10 = vor.u32 %v567_v5, %v563_v61  ;;  %v5731_v21 = vcombine.high %v678_v14, %v682_v15  ;;  %v5733_v22 = vcombine.high %v679_v17, %v683_v18  ;;  %v686_v23 = vld [vmem:[#allocation2 + $0x280] sm:$0xff]  ;;  %v687_v25 = vld [vmem:[#allocation2 + $0x288] sm:$0xff]  ;;  %v608_v7 = vld [vmem:[#allocation2 + $0x10] sm:$0xff] }
  0x75   : > { %1384 = vmatprep.subr.bf16.mxu0 %v5699_v44  ;;  %1465 = vmatprep.subr.bf16.mxu1 %v5701_v45  ;;  %v690_v24 = vld [vmem:[#allocation2 + $0x2a0] sm:$0xff]  ;;  %v691_v26 = vld [vmem:[#allocation2 + $0x2a8] sm:$0xff]  ;;  %v5730_v27 = vcombine.low %v678_v14, %v682_v15  ;;  %v5732_v28 = vcombine.low %v679_v17, %v683_v18  ;;  %v574_v15 = vshrl.u32 %v7332_v59, 16  ;;  %v578_v17 = vshll.u32 %v7346_v4, 16 }
  0x76   : > { %v7341_v16 = vsel %vm561_vm0, %v568_v10, %v7337_v8  ;;  %v5739_v29 = vcombine.high %v686_v23, %v690_v24  ;;  %v5741_v30 = vcombine.high %v687_v25, %v691_v26  ;;  %v694_v31 = vld [vmem:[#allocation2 + $0x2c0] sm:$0xff]  ;;  %v695_v33 = vld [vmem:[#allocation2 + $0x2c8] sm:$0xff]  ;;  %v5738_v35 = vcombine.low %v686_v23, %v690_v24  ;;  %v617_v23 = vld [vmem:[#allocation2 + $0x58] sm:$0xff] }
  0x77   : > { %1406 = vmatprep.mubr.bf16.mxu0 %v7341_v16  ;;  %1487 = vmatprep.mubr.bf16.mxu1 %v7341_v16  ;;  %v698_v32 = vld [vmem:[#allocation2 + $0x2e0] sm:$0xff]  ;;  %v699_v34 = vld [vmem:[#allocation2 + $0x2e8] sm:$0xff]  ;;  %v5740_v36 = vcombine.low %v687_v25, %v691_v26  ;;  %v621_v24 = vld [vmem:[#allocation2 + $0x78] sm:$0xff] }
  0x78   : > { %1385 = vmatpush1.bf16.msra.mxu0 %v5698_v50  ;;  %1466 = vmatpush1.bf16.msra.mxu1 %v5700_v52  ;;  %v5747_v37 = vcombine.high %v694_v31, %v698_v32  ;;  %v5749_v38 = vcombine.high %v695_v33, %v699_v34  ;;  %v702_v39 = vld [vmem:[#allocation2 + $0x300] sm:$0xff]  ;;  %v703_v41 = vld [vmem:[#allocation2 + $0x308] sm:$0xff]  ;;  %v5746_v43 = vcombine.low %v694_v31, %v698_v32  ;;  %v7351_v25 = vld [vmem:[%s7326_s28 + $0x18] sm:$0xff]  }
  0x79   : > { %1386 = vmatprep.subr.bf16.mxu0 %v5707_v53  ;;  %1467 = vmatprep.subr.bf16.mxu1 %v5709_v55  ;;  %v706_v40 = vld [vmem:[#allocation2 + $0x320] sm:$0xff]  ;;  %v707_v42 = vld [vmem:[#allocation2 + $0x328] sm:$0xff]  ;;  %v5748_v44 = vcombine.low %v695_v33, %v699_v34  ;;  %v628_v31 = vld [vmem:[#allocation2 + $0xb0] sm:$0xff] }
  0x7a   : > { %v5755_v45 = vcombine.high %v702_v39, %v706_v40  ;;  %v5757_v46 = vcombine.high %v703_v41, %v707_v42  ;;  %v710_v47 = vld [vmem:[#allocation2 + $0x340] sm:$0xff]  ;;  %v711_v49 = vld [vmem:[#allocation2 + $0x348] sm:$0xff]  ;;  %v5754_v51 = vcombine.low %v702_v39, %v706_v40  ;;  %v5756_v54 = vcombine.low %v703_v41, %v707_v42  ;;  %v625_v34 = vld [vmem:[#allocation2 + $0x98] sm:$0xff] }
  0x7b   : > { %v714_v48 = vld [vmem:[#allocation2 + $0x360] sm:$0xff]  ;;  %v715_v50 = vld [vmem:[#allocation2 + $0x368] sm:$0xff]  ;;  %v632_v40 = vld [vmem:[#allocation2 + $0xd0] sm:$0xff]  ;;  %v5672_v42 = vcombine.low %v617_v23, %v621_v24 }
  0x7c   : > { %1387 = vmatpush1.bf16.msra.mxu0 %v5706_v60  ;;  %1468 = vmatpush1.bf16.msra.mxu1 %v5708_v63  ;;  %v718_v52 = vld [vmem:[#allocation2 + $0x380] sm:$0xff]  ;;  %v5763_v55 = vcombine.high %v710_v47, %v714_v48  ;;  %v719_v57 = vld [vmem:[#allocation2 + $0x388] sm:$0xff]  ;;  %v5765_v60 = vcombine.high %v711_v49, %v715_v50  ;;  %v5762_v61 = vcombine.low %v710_v47, %v714_v48  ;;  %v636_v41 = vld [vmem:[#allocation2 + $0xf0] sm:$0xff] }
  0x7d   : > { %1388 = vmatprep.subr.bf16.mxu0 %v5715_v0  ;;  %1469 = vmatprep.subr.bf16.mxu1 %v5717_v3  ;;  %v722_v53 = vld [vmem:[#allocation2 + $0x3a0] sm:$0xff]  ;;  %v723_v58 = vld [vmem:[#allocation2 + $0x3a8] sm:$0xff]  ;;  %v5764_v0 = vcombine.low %v711_v49, %v715_v50  ;;  %v640_v50 = vld [vmem:[#allocation2 + $0x110] sm:$0xff] }
  0x7e   : > { %v726_v62 = vld [vmem:[#allocation2 + $0x3c0] sm:$0xff]  ;;  %v5771_v1 = vcombine.high %v718_v52, %v722_v53  ;;  %v727_v2 = vld [vmem:[#allocation2 + $0x3c8] sm:$0xff]  ;;  %v5773_v5 = vcombine.high %v719_v57, %v723_v58  ;;  %v5770_v6 = vcombine.low %v718_v52, %v722_v53  ;;  %v5772_v10 = vcombine.low %v719_v57, %v723_v58 }
  0x7f   : > { %v730_v63 = vld [vmem:[#allocation2 + $0x3e0] sm:$0xff]  ;;  %v731_v3 = vld [vmem:[#allocation2 + $0x3e8] sm:$0xff]  ;;  %v5687_v53 = vcombine.high %v632_v40, %v636_v41 }
  0x80   : > { %1389 = vmatpush1.bf16.msra.mxu0 %v5714_v9  ;;  %1470 = vmatpush1.bf16.msra.mxu1 %v5716_v11  ;;  %v612_v9 = vld [vmem:[#allocation2 + $0x30] sm:$0xff]  ;;  %v5779_v11 = vcombine.high %v726_v62, %v730_v63  ;;  %v5781_v14 = vcombine.high %v727_v2, %v731_v3  ;;  %v5778_v18 = vcombine.low %v726_v62, %v730_v63 }
  0x81   : > { %1390 = vmatprep.subr.bf16.mxu0 %v5723_v12  ;;  %1471 = vmatprep.subr.bf16.mxu1 %v5725_v13  ;;  %v609_v12 = vld [vmem:[#allocation2 + $0x18] sm:$0xff]  ;;  %v5686_v62 = vcombine.low %v632_v40, %v636_v41  ;;  %v648_v63 = vld [vmem:[#allocation2 + $0x150] sm:$0xff] }
  0x82   : > { %v613_v13 = vld [vmem:[#allocation2 + $0x38] sm:$0xff] }
  0x83   : > { %v5665_v26 = vcombine.high %v609_v12, %v613_v13  ;;  %v5664_v32 = vcombine.low %v609_v12, %v613_v13 }
  0x84   : > { %1391 = vmatpush1.bf16.msra.mxu0 %v5722_v19  ;;  %1472 = vmatpush1.bf16.msra.mxu1 %v5724_v20  ;;  %v616_v19 = vld [vmem:[#allocation2 + $0x50] sm:$0xff] }
  0x85   : > { %1392 = vmatprep.subr.bf16.mxu0 %v5731_v21  ;;  %1473 = vmatprep.subr.bf16.mxu1 %v5733_v22  ;;  %v620_v20 = vld [vmem:[#allocation2 + $0x70] sm:$0xff]  ;;  %v5780_v21 = vcombine.low %v727_v2, %v731_v3  ;;  %v5663_v22 = vcombine.high %v608_v7, %v612_v9  ;;  %v649_v3 = vld [vmem:[#allocation2 + $0x158] sm:$0xff] }
  0x86   : > { %v5671_v33 = vcombine.high %v616_v19, %v620_v20  ;;  %v5670_v39 = vcombine.low %v616_v19, %v620_v20  ;;  %v664_v20 = vld [vmem:[#allocation2 + $0x1d0] sm:$0xff] }
  0x88   : > { %1393 = vmatpush1.bf16.msra.mxu0 %v5730_v27  ;;  %1474 = vmatpush1.bf16.msra.mxu1 %v5732_v28  ;;  %v576_v27 = vor.u32 %v574_v15, %v7337_v8  ;;  %v580_v28 = vrot.slane %v578_v17, 1  ;;  %v582_v8 = vshrl.u32 %v7346_v4, 16  ;;  %v661_v15 = vld [vmem:[#allocation2 + $0x1b8] sm:$0xff] }
  0x89   : > { %1394 = vmatprep.subr.bf16.mxu0 %v5739_v29  ;;  %1475 = vmatprep.subr.bf16.mxu1 %v5741_v30  ;;  %v5662_v29 = vcombine.low %v608_v7, %v612_v9  ;;  %v624_v30 = vld [vmem:[#allocation2 + $0x90] sm:$0xff] }
  0x8a   : > { %v584_v48 = vor.u32 %v582_v8, %v580_v28  ;;  %v5678_v49 = vcombine.low %v624_v30, %v628_v31 }
  0x8c   : > { %1395 = vmatpush1.bf16.msra.mxu0 %v5738_v35  ;;  %1476 = vmatpush1.bf16.msra.mxu1 %v5740_v36  ;;  %v629_v35 = vld [vmem:[#allocation2 + $0xb8] sm:$0xff]  ;;  %v5673_v36 = vcombine.high %v617_v23, %v621_v24 }
  0x8d   : > { %1396 = vmatprep.subr.bf16.mxu0 %v5747_v37  ;;  %1477 = vmatprep.subr.bf16.mxu1 %v5749_v38  ;;  %v7356_v37 = vsel %vm561_vm0, %v576_v27, %v580_v28  ;;  %v586_v38 = vshll.u32 %v7351_v25, 16  ;;  %v5681_v47 = vcombine.high %v625_v34, %v629_v35  ;;  %v5680_v52 = vcombine.low %v625_v34, %v629_v35  ;;  %v665_v24 = vld [vmem:[#allocation2 + $0x1d8] sm:$0xff] }
  0x8e   : > { %v677_v34 = vld [vmem:[#allocation2 + $0x238] sm:$0xff] }
  0x90   : > { %1397 = vmatpush1.bf16.msra.mxu0 %v5746_v43  ;;  %1478 = vmatpush1.bf16.msra.mxu1 %v5748_v44  ;;  %v5679_v43 = vcombine.high %v624_v30, %v628_v31  ;;  %v633_v44 = vld [vmem:[#allocation2 + $0xd8] sm:$0xff]  ;;  %v676_v30 = vld [vmem:[#allocation2 + $0x230] sm:$0xff] }
  0x91   : > { %1398 = vmatprep.subr.bf16.mxu0 %v5755_v45  ;;  %1479 = vmatprep.subr.bf16.mxu1 %v5757_v46  ;;  %v637_v45 = vld [vmem:[#allocation2 + $0xf8] sm:$0xff]  ;;  %v7362_v46 = vld [vmem:[%s7326_s28 + $0x20] ss:$0 sps:$4 sm:$0xff]  }
  0x92   : > { %v5689_v57 = vcombine.high %v633_v44, %v637_v45  ;;  %v598_v28 = vshrl.u32 %v7362_v46, 16 }
  0x94   : > { %1399 = vmatpush1.bf16.msra.mxu0 %v5754_v51  ;;  %1480 = vmatpush1.bf16.msra.mxu1 %v5756_v54  ;;  %v644_v51 = vld [vmem:[#allocation2 + $0x130] sm:$0xff]  ;;  %v641_v54 = vld [vmem:[#allocation2 + $0x118] sm:$0xff] }
  0x95   : > { %1400 = vmatprep.subr.bf16.mxu0 %v5763_v55  ;;  %1481 = vmatprep.subr.bf16.mxu1 %v5765_v60  ;;  %v645_v55 = vld [vmem:[#allocation2 + $0x138] sm:$0xff]  ;;  %v590_v60 = vshrl.u32 %v7351_v25, 16  ;;  %v5695_v2 = vcombine.high %v640_v50, %v644_v51 }
  0x96   : > { %v5696_v12 = vcombine.low %v641_v54, %v645_v55 }
  0x98   : > { %1401 = vmatpush1.bf16.msra.mxu0 %v5762_v61  ;;  %1482 = vmatpush1.bf16.msra.mxu1 %v5764_v0  ;;  %v594_v61 = vshll.u32 %v7362_v46, 16  ;;  %v652_v0 = vld [vmem:[#allocation2 + $0x170] sm:$0xff] }
  0x99   : > { %1402 = vmatprep.subr.bf16.mxu0 %v5771_v1  ;;  %1483 = vmatprep.subr.bf16.mxu1 %v5773_v5  ;;  %v5688_v1 = vcombine.low %v633_v44, %v637_v45  ;;  %v653_v5 = vld [vmem:[#allocation2 + $0x178] sm:$0xff]  ;;  %v5703_v13 = vcombine.high %v648_v63, %v652_v0  ;;  %v5702_v19 = vcombine.low %v648_v63, %v652_v0  ;;  %v704_v0 = vld [vmem:[#allocation2 + $0x310] sm:$0xff] }
  0x9a   : > { %v596_v9 = vrot.slane %v594_v61, 1  ;;  %v5705_v17 = vcombine.high %v649_v3, %v653_v5  ;;  %v701_v61 = vld [vmem:[#allocation2 + $0x2f8] sm:$0xff] }
  0x9c   : > { %1403 = vmatpush1.bf16.msra.mxu0 %v5770_v6  ;;  %1484 = vmatpush1.bf16.msra.mxu1 %v5772_v10  ;;  %v5697_v6 = vcombine.high %v641_v54, %v645_v55  ;;  %v656_v10 = vld [vmem:[#allocation2 + $0x190] sm:$0xff] }
  0x9d   : > { %1404 = vmatprep.subr.bf16.mxu0 %v5779_v11  ;;  %1485 = vmatprep.subr.bf16.mxu1 %v5781_v14  ;;  %v660_v11 = vld [vmem:[#allocation2 + $0x1b0] sm:$0xff]  ;;  %v657_v14 = vld [vmem:[#allocation2 + $0x198] sm:$0xff] }
  0x9e   : > { %v5711_v23 = vcombine.high %v656_v10, %v660_v11  ;;  %v5713_v27 = vcombine.high %v657_v14, %v661_v15  ;;  %v5712_v31 = vcombine.low %v657_v14, %v661_v15  ;;  %v700_v54 = vld [vmem:[#allocation2 + $0x2f0] sm:$0xff] }
  0xa0   : > { %1405 = vmatpush1.bf16.msra.mxu0 %v5778_v18  ;;  %1486 = vmatpush1.bf16.msra.mxu1 %v5780_v21  ;;  %v668_v21 = vld [vmem:[#allocation2 + $0x1f0] sm:$0xff] }
  0xa1   : > { %1536 = vmatprep.subr.bf16.mxu0 %v5663_v22  ;;  %1617 = vmatprep.subr.bf16.mxu1 %v5665_v26  ;;  %v5704_v22 = vcombine.low %v649_v3, %v653_v5  ;;  %v669_v26 = vld [vmem:[#allocation2 + $0x1f8] sm:$0xff]  ;;  %v5718_v8 = vcombine.low %v664_v20, %v668_v21 }
  0xa2   : > { %v5721_v35 = vcombine.high %v665_v24, %v669_v26  ;;  %v5720_v40 = vcombine.low %v665_v24, %v669_v26  ;;  %v705_v5 = vld [vmem:[#allocation2 + $0x318] sm:$0xff] }
  0xa3   : > { %1407 = vmatmul.mubr.bf16.vlgmr.msra.gmra.mrb[0].mxu0 %v7329_v56  ;;  %1488 = vmatmul.mubr.bf16.vlgmr.msra.gmra.mrb[0].mxu1 %v7329_v56  ;;  %v588_v56 = vrot.slane %v586_v38, 1  ;;  %v680_v38 = vld [vmem:[#allocation2 + $0x250] sm:$0xff] }
  0xa4   : > { %1537 = vmatpush1.bf16.msra.mxu0 %v5662_v29  ;;  %1618 = vmatpush1.bf16.msra.mxu1 %v5664_v32  ;;  %v672_v29 = vld [vmem:[#allocation2 + $0x210] sm:$0xff]  ;;  %v5719_v32 = vcombine.high %v664_v20, %v668_v21 }
  0xa5   : > { %1538 = vmatprep.subr.bf16.mxu0 %v5671_v33  ;;  %1619 = vmatprep.subr.bf16.mxu1 %v5673_v36  ;;  %v7368_v58 = vsel %vm561_vm0, %v584_v48, %v588_v56  ;;  %v592_v7 = vor.u32 %v590_v60, %v588_v56  ;;  %v673_v33 = vld [vmem:[#allocation2 + $0x218] sm:$0xff]  ;;  %v7383_v36 = vor.u32 %v598_v28, %v596_v9  ;;  %v732_v28 = vld [vmem:[#allocation2 + $0x3f0] sm:$0xff] }
  0xa6   : > { %1416 = vmatprep.mubr.bf16.mxu0 %v7356_v37  ;;  %1497 = vmatprep.mubr.bf16.mxu1 %v7356_v37  ;;  %v5727_v41 = vcombine.high %v672_v29, %v676_v30  ;;  %v5729_v44 = vcombine.high %v673_v33, %v677_v34  ;;  %v5726_v45 = vcombine.low %v672_v29, %v676_v30  ;;  %v697_v60 = vld [vmem:[#allocation2 + $0x2d8] sm:$0xff] }
  0xa7   : > { %v7377_v18 = vsel %vm561_vm0, %v592_v7, %v596_v9  ;;  %v5728_v48 = vcombine.low %v673_v33, %v677_v34  ;;  %v5753_v7 = vcombine.high %v697_v60, %v701_v61  ;;  %v729_v30 = vld [vmem:[#allocation2 + $0x3d8] sm:$0xff] }
  0xa8   : > { %1539 = vmatpush1.bf16.msra.mxu0 %v5670_v39  ;;  %1620 = vmatpush1.bf16.msra.mxu1 %v5672_v42  ;;  %v684_v39 = vld [vmem:[#allocation2 + $0x270] sm:$0xff]  ;;  %v681_v42 = vld [vmem:[#allocation2 + $0x258] sm:$0xff] }
  0xa9   : > { %1540 = vmatprep.subr.bf16.mxu0 %v5679_v43  ;;  %1621 = vmatprep.subr.bf16.mxu1 %v5681_v47  ;;  %v685_v43 = vld [vmem:[#allocation2 + $0x278] sm:$0xff]  ;;  %v688_v47 = vld [vmem:[#allocation2 + $0x290] sm:$0xff]  ;;  %v5735_v56 = vcombine.high %v680_v38, %v684_v39 }
  0xaa   : > { %v5736_v55 = vcombine.low %v681_v42, %v685_v43 }
  0xab   : > { %1417 = vmatmul.mubr.bf16.gmra.mrb[4].mxu0 %v7332_v59  ;;  %1498 = vmatmul.mubr.bf16.gmra.mrb[4].mxu1 %v7332_v59  ;;  %v5694_v59 = vcombine.low %v640_v50, %v644_v51  ;;  %v693_v50 = vld [vmem:[#allocation2 + $0x2b8] sm:$0xff]  ;;  %v5737_v51 = vcombine.high %v681_v42, %v685_v43  ;;  %v7019_v42 = vld [vmem:[%s7326_s28 + $0x10] sm:$0xff]  }
  0xac   : > { %1541 = vmatpush1.bf16.msra.mxu0 %v5678_v49  ;;  %1622 = vmatpush1.bf16.msra.mxu1 %v5680_v52  ;;  %v689_v49 = vld [vmem:[#allocation2 + $0x298] sm:$0xff]  ;;  %v5734_v52 = vcombine.low %v680_v38, %v684_v39 }
  0xad   : > { %1542 = vmatprep.subr.bf16.mxu0 %v5687_v53  ;;  %1623 = vmatprep.subr.bf16.mxu1 %v5689_v57  ;;  %v696_v53 = vld [vmem:[#allocation2 + $0x2d0] sm:$0xff]  ;;  %v7020_v43 = vld [vmem:[%s7326_s28 + $0x18] sm:$0xff]  }
  0xae   : > { %1426 = vmatprep.mubr.bf16.mxu0 %v7368_v58  ;;  %1507 = vmatprep.mubr.bf16.mxu1 %v7368_v58  ;;  %v5751_v3 = vcombine.high %v696_v53, %v700_v54  ;;  %v5750_v9 = vcombine.low %v696_v53, %v700_v54  ;;  %v6440_v53 = vld [vmem:[%s8504_s3 + $0x68] ss:$16 sps:$4 sm:$0xff]   ;;  %v6445_v54 = vld [vmem:[%s8504_s3 + $0x84] ss:$16 sps:$4 sm:$0xff]  }
  0xb0   : > { %1543 = vmatpush1.bf16.msra.mxu0 %v5686_v62  ;;  %1624 = vmatpush1.bf16.msra.mxu1 %v5688_v1  ;;  %v5745_v62 = vcombine.high %v689_v49, %v693_v50  ;;  %v708_v1 = vld [vmem:[#allocation2 + $0x330] sm:$0xff] }
  0xb1   : > { %1544 = vmatprep.subr.bf16.mxu0 %v5695_v2  ;;  %1625 = vmatprep.subr.bf16.mxu1 %v5697_v6  ;;  %v5744_v2 = vcombine.low %v689_v49, %v693_v50  ;;  %v709_v6 = vld [vmem:[#allocation2 + $0x338] sm:$0xff]  ;;  %v5758_v15 = vcombine.low %v704_v0, %v708_v1  ;;  %v6439_v50 = vld [vmem:[%s8504_s3 + $0x64] ss:$16 sps:$4 sm:$0xff]  }
  0xb2   : > { %v5761_v14 = vcombine.high %v705_v5, %v709_v6  ;;  %v5760_v20 = vcombine.low %v705_v5, %v709_v6  ;;  %v6434_v49 = vld [vmem:[%s8504_s3 + $0x48] ss:$16 sps:$4 sm:$0xff]   ;;  %v6463_v6 = vld [vmem:[%s8504_s3 + $0xe4] ss:$16 sps:$4 sm:$0xff]  }
  0xb3   : > { %1427 = vmatmul.mubr.bf16.gmra.mrb[8].mxu0 %v7346_v4  ;;  %1508 = vmatmul.mubr.bf16.gmra.mrb[8].mxu1 %v7346_v4  ;;  %v5710_v4 = vcombine.low %v656_v10, %v660_v11  ;;  %v716_v10 = vld [vmem:[#allocation2 + $0x370] sm:$0xff]  ;;  %v5752_v11 = vcombine.low %v697_v60, %v701_v61  ;;  %v6446_v60 = vld [vmem:[%s8504_s3 + $0x88] ss:$16 sps:$4 sm:$0xff]  }
  0xb4   : > { %1545 = vmatpush1.bf16.msra.mxu0 %v5694_v59  ;;  %1626 = vmatpush1.bf16.msra.mxu1 %v5696_v12  ;;  %v712_v59 = vld [vmem:[#allocation2 + $0x350] sm:$0xff]  ;;  %v713_v12 = vld [vmem:[#allocation2 + $0x358] sm:$0xff] }
  0xb5   : > { %1546 = vmatprep.subr.bf16.mxu0 %v5703_v13  ;;  %1627 = vmatprep.subr.bf16.mxu1 %v5705_v17  ;;  %v717_v13 = vld [vmem:[#allocation2 + $0x378] sm:$0xff]  ;;  %v720_v17 = vld [vmem:[#allocation2 + $0x390] sm:$0xff]  ;;  %v5767_v21 = vcombine.high %v712_v59, %v716_v10  ;;  %v5766_v26 = vcombine.low %v712_v59, %v716_v10 }
  0xb6   : > { %1436 = vmatprep.mubr.bf16.mxu0 %v7377_v18  ;;  %1517 = vmatprep.mubr.bf16.mxu1 %v7377_v18  ;;  %v5769_v24 = vcombine.high %v713_v12, %v717_v13  ;;  %v6451_v61 = vld [vmem:[%s8504_s3 + $0xa4] ss:$16 sps:$4 sm:$0xff]   ;;  %v6458_v5 = vld [vmem:[%s8504_s3 + $0xc8] ss:$16 sps:$4 sm:$0xff]  }
  0xb7   : > { %v6464_v59 = vld [vmem:[%s8504_s3 + $0xe8] ss:$16 sps:$4 sm:$0xff]   ;;  %v6469_v10 = vld [vmem:[%s8504_s3 + $0x104] ss:$16 sps:$4 sm:$0xff]  }
  0xb8   : > { %1547 = vmatpush1.bf16.msra.mxu0 %v5702_v19  ;;  %1628 = vmatpush1.bf16.msra.mxu1 %v5704_v22  ;;  %v724_v19 = vld [vmem:[#allocation2 + $0x3b0] sm:$0xff]  ;;  %v721_v22 = vld [vmem:[#allocation2 + $0x398] sm:$0xff] }
  0xb9   : > { %1548 = vmatprep.subr.bf16.mxu0 %v5711_v23  ;;  %1629 = vmatprep.subr.bf16.mxu1 %v5713_v27  ;;  %v725_v23 = vld [vmem:[#allocation2 + $0x3b8] sm:$0xff]  ;;  %v728_v27 = vld [vmem:[#allocation2 + $0x3d0] sm:$0xff]  ;;  %v5775_v29 = vcombine.high %v720_v17, %v724_v19  ;;  %v5774_v33 = vcombine.low %v720_v17, %v724_v19 }
  0xba   : > { %v5776_v34 = vcombine.low %v721_v22, %v725_v23  ;;  %v5782_v38 = vcombine.low %v728_v27, %v732_v28  ;;  %v6476_v17 = vld [vmem:[%s8504_s3 + $0x128] ss:$16 sps:$4 sm:$0xff]   ;;  %v6481_v19 = vld [vmem:[%s8504_s3 + $0x144] ss:$16 sps:$4 sm:$0xff]  }
  0xbb   : > { %1437 = vmatmul.mubr.bf16.gmra.mrb[12].mxu0 %v7351_v25  ;;  %1518 = vmatmul.mubr.bf16.gmra.mrb[12].mxu1 %v7351_v25  ;;  %v692_v25 = vld [vmem:[#allocation2 + $0x2b0] sm:$0xff] }
  0xbc   : > { %1549 = vmatpush1.bf16.msra.mxu0 %v5710_v4  ;;  %1630 = vmatpush1.bf16.msra.mxu1 %v5712_v31  ;;  %v5743_v57 = vcombine.high %v688_v47, %v692_v25  ;;  %v5742_v63 = vcombine.low %v688_v47, %v692_v25  ;;  %v5768_v4 = vcombine.low %v713_v12, %v717_v13  ;;  %v733_v31 = vld [vmem:[#allocation2 + $0x3f8] sm:$0xff]  ;;  %v6433_v25 = vld [vmem:[%s8504_s3 + $0x44] ss:$16 sps:$4 sm:$0xff]  }
  0xbd   : > { %1550 = vmatprep.subr.bf16.mxu0 %v5719_v32  ;;  %1631 = vmatprep.subr.bf16.mxu1 %v5721_v35  ;;  %v5777_v32 = vcombine.high %v721_v22, %v725_v23  ;;  %v5783_v35 = vcombine.high %v728_v27, %v732_v28  ;;  %v5784_v39 = vcombine.low %v729_v30, %v733_v31  ;;  %v6428_v47 = vld [vmem:[%s8504_s3 + $0x28] ss:$16 sps:$4 sm:$0xff]   ;;  %v6475_v13 = vld [vmem:[%s8504_s3 + $0x124] ss:$16 sps:$4 sm:$0xff]  }
  0xbe   : > { %1446 = vmatprep.mubr.bf16.mxu0 %v7383_v36  ;;  %1527 = vmatprep.mubr.bf16.mxu1 %v7383_v36  ;;  %v6470_v12 = vld [vmem:[%s8504_s3 + $0x108] ss:$16 sps:$4 sm:$0xff]   ;;  %v6487_v23 = vld [vmem:[%s8504_s3 + $0x164] ss:$16 sps:$4 sm:$0xff]  }
  0xbf   : > { %v6482_v22 = vld [vmem:[%s8504_s3 + $0x148] ss:$16 sps:$4 sm:$0xff]   ;;  %v6493_v28 = vld [vmem:[%s8504_s3 + $0x184] ss:$16 sps:$4 sm:$0xff]  }
  0xc0   : > { %1551 = vmatpush1.bf16.msra.mxu0 %v5718_v8  ;;  %1632 = vmatpush1.bf16.msra.mxu1 %v5720_v40  ;;  %v5785_v8 = vcombine.high %v729_v30, %v733_v31  ;;  %v7017_v40 = vld [vmem:[%s7326_s28] sm:$0xff]   ;;  %v6488_v27 = vld [vmem:[%s8504_s3 + $0x168] ss:$16 sps:$4 sm:$0xff]  }
  0xc1   : > { %1552 = vmatprep.subr.bf16.mxu0 %v5727_v41  ;;  %1633 = vmatprep.subr.bf16.mxu1 %v5729_v44  ;;  %v7018_v41 = vld [vmem:[%s7326_s28 + $0x8] sm:$0xff]   ;;  %v6499_v31 = vld [vmem:[%s8504_s3 + $0x1a4] ss:$16 sps:$4 sm:$0xff]  }
  0xc2   : > { %v6430_v44 = vld [vmem:[%s8504_s3 + $0x2c] ss:$16 sps:$4 sm:$0xff]   ;;  %v6494_v30 = vld [vmem:[%s8504_s3 + $0x188] ss:$16 sps:$4 sm:$0xff]  }
  0xc3   : > { %1447 = vmatmul.mubr.bf16.gmra.mrb[16].mxu0 %v7362_v46  ;;  %1528 = vmatmul.mubr.bf16.gmra.mrb[16].mxu1 %v7362_v46 }
  0xc4   : > { %1553 = vmatpush1.bf16.msra.mxu0 %v5726_v45  ;;  %1634 = vmatpush1.bf16.msra.mxu1 %v5728_v48  ;;  %v6425_v45 = vld [vmem:[%s8504_s3 + $0x20] ss:$16 sps:$4 sm:$0xff]   ;;  %v6436_v48 = vld [vmem:[%s8504_s3 + $0x4c] ss:$16 sps:$4 sm:$0xff]  }
  0xc5   : > { %1554 = vmatprep.subr.bf16.mxu0 %v5735_v56  ;;  %1635 = vmatprep.subr.bf16.mxu1 %v5737_v51  ;;  %v6431_v56 = vld [vmem:[%s8504_s3 + $0x40] ss:$16 sps:$4 sm:$0xff]   ;;  %v6442_v51 = vld [vmem:[%s8504_s3 + $0x6c] ss:$16 sps:$4 sm:$0xff]  }
  0xc6   : > { %1568 = vmatprep.mubr.bf16.mxu0 %v7341_v16  ;;  %1649 = vmatprep.mubr.bf16.mxu1 %v7341_v16  ;;  %v5759_v16 = vcombine.high %v704_v0, %v708_v1  ;;  %v6452_v0 = vld [vmem:[%s8504_s3 + $0xa8] ss:$16 sps:$4 sm:$0xff]   ;;  %v6457_v1 = vld [vmem:[%s8504_s3 + $0xc4] ss:$16 sps:$4 sm:$0xff]  }
  0xc8   : > { %1555 = vmatpush1.bf16.msra.mxu0 %v5734_v52  ;;  %1636 = vmatpush1.bf16.msra.mxu1 %v5736_v55  ;;  %v6437_v52 = vld [vmem:[%s8504_s3 + $0x60] ss:$16 sps:$4 sm:$0xff]   ;;  %v6448_v55 = vld [vmem:[%s8504_s3 + $0x8c] ss:$16 sps:$4 sm:$0xff]  }
  0xc9   : > { %1556 = vmatprep.subr.bf16.mxu0 %v5743_v57  ;;  %1637 = vmatprep.subr.bf16.mxu1 %v5745_v62  ;;  %v6443_v57 = vld [vmem:[%s8504_s3 + $0x80] ss:$16 sps:$4 sm:$0xff]   ;;  %v6454_v62 = vld [vmem:[%s8504_s3 + $0xac] ss:$16 sps:$4 sm:$0xff]  }
  0xcc   : > { %1557 = vmatpush1.bf16.msra.mxu0 %v5742_v63  ;;  %1638 = vmatpush1.bf16.msra.mxu1 %v5744_v2  ;;  %v6449_v63 = vld [vmem:[%s8504_s3 + $0xa0] ss:$16 sps:$4 sm:$0xff]   ;;  %v6460_v2 = vld [vmem:[%s8504_s3 + $0xcc] ss:$16 sps:$4 sm:$0xff]  }
  0xcd   : > { %1558 = vmatprep.subr.bf16.mxu0 %v5751_v3  ;;  %1639 = vmatprep.subr.bf16.mxu1 %v5753_v7  ;;  %v6455_v3 = vld [vmem:[%s8504_s3 + $0xc0] ss:$16 sps:$4 sm:$0xff]   ;;  %v6466_v7 = vld [vmem:[%s8504_s3 + $0xec] ss:$16 sps:$4 sm:$0xff]  }
  0xd0   : > { %1559 = vmatpush1.bf16.msra.mxu0 %v5750_v9  ;;  %1640 = vmatpush1.bf16.msra.mxu1 %v5752_v11  ;;  %v6461_v9 = vld [vmem:[%s8504_s3 + $0xe0] ss:$16 sps:$4 sm:$0xff]   ;;  %v6472_v11 = vld [vmem:[%s8504_s3 + $0x10c] ss:$16 sps:$4 sm:$0xff]  }
  0xd1   : > { %1560 = vmatprep.subr.bf16.mxu0 %v5759_v16  ;;  %1641 = vmatprep.subr.bf16.mxu1 %v5761_v14  ;;  %v6467_v16 = vld [vmem:[%s8504_s3 + $0x100] ss:$16 sps:$4 sm:$0xff]   ;;  %v6478_v14 = vld [vmem:[%s8504_s3 + $0x12c] ss:$16 sps:$4 sm:$0xff]  }
  0xd4   : > { %1561 = vmatpush1.bf16.msra.mxu0 %v5758_v15  ;;  %1642 = vmatpush1.bf16.msra.mxu1 %v5760_v20  ;;  %v6473_v15 = vld [vmem:[%s8504_s3 + $0x120] ss:$16 sps:$4 sm:$0xff]   ;;  %v6484_v20 = vld [vmem:[%s8504_s3 + $0x14c] ss:$16 sps:$4 sm:$0xff]  }
  0xd5   : > { %1562 = vmatprep.subr.bf16.mxu0 %v5767_v21  ;;  %1643 = vmatprep.subr.bf16.mxu1 %v5769_v24  ;;  %v6479_v21 = vld [vmem:[%s8504_s3 + $0x140] ss:$16 sps:$4 sm:$0xff]   ;;  %v6490_v24 = vld [vmem:[%s8504_s3 + $0x16c] ss:$16 sps:$4 sm:$0xff]  }
  0xd8   : > { %1563 = vmatpush1.bf16.msra.mxu0 %v5766_v26  ;;  %1644 = vmatpush1.bf16.msra.mxu1 %v5768_v4  ;;  %v6485_v26 = vld [vmem:[%s8504_s3 + $0x160] ss:$16 sps:$4 sm:$0xff]   ;;  %v6496_v4 = vld [vmem:[%s8504_s3 + $0x18c] ss:$16 sps:$4 sm:$0xff]  }
  0xd9   : > { %1564 = vmatprep.subr.bf16.mxu0 %v5775_v29  ;;  %1645 = vmatprep.subr.bf16.mxu1 %v5777_v32  ;;  %v6491_v29 = vld [vmem:[%s8504_s3 + $0x180] ss:$16 sps:$4 sm:$0xff]   ;;  %v6502_v32 = vld [vmem:[%s8504_s3 + $0x1ac] ss:$16 sps:$4 sm:$0xff]  }
  0xdc   : > { %1565 = vmatpush1.bf16.msra.mxu0 %v5774_v33  ;;  %1646 = vmatpush1.bf16.msra.mxu1 %v5776_v34  ;;  %v6497_v33 = vld [vmem:[%s8504_s3 + $0x1a0] ss:$16 sps:$4 sm:$0xff]   ;;  %v6500_v34 = vld [vmem:[%s8504_s3 + $0x1a8] ss:$16 sps:$4 sm:$0xff]  }
  0xdd   : > { %1566 = vmatprep.subr.bf16.mxu0 %v5783_v35  ;;  %1647 = vmatprep.subr.bf16.mxu1 %v5785_v8  ;;  %v6505_v35 = vld [vmem:[%s8504_s3 + $0x1c4] ss:$16 sps:$4 sm:$0xff]   ;;  %v6508_v8 = vld [vmem:[%s8504_s3 + $0x1cc] ss:$16 sps:$4 sm:$0xff]  }
  0xe0   : > { %1567 = vmatpush1.bf16.msra.mxu0 %v5782_v38  ;;  %1648 = vmatpush1.bf16.msra.mxu1 %v5784_v39  ;;  %v6503_v38 = vld [vmem:[%s8504_s3 + $0x1c0] ss:$16 sps:$4 sm:$0xff]   ;;  %v6506_v39 = vld [vmem:[%s8504_s3 + $0x1c8] ss:$16 sps:$4 sm:$0xff]  }
  0xe3   : > { %1569 = vmatmul.mubr.bf16.vlgmr.msra.gmra.mrb[20].mxu0 %v7017_v40  ;;  %1650 = vmatmul.mubr.bf16.vlgmr.msra.gmra.mrb[20].mxu1 %v7017_v40  ;;  %v6511_v40 = vld [vmem:[%s8504_s3 + $0x1e4] ss:$16 sps:$4 sm:$0xff]  }
  0xe4   : > { %1578 = vmatprep.mubr.bf16.mxu0 %v7356_v37  ;;  %1659 = vmatprep.mubr.bf16.mxu1 %v7356_v37  ;;  %v6421_v37 = vld [vmem:[%s8504_s3 + $0x4] ss:$16 sps:$4 sm:$0xff]  }
  0xe5   : > { %3210 = vmatprep.subr.bf16.mxu0 %v6421_v37  ;;  %v6517_v37 = vld [vmem:[%s8504_s3 + $0x204] ss:$16 sps:$4 sm:$0xff]  }
  0xeb   : > { %1579 = vmatmul.mubr.bf16.gmra.mrb[24].mxu0 %v7018_v41  ;;  %1660 = vmatmul.mubr.bf16.gmra.mrb[24].mxu1 %v7018_v41  ;;  %v6514_v41 = vld [vmem:[%s8504_s3 + $0x1ec] ss:$16 sps:$4 sm:$0xff]  }
  0xec   : > { %1588 = vmatprep.mubr.bf16.mxu0 %v7368_v58  ;;  %1669 = vmatprep.mubr.bf16.mxu1 %v7368_v58  ;;  %v6424_v58 = vld [vmem:[%s8504_s3 + $0xc] ss:$16 sps:$4 sm:$0xff]  }
  0xed   : > { %3447 = vmatprep.subr.bf16.mxu1 %v6424_v58  ;;  %v6520_v58 = vld [vmem:[%s8504_s3 + $0x20c] ss:$16 sps:$4 sm:$0xff]  }
  0xf3   : > { %1589 = vmatmul.mubr.bf16.gmra.mrb[28].mxu0 %v7019_v42  ;;  %1670 = vmatmul.mubr.bf16.gmra.mrb[28].mxu1 %v7019_v42  ;;  %v6509_v42 = vld [vmem:[%s8504_s3 + $0x1e0] ss:$16 sps:$4 sm:$0xff]  }
  0xf4   : > { %1598 = vmatprep.mubr.bf16.mxu0 %v7377_v18  ;;  %1679 = vmatprep.mubr.bf16.mxu1 %v7377_v18  ;;  %v6419_v18 = vld [vmem:[%s8504_s3] ss:$16 sps:$4 sm:$0xff]  }
  0xf5   : > { %3211 = vmatpush1.bf16.msra.mxu0 %v6419_v18 }
  0xfb   : > { %1599 = vmatmul.mubr.bf16.gmra.mrb[32].mxu0 %v7020_v43  ;;  %1680 = vmatmul.mubr.bf16.gmra.mrb[32].mxu1 %v7020_v43  ;;  %v6512_v43 = vld [vmem:[%s8504_s3 + $0x1e8] ss:$16 sps:$4 sm:$0xff]  }
  0xfc   : > { %1608 = vmatprep.mubr.bf16.mxu0 %v7383_v36  ;;  %1689 = vmatprep.mubr.bf16.mxu1 %v7383_v36  ;;  %v6422_v36 = vld [vmem:[%s8504_s3 + $0x8] ss:$16 sps:$4 sm:$0xff]  }
  0xfd   : > { %3448 = vmatpush1.bf16.msra.mxu1 %v6422_v36 }
  0xfe   : > { %3449 = vmatprep.subr.bf16.mxu1 %v6430_v44 }
 0x101   : > { %3450 = vmatpush1.bf16.msra.mxu1 %v6428_v47 }
 0x102   : > { %3451 = vmatprep.subr.bf16.mxu1 %v6436_v48 }
 0x103   : > { %1609 = vmatmul.mubr.bf16.gmra.mrb[36].mxu0 %v7362_v46  ;;  %1690 = vmatmul.mubr.bf16.gmra.mrb[36].mxu1 %v7362_v46  ;;  %v6427_v46 = vld [vmem:[%s8504_s3 + $0x24] ss:$16 sps:$4 sm:$0xff]  }
 0x104   : > { %3212 = vmatprep.subr.bf16.mxu0 %v6427_v46 }
 0x105   : > { %3213 = vmatpush1.bf16.msra.mxu0 %v6425_v45  ;;  %3452 = vmatpush1.bf16.msra.mxu1 %v6434_v49  ;;  %v7608_v49 = vld [vmem:[%s8503_s2] ss:$0 sm:$0xff] }
 0x106   : > { %3214 = vmatprep.subr.bf16.mxu0 %v6433_v25  ;;  %3453 = vmatprep.subr.bf16.mxu1 %v6442_v51 }
 0x109   : > { %3215 = vmatpush1.bf16.msra.mxu0 %v6431_v56  ;;  %3454 = vmatpush1.bf16.msra.mxu1 %v6440_v53 }
 0x10a   : > { %3216 = vmatprep.subr.bf16.mxu0 %v6439_v50  ;;  %3455 = vmatprep.subr.bf16.mxu1 %v6448_v55 }
 0x10d   : > { %3217 = vmatpush1.bf16.msra.mxu0 %v6437_v52  ;;  %3456 = vmatpush1.bf16.msra.mxu1 %v6446_v60 }
 0x10e   : > { %3218 = vmatprep.subr.bf16.mxu0 %v6445_v54  ;;  %3457 = vmatprep.subr.bf16.mxu1 %v6454_v62 }
 0x111   : > { %3219 = vmatpush1.bf16.msra.mxu0 %v6443_v57  ;;  %3458 = vmatpush1.bf16.msra.mxu1 %v6452_v0 }
 0x112   : > { %3220 = vmatprep.subr.bf16.mxu0 %v6451_v61  ;;  %3459 = vmatprep.subr.bf16.mxu1 %v6460_v2 }
 0x115   : > { %3221 = vmatpush1.bf16.msra.mxu0 %v6449_v63  ;;  %3460 = vmatpush1.bf16.msra.mxu1 %v6458_v5 }
 0x116   : > { %3222 = vmatprep.subr.bf16.mxu0 %v6457_v1  ;;  %3461 = vmatprep.subr.bf16.mxu1 %v6466_v7 }
 0x119   : > { %3223 = vmatpush1.bf16.msra.mxu0 %v6455_v3  ;;  %3462 = vmatpush1.bf16.msra.mxu1 %v6464_v59 }
 0x11a   : > { %3224 = vmatprep.subr.bf16.mxu0 %v6463_v6  ;;  %3463 = vmatprep.subr.bf16.mxu1 %v6472_v11 }
 0x11d   : > { %3225 = vmatpush1.bf16.msra.mxu0 %v6461_v9  ;;  %3464 = vmatpush1.bf16.msra.mxu1 %v6470_v12 }
 0x11e   : > { %3226 = vmatprep.subr.bf16.mxu0 %v6469_v10  ;;  %3465 = vmatprep.subr.bf16.mxu1 %v6478_v14 }
 0x121   : > { %3227 = vmatpush1.bf16.msra.mxu0 %v6467_v16  ;;  %3466 = vmatpush1.bf16.msra.mxu1 %v6476_v17 }
 0x122   : > { %3228 = vmatprep.subr.bf16.mxu0 %v6475_v13  ;;  %3467 = vmatprep.subr.bf16.mxu1 %v6484_v20 }
 0x125   : > { %3229 = vmatpush1.bf16.msra.mxu0 %v6473_v15  ;;  %3468 = vmatpush1.bf16.msra.mxu1 %v6482_v22 }
 0x126   : > { %3230 = vmatprep.subr.bf16.mxu0 %v6481_v19  ;;  %3469 = vmatprep.subr.bf16.mxu1 %v6490_v24 }
 0x129   : > { %3231 = vmatpush1.bf16.msra.mxu0 %v6479_v21  ;;  %3470 = vmatpush1.bf16.msra.mxu1 %v6488_v27 }
 0x12a   : > { %3232 = vmatprep.subr.bf16.mxu0 %v6487_v23  ;;  %3471 = vmatprep.subr.bf16.mxu1 %v6496_v4 }
 0x12d   : > { %3233 = vmatpush1.bf16.msra.mxu0 %v6485_v26  ;;  %3472 = vmatpush1.bf16.msra.mxu1 %v6494_v30 }
 0x12e   : > { %3234 = vmatprep.subr.bf16.mxu0 %v6493_v28  ;;  %3473 = vmatprep.subr.bf16.mxu1 %v6502_v32 }
 0x131   : > { %3235 = vmatpush1.bf16.msra.mxu0 %v6491_v29  ;;  %3474 = vmatpush1.bf16.msra.mxu1 %v6500_v34 }
 0x132   : > { %3236 = vmatprep.subr.bf16.mxu0 %v6499_v31  ;;  %3475 = vmatprep.subr.bf16.mxu1 %v6508_v8 }
 0x135   : > { %3237 = vmatpush1.bf16.msra.mxu0 %v6497_v33  ;;  %3476 = vmatpush1.bf16.msra.mxu1 %v6506_v39 }
 0x136   : > { %3238 = vmatprep.subr.bf16.mxu0 %v6505_v35  ;;  %3477 = vmatprep.subr.bf16.mxu1 %v6514_v41 }
 0x139   : > { %3239 = vmatpush1.bf16.msra.mxu0 %v6503_v38  ;;  %3478 = vmatpush1.bf16.msra.mxu1 %v6512_v43 }
 0x13a   : > { %3240 = vmatprep.subr.bf16.mxu0 %v6511_v40  ;;  %3526 = vmatprep.subr.bf16.mxu1 %v6520_v58 }
 0x13d   : > { %3241 = vmatpush1.bf16.msra.mxu0 %v6509_v42 }
 0x13e   : > { %3289 = vmatprep.subr.bf16.mxu0 %v6517_v37 }
 0x176   : > { %v1408_v18 = vpop.f32.mrb[0].mxu0  ;;  %v1489_v36 = vpop.f32.mrb[0].mxu1 }
 0x177   : > { %v1410_v46 = vpop.f32.mrb[1].mxu0  ;;  %v1491_v45 = vpop.f32.mrb[1].mxu1 }
 0x178   : > { %v1699_v44 = vmax.f32 %v1408_v18, %v1410_v46  ;;  %v1412_v47 = vpop.f32.mrb[2].mxu0  ;;  %v1708_v25 = vmax.f32 %v1489_v36, %v1491_v45  ;;  %v1493_v48 = vpop.f32.mrb[2].mxu1 }
 0x179   : > { %v1414_v56 = vpop.f32.mrb[3].mxu0  ;;  %v1495_v51 = vpop.f32.mrb[3].mxu1 }
 0x17a   : > { %v1700_v50 = vmax.f32 %v1412_v47, %v1414_v56  ;;  %v1717_v52 = vmax.f32 %v1699_v44, %v1708_v25  ;;  %v1709_v53 = vmax.f32 %v1493_v48, %v1495_v51 }
 0x17c   : > { %v7611_v54 = vadd.f32 %v7608_v49, %v1717_v52  ;;  %v1718_v55 = vmax.f32 %v1700_v50, %v1709_v53 }
 0x17e   : > { %v1418_v57 = vpop.f32.mrb[4].mxu0  ;;  %v1750_v60 = vmin.f32 %v7611_v54, 0.0  ;;  %v7615_v61 = vadd.f32 %v7608_v49, %v1718_v55  ;;  %v1499_v62 = vpop.f32.mrb[4].mxu1  ;;  %vm1741_vm1 = vcmp.gt.f32.partialorder %v7611_v54, 0.0 }
 0x17f   : > { %v1420_v63 = vpop.f32.mrb[5].mxu0  ;;  %v1501_v1 = vpop.f32.mrb[5].mxu1 }
 0x180   : > { %v1701_v0 = vmax.f32 %v1418_v57, %v1420_v63  ;;  %v1422_v2 = vpop.f32.mrb[6].mxu0  ;;  %v1759_v3 = vmul.f32 1.442695, %v1750_v60  ;;  %v1751_v5 = vmin.f32 %v7615_v61, 0.0  ;;  %v1710_v6 = vmax.f32 %v1499_v62, %v1501_v1  ;;  %v1503_v7 = vpop.f32.mrb[6].mxu1 }
 0x181   : > { %v1424_v9 = vpop.f32.mrb[7].mxu0  ;;  %v1505_v10 = vpop.f32.mrb[7].mxu1  ;;  %vm1742_vm2 = vcmp.gt.f32.partialorder %v7615_v61, 0.0 }
 0x182   : > { %v1702_v59 = vmax.f32 %v1422_v2, %v1424_v9  ;;  %6931 = vpow2.f32 %v1759_v3  ;;  %v1761_v11 = vmul.f32 1.442695, %v1751_v5  ;;  %v1719_v16 = vmax.f32 %v1701_v0, %v1710_v6 }
 0x183   : > { %v1711_v12 = vmax.f32 %v1503_v7, %v1505_v10 }
 0x184   : > { %6933 = vpow2.f32 %v1761_v11  ;;  %v7619_v13 = vadd.f32 %v7608_v49, %v1719_v16 }
 0x185   : > { %v1720_v14 = vmax.f32 %v1702_v59, %v1711_v12 }
 0x186   : > { %v1428_v15 = vpop.f32.mrb[8].mxu0  ;;  %v1752_v17 = vmin.f32 %v7619_v13, 0.0  ;;  %v1509_v20 = vpop.f32.mrb[8].mxu1  ;;  %vm1743_vm3 = vcmp.gt.f32.partialorder %v7619_v13, 0.0 }
 0x187   : > { %v7623_v19 = vadd.f32 %v7608_v49, %v1720_v14  ;;  %v1430_v21 = vpop.f32.mrb[9].mxu0  ;;  %v1511_v23 = vpop.f32.mrb[9].mxu1 }
 0x188   : > { %v1703_v22 = vmax.f32 %v1428_v15, %v1430_v21  ;;  %v1432_v24 = vpop.f32.mrb[10].mxu0  ;;  %v1763_v26 = vmul.f32 1.442695, %v1752_v17  ;;  %v1712_v28 = vmax.f32 %v1509_v20, %v1511_v23  ;;  %v1513_v4 = vpop.f32.mrb[10].mxu1 }
 0x189   : > { %v1753_v27 = vmin.f32 %v7623_v19, 0.0  ;;  %v1434_v29 = vpop.f32.mrb[11].mxu0  ;;  %v1515_v31 = vpop.f32.mrb[11].mxu1  ;;  %vm1744_vm4 = vcmp.gt.f32.partialorder %v7623_v19, 0.0 }
 0x18a   : > { %v1704_v30 = vmax.f32 %v1432_v24, %v1434_v29  ;;  %6935 = vpow2.f32 %v1763_v26  ;;  %v1721_v33 = vmax.f32 %v1703_v22, %v1712_v28  ;;  %v1713_v34 = vmax.f32 %v1513_v4, %v1515_v31 }
 0x18b   : > { %v1765_v32 = vmul.f32 1.442695, %v1753_v27 }
 0x18c   : > { %v6932_v35 = vpop.eup %6931  ;;  %v7627_v8 = vadd.f32 %v7608_v49, %v1721_v33  ;;  %v1722_v38 = vmax.f32 %v1704_v30, %v1713_v34 }
 0x18d   : > { %6937 = vpow2.f32 %v1765_v32  ;;  %v5787_v39 = vadd.f32 -1.0, %v6932_v35 }
 0x18e   : > { %v1438_v40 = vpop.f32.mrb[12].mxu0  ;;  %v6934_v41 = vpop.eup %6933  ;;  %v1754_v42 = vmin.f32 %v7627_v8, 0.0  ;;  %v7631_v43 = vadd.f32 %v7608_v49, %v1722_v38  ;;  %vm1745_vm5 = vcmp.gt.f32.partialorder %v7627_v8, 0.0 }
 0x18f   : > { %v1519_v37 = vpop.f32.mrb[12].mxu1  ;;  %v1440_v58 = vpop.f32.mrb[13].mxu0  ;;  %v1786_v18 = vmul.f32 1.6732632, %v5787_v39  ;;  %v5788_v36 = vadd.f32 -1.0, %v6934_v41 }
 0x190   : > { %v1705_v46 = vmax.f32 %v1438_v40, %v1440_v58  ;;  %v1521_v44 = vpop.f32.mrb[13].mxu1  ;;  %v1442_v45 = vpop.f32.mrb[14].mxu0  ;;  %v1767_v47 = vmul.f32 1.442695, %v1754_v42  ;;  %v1755_v25 = vmin.f32 %v7631_v43, 0.0  ;;  %vm1746_vm6 = vcmp.gt.f32.partialorder %v7631_v43, 0.0 }
 0x191   : > { %v1714_v48 = vmax.f32 %v1519_v37, %v1521_v44  ;;  %v1523_v56 = vpop.f32.mrb[14].mxu1  ;;  %v1444_v50 = vpop.f32.mrb[15].mxu0  ;;  %v1795_v51 = vsel %vm1741_vm1, %v7611_v54, %v1786_v18  ;;  %v1787_v52 = vmul.f32 1.6732632, %v5788_v36 }
 0x192   : > { %v1706_v53 = vmax.f32 %v1442_v45, %v1444_v50  ;;  %v1525_v55 = vpop.f32.mrb[15].mxu1  ;;  %6939 = vpow2.f32 %v1767_v47  ;;  %v1769_v57 = vmul.f32 1.442695, %v1755_v25  ;;  %v1804_v1 = vmul.f32 1.050701, %v1795_v51 }
 0x193   : > { %v1723_v60 = vmax.f32 %v1705_v46, %v1714_v48  ;;  %v1796_v62 = vsel %vm1742_vm2, %v7615_v61, %v1787_v52  ;;  %v1715_v63 = vmax.f32 %v1523_v56, %v1525_v55 }
 0x194   : > { %v6936_v0 = vpop.eup %6935  ;;  %v1805_v2 = vmul.f32 1.050701, %v1796_v62  ;;  %6941 = vpow2.f32 %v1769_v57 }
 0x195   : > { %v1738_v3 = vadd.f32 %v7608_v49, %v1723_v60  ;;  %v5789_v5 = vadd.f32 -1.0, %v6936_v0  ;;  %v1724_v6 = vmax.f32 %v1706_v53, %v1715_v63 }
 0x196   : > { %v1448_v54 = vpop.f32.mrb[16].mxu0  ;;  %v7639_v9 = vpack.c.bf16 %v1805_v2, %v1804_v1  ;;  %v1529_v10 = vpop.f32.mrb[16].mxu1 }
 0x197   : > { %v6938_v7 = vpop.eup %6937  ;;  %v1756_v59 = vmin.f32 %v1738_v3, 0.0  ;;  %v1450_v11 = vpop.f32.mrb[17].mxu0  ;;  %v1788_v16 = vmul.f32 1.6732632, %v5789_v5  ;;  %v1739_v12 = vadd.f32 %v7608_v49, %v1724_v6  ;;  %vm1747_vm7 = vcmp.gt.f32.partialorder %v1738_v3, 0.0 }
 0x198   : > { %v5790_v61 = vadd.f32 -1.0, %v6938_v7  ;;  %v1707_v14 = vmax.f32 %v1448_v54, %v1450_v11  ;;  %v1531_v15 = vpop.f32.mrb[17].mxu1  ;;  %v1452_v17 = vpop.f32.mrb[18].mxu0 }
 0x199   : > { %v1771_v20 = vmul.f32 1.442695, %v1756_v59  ;;  %v1716_v21 = vmax.f32 %v1529_v10, %v1531_v15  ;;  %v1533_v22 = vpop.f32.mrb[18].mxu1  ;;  %v1453_v23 = vpop.f32.mrb[19].mxu0  ;;  %v1797_v24 = vsel %vm1743_vm3, %v7619_v13, %v1788_v16  ;;  %v1757_v27 = vmin.f32 %v1739_v12, 0.0 }
 0x19a   : > { %v1789_v26 = vmul.f32 1.6732632, %v5790_v61  ;;  %v1534_v28 = vpop.f32.mrb[19].mxu1  ;;  %v1806_v4 = vmul.f32 1.050701, %v1797_v24  ;;  %vm1748_vm8 = vcmp.gt.f32.partialorder %v1739_v12, 0.0 }
 0x19b   : > { %6943 = vpow2.f32 %v1771_v20  ;;  %v7645_v29 = vmax.f32 %v1707_v14, %v1716_v21  ;;  %v1773_v31 = vmul.f32 1.442695, %v1757_v27 }
 0x19c   : > { %v1798_v30 = vsel %vm1744_vm4, %v7623_v19, %v1789_v26  ;;  %v6940_v32 = vpop.eup %6939 }
 0x19d   : > { %v1807_v33 = vmul.f32 1.050701, %v1798_v30  ;;  %v5791_v34 = vadd.f32 -1.0, %v6940_v32  ;;  %6945 = vpow2.f32 %v1773_v31 }
 0x19e   : > { %v6942_v35 = vpop.eup %6941 }
 0x19f   : > { %v7648_v38 = vpack.c.bf16 %v1807_v33, %v1806_v4  ;;  %v1790_v13 = vmul.f32 1.6732632, %v5791_v34  ;;  %v5792_v39 = vadd.f32 -1.0, %v6942_v35 }
 0x1a1   : > { %v1799_v40 = vsel %vm1745_vm5, %v7627_v8, %v1790_v13  ;;  %v1791_v41 = vmul.f32 1.6732632, %v5792_v39 }
 0x1a2   : > { %v1808_v42 = vmul.f32 1.050701, %v1799_v40 }
 0x1a3   : > { %v1800_v19 = vsel %vm1746_vm6, %v7631_v43, %v1791_v41  ;;  %vm3820_vm6 = vcmask 1041409  }
 0x1a4   : > { %v1809_v58 = vmul.f32 1.050701, %v1800_v19 }
 0x1a5   : > { %v6944_v37 = vpop.eup %6943 }
 0x1a6   : > { %v5793_v18 = vadd.f32 -1.0, %v6944_v37  ;;  %v7654_v36 = vpack.c.bf16 %v1809_v58, %v1808_v42 }
 0x1a7   : > { %v6946_v46 = vpop.eup %6945 }
 0x1a8   : > { %v1792_v44 = vmul.f32 1.6732632, %v5793_v18  ;;  %v5794_v45 = vadd.f32 -1.0, %v6946_v46 }
 0x1aa   : > { %v1801_v47 = vsel %vm1747_vm7, %v1738_v3, %v1792_v44  ;;  %v1793_v25 = vmul.f32 1.6732632, %v5794_v45 }
 0x1ab   : > { %v1810_v48 = vmul.f32 1.050701, %v1801_v47 }
 0x1ac   : > { %v1802_v56 = vsel %vm1748_vm8, %v1739_v12, %v1793_v25 }
 0x1ad   : > { %v1811_v50 = vmul.f32 1.050701, %v1802_v56  ;;  %v7679_v56 = vadd.f32 %v7608_v49, %v7645_v29 }
 0x1af   : > { %v7656_v8 = vpack.c.bf16 %v1811_v50, %v1810_v48  ;;  %vm1749_vm3 = vcmp.gt.f32.partialorder %v7679_v56, 0.0 }
 0x1b6   : > { %v1570_v51 = vpop.f32.mrb[20].mxu0  ;;  %v1651_v52 = vpop.f32.mrb[20].mxu1 }
 0x1b7   : > { %v1572_v43 = vpop.f32.mrb[21].mxu0  ;;  %v1653_v55 = vpop.f32.mrb[21].mxu1 }
 0x1b8   : > { %v1818_v53 = vmax.f32 %v1570_v51, %v1572_v43  ;;  %v1574_v57 = vpop.f32.mrb[22].mxu0  ;;  %v1827_v60 = vmax.f32 %v1651_v52, %v1653_v55  ;;  %v1655_v62 = vpop.f32.mrb[22].mxu1 }
 0x1b9   : > { %v1576_v63 = vpop.f32.mrb[23].mxu0  ;;  %v1657_v1 = vpop.f32.mrb[23].mxu1 }
 0x1ba   : > { %v1819_v0 = vmax.f32 %v1574_v57, %v1576_v63  ;;  %v1836_v2 = vmax.f32 %v1818_v53, %v1827_v60  ;;  %v1828_v3 = vmax.f32 %v1655_v62, %v1657_v1 }
 0x1bc   : > { %v7659_v5 = vadd.f32 %v7608_v49, %v1836_v2  ;;  %v1837_v6 = vmax.f32 %v1819_v0, %v1828_v3 }
 0x1be   : > { %v1580_v54 = vpop.f32.mrb[24].mxu0  ;;  %v1863_v7 = vmin.f32 %v7659_v5, 0.0  ;;  %v7663_v59 = vadd.f32 %v7608_v49, %v1837_v6  ;;  %v1661_v10 = vpop.f32.mrb[24].mxu1  ;;  %vm1854_vm9 = vcmp.gt.f32.partialorder %v7659_v5, 0.0 }
 0x1bf   : > { %v1582_v11 = vpop.f32.mrb[25].mxu0  ;;  %v1663_v61 = vpop.f32.mrb[25].mxu1 }
 0x1c0   : > { %v1820_v16 = vmax.f32 %v1580_v54, %v1582_v11  ;;  %v1584_v12 = vpop.f32.mrb[26].mxu0  ;;  %v1872_v14 = vmul.f32 1.442695, %v1863_v7  ;;  %v1864_v15 = vmin.f32 %v7663_v59, 0.0  ;;  %v1829_v17 = vmax.f32 %v1661_v10, %v1663_v61  ;;  %v1665_v20 = vpop.f32.mrb[26].mxu1 }
 0x1c1   : > { %v1586_v21 = vpop.f32.mrb[27].mxu0  ;;  %v1667_v23 = vpop.f32.mrb[27].mxu1  ;;  %v1758_v7 = vmin.f32 %v7679_v56, 0.0  ;;  %vm1855_vm10 = vcmp.gt.f32.partialorder %v7663_v59, 0.0 }
 0x1c2   : > { %v1821_v22 = vmax.f32 %v1584_v12, %v1586_v21  ;;  %6947 = vpow2.f32 %v1872_v14  ;;  %v1874_v24 = vmul.f32 1.442695, %v1864_v15  ;;  %v1838_v26 = vmax.f32 %v1820_v16, %v1829_v17 }
 0x1c3   : > { %v1830_v27 = vmax.f32 %v1665_v20, %v1667_v23 }
 0x1c4   : > { %6949 = vpow2.f32 %v1874_v24  ;;  %v7667_v28 = vadd.f32 %v7608_v49, %v1838_v26  ;;  %v6518_v24 = vld [vmem:[%s8504_s3 + $0x208] ss:$16 sps:$4 sm:$0xff]  }
 0x1c5   : > { %v1839_v4 = vmax.f32 %v1821_v22, %v1830_v27 }
 0x1c6   : > { %v1590_v30 = vpop.f32.mrb[28].mxu0  ;;  %v1865_v31 = vmin.f32 %v7667_v28, 0.0  ;;  %v1671_v33 = vpop.f32.mrb[28].mxu1  ;;  %vm1856_vm11 = vcmp.gt.f32.partialorder %v7667_v28, 0.0 }
 0x1c7   : > { %v7671_v32 = vadd.f32 %v7608_v49, %v1839_v4  ;;  %v1592_v34 = vpop.f32.mrb[29].mxu0  ;;  %v1673_v13 = vpop.f32.mrb[29].mxu1 }
 0x1c8   : > { %v1822_v35 = vmax.f32 %v1590_v30, %v1592_v34  ;;  %v1594_v39 = vpop.f32.mrb[30].mxu0  ;;  %v1876_v40 = vmul.f32 1.442695, %v1865_v31  ;;  %v1831_v42 = vmax.f32 %v1671_v33, %v1673_v13  ;;  %v1675_v19 = vpop.f32.mrb[30].mxu1  ;;  %v6526_v30 = vld [vmem:[%s8504_s3 + $0x22c] ss:$16 sps:$4 sm:$0xff]  }
 0x1c9   : > { %v1866_v41 = vmin.f32 %v7671_v32, 0.0  ;;  %v1596_v37 = vpop.f32.mrb[31].mxu0  ;;  %v1677_v18 = vpop.f32.mrb[31].mxu1  ;;  %v1775_v33 = vmul.f32 1.442695, %v1758_v7  ;;  %vm1857_vm12 = vcmp.gt.f32.partialorder %v7671_v32, 0.0 }
 0x1ca   : > { %v1823_v58 = vmax.f32 %v1594_v39, %v1596_v37  ;;  %6951 = vpow2.f32 %v1876_v40  ;;  %v1840_v44 = vmax.f32 %v1822_v35, %v1831_v42  ;;  %v1832_v45 = vmax.f32 %v1675_v19, %v1677_v18 }
 0x1cb   : > { %v1878_v46 = vmul.f32 1.442695, %v1866_v41 }
 0x1cc   : > { %v6948_v47 = vpop.eup %6947  ;;  %v7675_v25 = vadd.f32 %v7608_v49, %v1840_v44  ;;  %v1841_v48 = vmax.f32 %v1823_v58, %v1832_v45 }
 0x1cd   : > { %6953 = vpow2.f32 %v1878_v46  ;;  %v5796_v50 = vadd.f32 -1.0, %v6948_v47 }
 0x1ce   : > { %v1600_v51 = vpop.f32.mrb[32].mxu0  ;;  %v6950_v52 = vpop.eup %6949  ;;  %v1867_v43 = vmin.f32 %v7675_v25, 0.0  ;;  %v7683_v53 = vadd.f32 %v7608_v49, %v1841_v48  ;;  %vm1858_vm13 = vcmp.gt.f32.partialorder %v7675_v25, 0.0 }
 0x1cf   : > { %v1681_v55 = vpop.f32.mrb[32].mxu1  ;;  %v1602_v57 = vpop.f32.mrb[33].mxu0  ;;  %v1899_v60 = vmul.f32 1.6732632, %v5796_v50  ;;  %v5797_v62 = vadd.f32 -1.0, %v6950_v52 }
 0x1d0   : > { %v1824_v63 = vmax.f32 %v1600_v51, %v1602_v57  ;;  %v1683_v0 = vpop.f32.mrb[33].mxu1  ;;  %v1604_v1 = vpop.f32.mrb[34].mxu0  ;;  %v1880_v2 = vmul.f32 1.442695, %v1867_v43  ;;  %v1868_v29 = vmin.f32 %v7683_v53, 0.0  ;;  %vm1859_vm14 = vcmp.gt.f32.partialorder %v7683_v53, 0.0 }
 0x1d1   : > { %v1833_v3 = vmax.f32 %v1681_v55, %v1683_v0  ;;  %v1685_v6 = vpop.f32.mrb[34].mxu1  ;;  %v1606_v54 = vpop.f32.mrb[35].mxu0  ;;  %v1908_v10 = vsel %vm1854_vm9, %v7659_v5, %v1899_v60  ;;  %v1900_v11 = vmul.f32 1.6732632, %v5797_v62  ;;  %v6515_v5 = vld [vmem:[%s8504_s3 + $0x200] ss:$16 sps:$4 sm:$0xff]  }
 0x1d2   : > { %v1825_v16 = vmax.f32 %v1604_v1, %v1606_v54  ;;  %v1687_v61 = vpop.f32.mrb[35].mxu1  ;;  %6955 = vpow2.f32 %v1880_v2  ;;  %v1882_v12 = vmul.f32 1.442695, %v1868_v29  ;;  %v1917_v21 = vmul.f32 1.050701, %v1908_v10 }
 0x1d3   : > { %v1842_v14 = vmax.f32 %v1824_v63, %v1833_v3  ;;  %v1909_v15 = vsel %vm1855_vm10, %v7663_v59, %v1900_v11  ;;  %v1834_v17 = vmax.f32 %v1685_v6, %v1687_v61  ;;  %v6523_v59 = vld [vmem:[%s8504_s3 + $0x224] ss:$16 sps:$4 sm:$0xff]   ;;  %v6521_v57 = vld [vmem:[%s8504_s3 + $0x220] ss:$16 sps:$4 sm:$0xff]   ;;  %v6532_v0 = vld [vmem:[%s8504_s3 + $0x24c] ss:$16 sps:$4 sm:$0xff]  }
 0x1d4   : > { %v6952_v20 = vpop.eup %6951  ;;  %v1918_v22 = vmul.f32 1.050701, %v1909_v15  ;;  %6957 = vpow2.f32 %v1882_v12  ;;  %v6529_v63 = vld [vmem:[%s8504_s3 + $0x244] ss:$16 sps:$4 sm:$0xff]   ;;  %v6530_v6 = vld [vmem:[%s8504_s3 + $0x248] ss:$16 sps:$4 sm:$0xff]  }
 0x1d5   : > { %v7692_v23 = vadd.f32 %v7608_v49, %v1842_v14  ;;  %v5798_v26 = vadd.f32 -1.0, %v6952_v20  ;;  %v1843_v27 = vmax.f32 %v1825_v16, %v1834_v17  ;;  %v6538_v16 = vld [vmem:[%s8504_s3 + $0x26c] ss:$16 sps:$4 sm:$0xff]   ;;  %vm3823_vm9 = vcmask 1042434  }
 0x1d6   : > { %v1610_v4 = vpop.f32.mrb[36].mxu0  ;;  %v7706_v34 = vpack.c.bf16 %v1918_v22, %v1917_v21  ;;  %v1691_v13 = vpop.f32.mrb[36].mxu1  ;;  %vm3826_vm10 = vcmask 1043459  }
 0x1d7   : > { %v6954_v31 = vpop.eup %6953  ;;  %v1869_v35 = vmin.f32 %v7692_v23, 0.0  ;;  %v1612_v39 = vpop.f32.mrb[37].mxu0  ;;  %v1901_v40 = vmul.f32 1.6732632, %v5798_v26  ;;  %v7711_v42 = vadd.f32 %v7608_v49, %v1843_v27  ;;  %vm1860_vm1 = vcmp.gt.f32.partialorder %v7692_v23, 0.0 }
 0x1d8   : > { %v5799_v41 = vadd.f32 -1.0, %v6954_v31  ;;  %v1826_v19 = vmax.f32 %v1610_v4, %v1612_v39  ;;  %v1693_v37 = vpop.f32.mrb[37].mxu1  ;;  %v1614_v58 = vpop.f32.mrb[38].mxu0  ;;  %3242 = vmatprep.mubr.bf16.mxu0 %v7706_v34  ;;  %3479 = vmatprep.mubr.bf16.mxu1 %v7706_v34  ;;  %v1946_v52 = vshll.u32 %v7706_v34, 16  ;;  %v1944_v14 = vshrl.u32 %v7706_v34, 16 }
 0x1d9   : > { %v1884_v18 = vmul.f32 1.442695, %v1869_v35  ;;  %v1835_v46 = vmax.f32 %v1691_v13, %v1693_v37  ;;  %v1695_v44 = vpop.f32.mrb[38].mxu1  ;;  %v1615_v45 = vpop.f32.mrb[39].mxu0  ;;  %v1910_v47 = vsel %vm1856_vm11, %v7667_v28, %v1901_v40  ;;  %v1870_v50 = vmin.f32 %v7711_v42, 0.0  ;;  %3243 = vmatmul.mubr.bf16.vlgmr.msra.gmra.mrb[40].mxu0 %v7639_v9  ;;  %3480 = vmatmul.mubr.bf16.vlgmr.msra.gmra.mrb[40].mxu1 %v7639_v9 }
 0x1da   : > { %v1902_v48 = vmul.f32 1.6732632, %v5799_v41  ;;  %v1696_v51 = vpop.f32.mrb[39].mxu1  ;;  %v1919_v43 = vmul.f32 1.050701, %v1910_v47  ;;  %3290 = vmatpush1.bf16.msra.mxu0 %v6515_v5  ;;  %3527 = vmatpush1.bf16.msra.mxu1 %v6518_v24  ;;  %v1948_v54 = vrot.slane %v1946_v52, 1 }
 0x1db   : > { %6959 = vpow2.f32 %v1884_v18  ;;  %v1844_v55 = vmax.f32 %v1826_v19, %v1835_v46  ;;  %v6524_v28 = vld [vmem:[%s8504_s3 + $0x228] ss:$16 sps:$4 sm:$0xff]   ;;  %v1886_v62 = vmul.f32 1.442695, %v1870_v50  ;;  %3291 = vmatprep.subr.bf16.mxu0 %v6523_v59  ;;  %3528 = vmatprep.subr.bf16.mxu1 %v6526_v30  ;;  %v2033_v20 = vrot.slane %v7706_v34, 1 }
 0x1dc   : > { %v1911_v60 = vsel %vm1857_vm12, %v7671_v32, %v1902_v48  ;;  %v6956_v1 = vpop.eup %6955  ;;  %6961 = vpow2.f32 %v1775_v33  ;;  %v6527_v32 = vld [vmem:[%s8504_s3 + $0x240] ss:$16 sps:$4 sm:$0xff]   ;;  %v1949_v26 = vor.u32 %v1948_v54, %v1944_v14  ;;  %v6536_v4 = vld [vmem:[%s8504_s3 + $0x268] ss:$16 sps:$4 sm:$0xff]   ;;  %v6541_v31 = vld [vmem:[%s8504_s3 + $0x284] ss:$16 sps:$4 sm:$0xff]  }
 0x1dd   : > { %v1920_v2 = vmul.f32 1.050701, %v1911_v60  ;;  %v7739_v29 = vadd.f32 %v7608_v49, %v1844_v55  ;;  %v5800_v3 = vadd.f32 -1.0, %v6956_v1  ;;  %6963 = vpow2.f32 %v1886_v62  ;;  %v6535_v49 = vld [vmem:[%s8504_s3 + $0x264] ss:$16 sps:$4 sm:$0xff]  }
 0x1de   : > { %v6958_v7 = vpop.eup %6957  ;;  %3292 = vmatpush1.bf16.msra.mxu0 %v6521_v57  ;;  %3529 = vmatpush1.bf16.msra.mxu1 %v6524_v28  ;;  %v6533_v24 = vld [vmem:[%s8504_s3 + $0x260] ss:$16 sps:$4 sm:$0xff]   ;;  %v6544_v33 = vld [vmem:[%s8504_s3 + $0x28c] ss:$16 sps:$4 sm:$0xff]   ;;  %v6542_v19 = vld [vmem:[%s8504_s3 + $0x288] ss:$16 sps:$4 sm:$0xff]  }
 0x1df   : > { %v7747_v10 = vpack.c.bf16 %v1920_v2, %v1919_v43  ;;  %v1871_v11 = vmin.f32 %v7739_v29, 0.0  ;;  %v1903_v61 = vmul.f32 1.6732632, %v5800_v3  ;;  %v5801_v12 = vadd.f32 -1.0, %v6958_v7  ;;  %3293 = vmatprep.subr.bf16.mxu0 %v6529_v63  ;;  %3530 = vmatprep.subr.bf16.mxu1 %v6532_v0  ;;  %v6547_v46 = vld [vmem:[%s8504_s3 + $0x2a4] ss:$16 sps:$4 sm:$0xff]  }
 0x1e0   : > { %v6550_v44 = vld [vmem:[%s8504_s3 + $0x2ac] ss:$16 sps:$4 sm:$0xff]   ;;  %vm1861_vm2 = vcmp.gt.f32.partialorder %v7711_v42, 0.0  ;;  %v6545_v52 = vld [vmem:[%s8504_s3 + $0x2a0] ss:$16 sps:$4 sm:$0xff]   ;;  %vm1862_vm4 = vcmp.gt.f32.partialorder %v7739_v29, 0.0 }
 0x1e1   : > { %v1888_v15 = vmul.f32 1.442695, %v1871_v11  ;;  %3252 = vmatprep.mubr.bf16.mxu0 %v7747_v10  ;;  %3489 = vmatprep.mubr.bf16.mxu1 %v7747_v10  ;;  %v1951_v17 = vshll.u32 %v7747_v10, 16  ;;  %v2034_v21 = vrot.slane %v7747_v10, 1  ;;  %v1912_v22 = vsel %vm1858_vm13, %v7675_v25, %v1903_v61  ;;  %v6548_v55 = vld [vmem:[%s8504_s3 + $0x2a8] ss:$16 sps:$4 sm:$0xff]  }
 0x1e2   : > { %v1904_v5 = vmul.f32 1.6732632, %v5801_v12  ;;  %3253 = vmatmul.mubr.bf16.gmra.mrb[44].mxu0 %v7648_v38  ;;  %3490 = vmatmul.mubr.bf16.gmra.mrb[44].mxu1 %v7648_v38  ;;  %v1921_v27 = vmul.f32 1.050701, %v1912_v22  ;;  %v1963_v37 = vshrl.u32 %v7747_v10, 16  ;;  %vm3829_vm13 = vcmask 1044484  }
 0x1e3   : > { %6965 = vpow2.f32 %v1888_v15  ;;  %3294 = vmatpush1.bf16.msra.mxu0 %v6527_v32  ;;  %3531 = vmatpush1.bf16.msra.mxu1 %v6530_v6  ;;  %v1953_v25 = vrot.slane %v1951_v17, 1  ;;  %v7776_v59 = vsel %vm2029_vm15, %v2033_v20, %v2034_v21  ;;  %v6553_v62 = vld [vmem:[%s8504_s3 + $0x2c4] ss:$16 sps:$4 sm:$0xff]   ;;  %v6556_v63 = vld [vmem:[%s8504_s3 + $0x2cc] ss:$16 sps:$4 sm:$0xff]  }
 0x1e4   : > { %v1913_v30 = vsel %vm1859_vm14, %v7683_v53, %v1904_v5  ;;  %3295 = vmatprep.subr.bf16.mxu0 %v6535_v49  ;;  %3532 = vmatprep.subr.bf16.mxu1 %v6538_v16  ;;  %v6539_v53 = vld [vmem:[%s8504_s3 + $0x280] ss:$16 sps:$4 sm:$0xff]   ;;  %v6559_v49 = vld [vmem:[%s8504_s3 + $0x2e4] ss:$16 sps:$4 sm:$0xff]   ;;  %v6562_v16 = vld [vmem:[%s8504_s3 + $0x2ec] ss:$16 sps:$4 sm:$0xff]  }
 0x1e5   : > { %v6960_v34 = vpop.eup %6959  ;;  %v1922_v35 = vmul.f32 1.050701, %v1913_v30  ;;  %v7788_v13 = vsel %vm561_vm0, %v1949_v26, %v1953_v25  ;;  %v1965_v57 = vor.u32 %v1963_v37, %v1953_v25  ;;  %v6551_v54 = vld [vmem:[%s8504_s3 + $0x2c0] ss:$16 sps:$4 sm:$0xff]   ;;  %vm3832_vm14 = vcmask 1045509  }
 0x1e6   : > { %v5802_v39 = vadd.f32 -1.0, %v6960_v34  ;;  %v6962_v40 = vpop.eup %6961  ;;  %v6557_v20 = vld [vmem:[%s8504_s3 + $0x2e0] ss:$16 sps:$4 sm:$0xff]   ;;  %v6566_v34 = vld [vmem:[%s8504_s3 + $0x308] ss:$16 sps:$4 sm:$0xff]  }
 0x1e7   : > { %v7790_v41 = vpack.c.bf16 %v1922_v35, %v1921_v27  ;;  %3296 = vmatpush1.bf16.msra.mxu0 %v6533_v24  ;;  %3533 = vmatpush1.bf16.msra.mxu1 %v6536_v4  ;;  %v6964_v58 = vpop.eup %6963  ;;  %v5795_v50 = vadd.f32 -1.0, %v6962_v40  ;;  %v6568_v27 = vld [vmem:[%s8504_s3 + $0x30c] ss:$16 sps:$4 sm:$0xff]  }
 0x1e8   : > { %v1905_v18 = vmul.f32 1.6732632, %v5802_v39  ;;  %3297 = vmatprep.subr.bf16.mxu0 %v6541_v31  ;;  %3534 = vmatprep.subr.bf16.mxu1 %v6544_v33  ;;  %v5803_v45 = vadd.f32 -1.0, %v6964_v58  ;;  %v6563_v33 = vld [vmem:[%s8504_s3 + $0x300] ss:$16 sps:$4 sm:$0xff]  }
 0x1e9   : > { %3262 = vmatprep.mubr.bf16.mxu0 %v7790_v41  ;;  %3499 = vmatprep.mubr.bf16.mxu1 %v7790_v41  ;;  %v1967_v47 = vshll.u32 %v7790_v41, 16  ;;  %v2038_v48 = vrot.slane %v7790_v41, 1  ;;  %v1794_v3 = vmul.f32 1.6732632, %v5795_v50  ;;  %v1979_v11 = vshrl.u32 %v7790_v41, 16 }
 0x1ea   : > { %v1914_v51 = vsel %vm1860_vm1, %v7692_v23, %v1905_v18  ;;  %3263 = vmatmul.mubr.bf16.gmra.mrb[48].mxu0 %v7654_v36  ;;  %3500 = vmatmul.mubr.bf16.gmra.mrb[48].mxu1 %v7654_v36  ;;  %v1906_v43 = vmul.f32 1.6732632, %v5803_v45  ;;  %v6569_v58 = vld [vmem:[%s8504_s3 + $0x320] ss:$16 sps:$4 sm:$0xff]   ;;  %v6572_v18 = vld [vmem:[%s8504_s3 + $0x328] ss:$16 sps:$4 sm:$0xff]  }
 0x1eb   : > { %3298 = vmatpush1.bf16.msra.mxu0 %v6539_v53  ;;  %3535 = vmatpush1.bf16.msra.mxu1 %v6542_v19  ;;  %v1969_v28 = vrot.slane %v1967_v47, 1  ;;  %v7823_v23 = vsel %vm2029_vm15, %v2034_v21, %v2038_v48  ;;  %v1923_v60 = vmul.f32 1.050701, %v1914_v51  ;;  %v1803_v61 = vsel %vm1749_vm3, %v7679_v56, %v1794_v3  ;;  %v6560_v56 = vld [vmem:[%s8504_s3 + $0x2e8] ss:$16 sps:$4 sm:$0xff]  }
 0x1ec   : > { %3299 = vmatprep.subr.bf16.mxu0 %v6547_v46  ;;  %3536 = vmatprep.subr.bf16.mxu1 %v6550_v44  ;;  %v1915_v1 = vsel %vm1861_vm2, %v7711_v42, %v1906_v43  ;;  %v6554_v42 = vld [vmem:[%s8504_s3 + $0x2c8] ss:$16 sps:$4 sm:$0xff]   ;;  %v1812_v24 = vmul.f32 1.050701, %v1803_v61  ;;  %v6571_v53 = vld [vmem:[%s8504_s3 + $0x324] ss:$16 sps:$4 sm:$0xff]  }
 0x1ed   : > { %v6966_v0 = vpop.eup %6965  ;;  %v7835_v2 = vsel %vm561_vm0, %v1965_v57, %v1969_v28  ;;  %v1924_v32 = vmul.f32 1.050701, %v1915_v1  ;;  %v1981_v21 = vor.u32 %v1979_v11, %v1969_v28  ;;  %v6574_v19 = vld [vmem:[%s8504_s3 + $0x32c] ss:$16 sps:$4 sm:$0xff]   ;;  %v6577_v46 = vld [vmem:[%s8504_s3 + $0x344] ss:$16 sps:$4 sm:$0xff]  }
 0x1ee   : > { %v5804_v6 = vadd.f32 -1.0, %v6966_v0  ;;  %v7888_v35 = vpack.c.bf16 %v1812_v24, %v1812_v24  ;;  %v6580_v44 = vld [vmem:[%s8504_s3 + $0x34c] ss:$16 sps:$4 sm:$0xff]   ;;  %v6575_v45 = vld [vmem:[%s8504_s3 + $0x340] ss:$16 sps:$4 sm:$0xff]   ;;  %vm3835_vm2 = vcmask 1046534  }
 0x1ef   : > { %3300 = vmatpush1.bf16.msra.mxu0 %v6545_v52  ;;  %3537 = vmatpush1.bf16.msra.mxu1 %v6548_v55  ;;  %v1929_v7 = vpack.c.bf16 %v1924_v32, %v1923_v60  ;;  %v6583_v47 = vld [vmem:[%s8504_s3 + $0x364] ss:$16 sps:$4 sm:$0xff]   ;;  %v6581_v50 = vld [vmem:[%s8504_s3 + $0x360] ss:$16 sps:$4 sm:$0xff]   ;;  %v6584_v51 = vld [vmem:[%s8504_s3 + $0x368] ss:$16 sps:$4 sm:$0xff]  }
 0x1f0   : > { %v1907_v10 = vmul.f32 1.6732632, %v5804_v6  ;;  %3301 = vmatprep.subr.bf16.mxu0 %v6553_v62  ;;  %3538 = vmatprep.subr.bf16.mxu1 %v6556_v63  ;;  %v6589_v52 = vld [vmem:[%s8504_s3 + $0x384] ss:$16 sps:$4 sm:$0xff]   ;;  %v6592_v43 = vld [vmem:[%s8504_s3 + $0x38c] ss:$16 sps:$4 sm:$0xff]  }
 0x1f1   : > { %3272 = vmatprep.mubr.bf16.mxu0 %v1929_v7  ;;  %3509 = vmatprep.mubr.bf16.mxu1 %v1929_v7  ;;  %v1983_v14 = vshll.u32 %v1929_v7, 16  ;;  %v2042_v15 = vrot.slane %v1929_v7, 1  ;;  %v1995_v4 = vshrl.u32 %v1929_v7, 16  ;;  %v6587_v55 = vld [vmem:[%s8504_s3 + $0x380] ss:$16 sps:$4 sm:$0xff]   ;;  %v1934_v6 = vshll.u32 %v7639_v9, 16 }
 0x1f2   : > { %v1916_v12 = vsel %vm1862_vm4, %v7739_v29, %v1907_v10  ;;  %3273 = vmatmul.mubr.bf16.gmra.mrb[52].mxu0 %v7656_v8  ;;  %3510 = vmatmul.mubr.bf16.gmra.mrb[52].mxu1 %v7656_v8  ;;  %v6565_v29 = vld [vmem:[%s8504_s3 + $0x304] ss:$16 sps:$4 sm:$0xff]   ;;  %v6590_v57 = vld [vmem:[%s8504_s3 + $0x388] ss:$16 sps:$4 sm:$0xff]   ;;  %v6598_v60 = vld [vmem:[%s8504_s3 + $0x3ac] ss:$16 sps:$4 sm:$0xff]  }
 0x1f3   : > { %v1925_v17 = vmul.f32 1.050701, %v1916_v12  ;;  %3302 = vmatpush1.bf16.msra.mxu0 %v6551_v54  ;;  %3539 = vmatpush1.bf16.msra.mxu1 %v6554_v42  ;;  %v1985_v22 = vrot.slane %v1983_v14, 1  ;;  %v7866_v5 = vsel %vm2029_vm15, %v2038_v48, %v2042_v15  ;;  %v6586_v48 = vld [vmem:[%s8504_s3 + $0x36c] ss:$16 sps:$4 sm:$0xff]   ;;  %v1939_v10 = vshll.u32 %v7648_v38, 16 }
 0x1f4   : > { %3303 = vmatprep.subr.bf16.mxu0 %v6559_v49  ;;  %3540 = vmatprep.subr.bf16.mxu1 %v6562_v16  ;;  %v6595_v28 = vld [vmem:[%s8504_s3 + $0x3a4] ss:$16 sps:$4 sm:$0xff]   ;;  %v6593_v62 = vld [vmem:[%s8504_s3 + $0x3a0] ss:$16 sps:$4 sm:$0xff]   ;;  %v6596_v63 = vld [vmem:[%s8504_s3 + $0x3a8] ss:$16 sps:$4 sm:$0xff]  }
 0x1f5   : > { %v7868_v26 = vpack.c.bf16 %v1925_v17, %v1925_v17  ;;  %v7874_v25 = vsel %vm561_vm0, %v1981_v21, %v1985_v22  ;;  %v1997_v39 = vor.u32 %v1995_v4, %v1985_v22  ;;  %v6601_v0 = vld [vmem:[%s8504_s3 + $0x3c4] ss:$16 sps:$4 sm:$0xff]   ;;  %v6604_v1 = vld [vmem:[%s8504_s3 + $0x3cc] ss:$16 sps:$4 sm:$0xff]   ;;  %v6599_v3 = vld [vmem:[%s8504_s3 + $0x3c0] ss:$16 sps:$4 sm:$0xff]  }
 0x1f6   : > { %v6602_v32 = vld [vmem:[%s8504_s3 + $0x3c8] ss:$16 sps:$4 sm:$0xff]   ;;  %v6607_v54 = vld [vmem:[%s8504_s3 + $0x3e4] ss:$16 sps:$4 sm:$0xff]   ;;  %v6610_v7 = vld [vmem:[%s8504_s3 + $0x3ec] ss:$16 sps:$4 sm:$0xff]  }
 0x1f7   : > { %3282 = vmatprep.mubr.bf16.mxu0 %v7868_v26  ;;  %3519 = vmatprep.mubr.bf16.mxu1 %v7868_v26  ;;  %v1999_v30 = vshll.u32 %v7868_v26, 16  ;;  %v7880_v31 = vrot.slane %v7868_v26, 1  ;;  %v6605_v42 = vld [vmem:[%s8504_s3 + $0x3e0] ss:$16 sps:$4 sm:$0xff]   ;;  %v6608_v11 = vld [vmem:[%s8504_s3 + $0x3e8] ss:$16 sps:$4 sm:$0xff]  }
 0x1f8   : > { %3304 = vmatpush1.bf16.msra.mxu0 %v6557_v20  ;;  %3541 = vmatpush1.bf16.msra.mxu1 %v6560_v56  ;;  %v1936_v49 = vrot.slane %v1934_v6, 1  ;;  %v6613_v16 = vld [vmem:[%s8504_s3 + $0x404] ss:$16 sps:$4 sm:$0xff]   ;;  %v6616_v61 = vld [vmem:[%s8504_s3 + $0x40c] ss:$16 sps:$4 sm:$0xff]   ;;  %v1932_v12 = vshrl.u32 %v7639_v9, 16 }
 0x1f9   : > { %3305 = vmatprep.subr.bf16.mxu0 %v6565_v29  ;;  %3542 = vmatprep.subr.bf16.mxu1 %v6568_v27  ;;  %v7890_v40 = vrot.slane %v1999_v30, 1  ;;  %v7894_v41 = vsel %vm2029_vm15, %v2042_v15, %v7880_v31  ;;  %v1941_v14 = vrot.slane %v1939_v10, 1  ;;  %v6611_v17 = vld [vmem:[%s8504_s3 + $0x400] ss:$16 sps:$4 sm:$0xff]   ;;  %v6614_v20 = vld [vmem:[%s8504_s3 + $0x408] ss:$16 sps:$4 sm:$0xff]  }
 0x1fa   : > { %3283 = vmatmul.mubr.bf16.gmra.mrb[56].mxu0 %v7888_v35  ;;  %3520 = vmatmul.mubr.bf16.gmra.mrb[56].mxu1 %v7888_v35  ;;  %v1937_v15 = vor.u32 %v1936_v49, %v1932_v12  ;;  %v6619_v29 = vld [vmem:[%s8504_s3 + $0x424] ss:$16 sps:$4 sm:$0xff]   ;;  %v6622_v21 = vld [vmem:[%s8504_s3 + $0x42c] ss:$16 sps:$4 sm:$0xff]   ;;  %v1959_v22 = vshll.u32 %v7654_v36, 16  ;;  %v1955_v27 = vshrl.u32 %v7648_v38, 16 }
 0x1fb   : > { %v7906_v37 = vsel %vm561_vm0, %v1997_v39, %v7890_v40  ;;  %3321 = vmatprep.mubr.bf16.mxu0 %v7788_v13  ;;  %3558 = vmatprep.mubr.bf16.mxu1 %v7788_v13  ;;  %v6578_v13 = vld [vmem:[%s8504_s3 + $0x348] ss:$16 sps:$4 sm:$0xff]   ;;  %v6617_v24 = vld [vmem:[%s8504_s3 + $0x420] ss:$16 sps:$4 sm:$0xff]   ;;  %v6625_v30 = vld [vmem:[%s8504_s3 + $0x444] ss:$16 sps:$4 sm:$0xff]  }
 0x1fc   : > { %3306 = vmatpush1.bf16.msra.mxu0 %v6563_v33  ;;  %3543 = vmatpush1.bf16.msra.mxu1 %v6566_v34  ;;  %v1942_v56 = vsel %vm561_vm0, %v1937_v15, %v1941_v14  ;;  %v6620_v4 = vld [vmem:[%s8504_s3 + $0x428] ss:$16 sps:$4 sm:$0xff]   ;;  %v1961_v33 = vrot.slane %v1959_v22, 1  ;;  %v6628_v34 = vld [vmem:[%s8504_s3 + $0x44c] ss:$16 sps:$4 sm:$0xff]   ;;  %v1957_v39 = vor.u32 %v1955_v27, %v1941_v14  ;;  %v2003_v49 = vshrl.u32 %v7888_v35, 16 }
 0x1fd   : > { %3307 = vmatprep.subr.bf16.mxu0 %v6571_v53  ;;  %3544 = vmatprep.subr.bf16.mxu1 %v6574_v19  ;;  %v6626_v53 = vld [vmem:[%s8504_s3 + $0x448] ss:$16 sps:$4 sm:$0xff]   ;;  %v6647_v6 = vld [vmem:[%s8504_s3 + $0x4c0] ss:$16 sps:$4 sm:$0xff]   ;;  %v6676_v22 = vld [vmem:[%s8504_s3 + $0x54c] ss:$16 sps:$4 sm:$0xff]  }
 0x1fe   : > { %v1962_v19 = vsel %vm561_vm0, %v1957_v39, %v1961_v33  ;;  %v6659_v12 = vld [vmem:[%s8504_s3 + $0x500] ss:$16 sps:$4 sm:$0xff]   ;;  %v6662_v15 = vld [vmem:[%s8504_s3 + $0x508] ss:$16 sps:$4 sm:$0xff]   ;;  %v6679_v27 = vld [vmem:[%s8504_s3 + $0x564] ss:$16 sps:$4 sm:$0xff]  }
 0x1ff   : > { %v6688_v39 = vld [vmem:[%s8504_s3 + $0x58c] ss:$16 sps:$4 sm:$0xff]   ;;  %vm3838_vm3 = vcmask 1047559   ;;  %vm7131_vm4 = vmmov 0  }
 0x200   : > { %3308 = vmatpush1.bf16.msra.mxu0 %v6569_v58  ;;  %3545 = vmatpush1.bf16.msra.mxu1 %v6572_v18  ;;  %v6631_v58 = vld [vmem:[%s8504_s3 + $0x464] ss:$16 sps:$4 sm:$0xff]   ;;  %v6634_v18 = vld [vmem:[%s8504_s3 + $0x46c] ss:$16 sps:$4 sm:$0xff]  }
 0x201   : > { %3309 = vmatprep.subr.bf16.mxu0 %v6577_v46  ;;  %3546 = vmatprep.subr.bf16.mxu1 %v6580_v44  ;;  %v1975_v46 = vshll.u32 %v7656_v8, 16  ;;  %v6629_v44 = vld [vmem:[%s8504_s3 + $0x460] ss:$16 sps:$4 sm:$0xff]  }
 0x204   : > { %3310 = vmatpush1.bf16.msra.mxu0 %v6575_v45  ;;  %3547 = vmatpush1.bf16.msra.mxu1 %v6578_v13  ;;  %v1971_v45 = vshrl.u32 %v7654_v36, 16  ;;  %v6632_v13 = vld [vmem:[%s8504_s3 + $0x468] ss:$16 sps:$4 sm:$0xff]  }
 0x205   : > { %3311 = vmatprep.subr.bf16.mxu0 %v6583_v47  ;;  %3548 = vmatprep.subr.bf16.mxu1 %v6586_v48  ;;  %v6637_v47 = vld [vmem:[%s8504_s3 + $0x484] ss:$16 sps:$4 sm:$0xff]   ;;  %v1977_v48 = vrot.slane %v1975_v46, 1  ;;  %v6692_v46 = vld [vmem:[%s8504_s3 + $0x5a8] ss:$16 sps:$4 sm:$0xff]  }
 0x208   : > { %3312 = vmatpush1.bf16.msra.mxu0 %v6581_v50  ;;  %3549 = vmatpush1.bf16.msra.mxu1 %v6584_v51  ;;  %v6640_v50 = vld [vmem:[%s8504_s3 + $0x48c] ss:$16 sps:$4 sm:$0xff]   ;;  %v1973_v51 = vor.u32 %v1971_v45, %v1961_v33  ;;  %v6680_v33 = vld [vmem:[%s8504_s3 + $0x568] ss:$16 sps:$4 sm:$0xff]  }
 0x209   : > { %3313 = vmatprep.subr.bf16.mxu0 %v6589_v52  ;;  %3550 = vmatprep.subr.bf16.mxu1 %v6592_v43  ;;  %v6638_v52 = vld [vmem:[%s8504_s3 + $0x488] ss:$16 sps:$4 sm:$0xff]   ;;  %v6700_v45 = vld [vmem:[%s8504_s3 + $0x5cc] ss:$16 sps:$4 sm:$0xff]  }
 0x20a   : > { %v1978_v43 = vsel %vm561_vm0, %v1973_v51, %v1977_v48  ;;  %v6701_v51 = vld [vmem:[%s8504_s3 + $0x5e0] ss:$16 sps:$4 sm:$0xff]  }
 0x20c   : > { %3314 = vmatpush1.bf16.msra.mxu0 %v6587_v55  ;;  %3551 = vmatpush1.bf16.msra.mxu1 %v6590_v57  ;;  %v6643_v55 = vld [vmem:[%s8504_s3 + $0x4a4] ss:$16 sps:$4 sm:$0xff]   ;;  %v6646_v57 = vld [vmem:[%s8504_s3 + $0x4ac] ss:$16 sps:$4 sm:$0xff]  }
 0x20d   : > { %3315 = vmatprep.subr.bf16.mxu0 %v6595_v28  ;;  %3552 = vmatprep.subr.bf16.mxu1 %v6598_v60  ;;  %v1991_v28 = vshll.u32 %v7888_v35, 16  ;;  %v6641_v60 = vld [vmem:[%s8504_s3 + $0x4a0] ss:$16 sps:$4 sm:$0xff]  }
 0x210   : > { %3316 = vmatpush1.bf16.msra.mxu0 %v6593_v62  ;;  %3553 = vmatpush1.bf16.msra.mxu1 %v6596_v63  ;;  %v1987_v62 = vshrl.u32 %v7656_v8, 16  ;;  %v6644_v63 = vld [vmem:[%s8504_s3 + $0x4a8] ss:$16 sps:$4 sm:$0xff]  }
 0x211   : > { %3317 = vmatprep.subr.bf16.mxu0 %v6601_v0  ;;  %3554 = vmatprep.subr.bf16.mxu1 %v6604_v1  ;;  %v6649_v0 = vld [vmem:[%s8504_s3 + $0x4c4] ss:$16 sps:$4 sm:$0xff]   ;;  %v1993_v1 = vrot.slane %v1991_v28, 1 }
 0x213   : > { %v2005_v14 = vor.u32 %v2003_v49, %v1993_v1  ;;  %v6721_v49 = vld [vmem:[%s8506_s5 + $0xd8] sm:$0xff]  }
 0x214   : > { %3318 = vmatpush1.bf16.msra.mxu0 %v6599_v3  ;;  %3555 = vmatpush1.bf16.msra.mxu1 %v6602_v32  ;;  %v6652_v3 = vld [vmem:[%s8504_s3 + $0x4cc] ss:$16 sps:$4 sm:$0xff]   ;;  %v2006_v32 = vshrl.u32 %v7868_v26, 16  ;;  %v6655_v26 = vld [vmem:[%s8504_s3 + $0x4e4] ss:$16 sps:$4 sm:$0xff]  }
 0x215   : > { %3319 = vmatprep.subr.bf16.mxu0 %v6607_v54  ;;  %3556 = vmatprep.subr.bf16.mxu1 %v6610_v7  ;;  %v6650_v54 = vld [vmem:[%s8504_s3 + $0x4c8] ss:$16 sps:$4 sm:$0xff]  }
 0x216   : > { %v2008_v10 = vor.u32 %v2006_v32, %v7890_v40  ;;  %v6656_v40 = vld [vmem:[%s8504_s3 + $0x4e8] ss:$16 sps:$4 sm:$0xff]   ;;  %v6710_v32 = vld [vmem:[%s8506_s5 + $0x80] sm:$0xff]  }
 0x218   : > { %3320 = vmatpush1.bf16.msra.mxu0 %v6605_v42  ;;  %3557 = vmatpush1.bf16.msra.mxu1 %v6608_v11  ;;  %v6658_v42 = vld [vmem:[%s8504_s3 + $0x4ec] ss:$16 sps:$4 sm:$0xff]   ;;  %v6653_v11 = vld [vmem:[%s8504_s3 + $0x4e0] ss:$16 sps:$4 sm:$0xff]  }
 0x219   : > { %3368 = vmatprep.subr.bf16.mxu0 %v6613_v16  ;;  %3605 = vmatprep.subr.bf16.mxu1 %v6616_v61  ;;  %v6661_v16 = vld [vmem:[%s8504_s3 + $0x504] ss:$16 sps:$4 sm:$0xff]   ;;  %v6664_v61 = vld [vmem:[%s8504_s3 + $0x50c] ss:$16 sps:$4 sm:$0xff]  }
 0x21b   : > { %3322 = vmatmul.mubr.bf16.vlgmr.msra.gmra.mrb[40].mxu0 %v1942_v56  ;;  %3559 = vmatmul.mubr.bf16.vlgmr.msra.gmra.mrb[40].mxu1 %v1942_v56  ;;  %v6665_v56 = vld [vmem:[%s8504_s3 + $0x520] ss:$16 sps:$4 sm:$0xff]  }
 0x21c   : > { %3331 = vmatprep.mubr.bf16.mxu0 %v7835_v2  ;;  %3369 = vmatpush1.bf16.msra.mxu0 %v6611_v17  ;;  %v6667_v17 = vld [vmem:[%s8504_s3 + $0x524] ss:$16 sps:$4 sm:$0xff]  }
 0x21d   : > { %3568 = vmatprep.mubr.bf16.mxu1 %v7835_v2  ;;  %3606 = vmatpush1.bf16.msra.mxu1 %v6614_v20  ;;  %v6623_v2 = vld [vmem:[%s8504_s3 + $0x440] ss:$16 sps:$4 sm:$0xff]   ;;  %v6670_v20 = vld [vmem:[%s8504_s3 + $0x52c] ss:$16 sps:$4 sm:$0xff]  }
 0x21e   : > { %3370 = vmatprep.subr.bf16.mxu0 %v6619_v29  ;;  %3607 = vmatprep.subr.bf16.mxu1 %v6622_v21  ;;  %v6668_v29 = vld [vmem:[%s8504_s3 + $0x528] ss:$16 sps:$4 sm:$0xff]   ;;  %v6673_v21 = vld [vmem:[%s8504_s3 + $0x544] ss:$16 sps:$4 sm:$0xff]  }
 0x220   : > { %3371 = vmatpush1.bf16.msra.mxu0 %v6617_v24  ;;  %v6671_v24 = vld [vmem:[%s8504_s3 + $0x540] ss:$16 sps:$4 sm:$0xff]  }
 0x221   : > { %3608 = vmatpush1.bf16.msra.mxu1 %v6620_v4  ;;  %3372 = vmatprep.subr.bf16.mxu0 %v6625_v30  ;;  %v6682_v4 = vld [vmem:[%s8504_s3 + $0x56c] ss:$16 sps:$4 sm:$0xff]   ;;  %v6677_v30 = vld [vmem:[%s8504_s3 + $0x560] ss:$16 sps:$4 sm:$0xff]  }
 0x222   : > { %3609 = vmatprep.subr.bf16.mxu1 %v6628_v34  ;;  %v6685_v34 = vld [vmem:[%s8504_s3 + $0x584] ss:$16 sps:$4 sm:$0xff]  }
 0x223   : > { %3332 = vmatmul.mubr.bf16.gmra.mrb[44].mxu0 %v1962_v19  ;;  %3569 = vmatmul.mubr.bf16.gmra.mrb[44].mxu1 %v1962_v19  ;;  %v6691_v19 = vld [vmem:[%s8504_s3 + $0x5a4] ss:$16 sps:$4 sm:$0xff]  }
 0x224   : > { %3341 = vmatprep.mubr.bf16.mxu0 %v7874_v25  ;;  %3373 = vmatpush1.bf16.msra.mxu0 %v6623_v2  ;;  %v6683_v2 = vld [vmem:[%s8504_s3 + $0x580] ss:$16 sps:$4 sm:$0xff]  }
 0x225   : > { %3578 = vmatprep.mubr.bf16.mxu1 %v7874_v25  ;;  %3610 = vmatpush1.bf16.msra.mxu1 %v6626_v53  ;;  %v6635_v25 = vld [vmem:[%s8504_s3 + $0x480] ss:$16 sps:$4 sm:$0xff]   ;;  %v6686_v53 = vld [vmem:[%s8504_s3 + $0x588] ss:$16 sps:$4 sm:$0xff]  }
 0x226   : > { %3374 = vmatprep.subr.bf16.mxu0 %v6631_v58  ;;  %3611 = vmatprep.subr.bf16.mxu1 %v6634_v18  ;;  %v6694_v58 = vld [vmem:[%s8504_s3 + $0x5ac] ss:$16 sps:$4 sm:$0xff]   ;;  %v6689_v18 = vld [vmem:[%s8504_s3 + $0x5a0] ss:$16 sps:$4 sm:$0xff]  }
 0x228   : > { %3375 = vmatpush1.bf16.msra.mxu0 %v6629_v44  ;;  %v6697_v44 = vld [vmem:[%s8504_s3 + $0x5c4] ss:$16 sps:$4 sm:$0xff]  }
 0x229   : > { %3612 = vmatpush1.bf16.msra.mxu1 %v6632_v13  ;;  %3376 = vmatprep.subr.bf16.mxu0 %v6637_v47  ;;  %v6695_v13 = vld [vmem:[%s8504_s3 + $0x5c0] ss:$16 sps:$4 sm:$0xff]   ;;  %v6698_v47 = vld [vmem:[%s8504_s3 + $0x5c8] ss:$16 sps:$4 sm:$0xff]  }
 0x22a   : > { %3613 = vmatprep.subr.bf16.mxu1 %v6640_v50  ;;  %v6706_v50 = vld [vmem:[%s8504_s3 + $0x5ec] ss:$16 sps:$4 sm:$0xff]  }
 0x22b   : > { %3342 = vmatmul.mubr.bf16.gmra.mrb[48].mxu0 %v1978_v43  ;;  %3579 = vmatmul.mubr.bf16.gmra.mrb[48].mxu1 %v1978_v43  ;;  %v2030_v43 = vrot.slane %v7639_v9, 1  ;;  %v2040_v9 = vrot.slane %v7656_v8, 1 }
 0x22c   : > { %3351 = vmatprep.mubr.bf16.mxu0 %v7906_v37  ;;  %3377 = vmatpush1.bf16.msra.mxu0 %v6635_v25  ;;  %v6704_v25 = vld [vmem:[%s8504_s3 + $0x5e8] ss:$16 sps:$4 sm:$0xff]  }
 0x22d   : > { %3588 = vmatprep.mubr.bf16.mxu1 %v7906_v37  ;;  %3614 = vmatpush1.bf16.msra.mxu1 %v6638_v52  ;;  %v1989_v37 = vor.u32 %v1987_v62, %v1977_v48  ;;  %v6703_v48 = vld [vmem:[%s8504_s3 + $0x5e4] ss:$16 sps:$4 sm:$0xff]   ;;  %v2031_v52 = vrot.slane %v7648_v38, 1 }
 0x22e   : > { %3378 = vmatprep.subr.bf16.mxu0 %v6643_v55  ;;  %3615 = vmatprep.subr.bf16.mxu1 %v6646_v57  ;;  %v2036_v57 = vrot.slane %v7654_v36, 1  ;;  %v2044_v36 = vrot.slane %v7888_v35, 1  ;;  %v6707_v35 = vld [vmem:[%s8506_s5 + $0x40] sm:$0xff]  }
 0x22f   : > { %v1994_v7 = vsel %vm561_vm0, %v1989_v37, %v1993_v1  ;;  %v2032_v55 = vsel %vm2029_vm15, %v2030_v43, %v2031_v52  ;;  %v6711_v37 = vld [vmem:[%s8506_s5 + $0x48] sm:$0xff]  }
 0x230   : > { %3379 = vmatpush1.bf16.msra.mxu0 %v6641_v60  ;;  %v2037_v28 = vsel %vm2029_vm15, %v2031_v52, %v2036_v57  ;;  %v2041_v38 = vsel %vm2029_vm15, %v2036_v57, %v2040_v9 }
 0x231   : > { %3616 = vmatpush1.bf16.msra.mxu1 %v6644_v63  ;;  %3380 = vmatprep.subr.bf16.mxu0 %v6649_v0 }
 0x232   : > { %3617 = vmatprep.subr.bf16.mxu1 %v6652_v3  ;;  %v6708_v3 = vld [vmem:[%s8506_s5] sm:$0xff]  }
 0x233   : > { %3352 = vmatmul.mubr.bf16.gmra.mrb[52].mxu0 %v1994_v7  ;;  %3589 = vmatmul.mubr.bf16.gmra.mrb[52].mxu1 %v1994_v7  ;;  %v6714_v7 = vld [vmem:[%s8506_s5 + $0x88] sm:$0xff]  }
 0x234   : > { %3361 = vmatprep.mubr.bf16.mxu0 %v2008_v10  ;;  %3381 = vmatpush1.bf16.msra.mxu0 %v6647_v6  ;;  %v6713_v6 = vld [vmem:[%s8506_s5 + $0xc8] sm:$0xff]  }
 0x235   : > { %3598 = vmatprep.mubr.bf16.mxu1 %v2008_v10  ;;  %3618 = vmatpush1.bf16.msra.mxu1 %v6650_v54  ;;  %v6712_v54 = vld [vmem:[%s8506_s5 + $0x8] sm:$0xff]   ;;  %v6715_v10 = vld [vmem:[%s8506_s5 + $0x50] sm:$0xff]  }
 0x236   : > { %3382 = vmatprep.subr.bf16.mxu0 %v6655_v26  ;;  %3619 = vmatprep.subr.bf16.mxu1 %v6658_v42  ;;  %v6717_v26 = vld [vmem:[%s8506_s5 + $0xd0] sm:$0xff]  }
 0x237   : > { %v6716_v42 = vld [vmem:[%s8506_s5 + $0x10] sm:$0xff]  }
 0x238   : > { %3383 = vmatpush1.bf16.msra.mxu0 %v6653_v11  ;;  %v6718_v11 = vld [vmem:[%s8506_s5 + $0x90] sm:$0xff]  }
 0x239   : > { %3620 = vmatpush1.bf16.msra.mxu1 %v6656_v40  ;;  %3384 = vmatprep.subr.bf16.mxu0 %v6661_v16  ;;  %v6719_v40 = vld [vmem:[%s8506_s5 + $0x58] sm:$0xff]  }
 0x23a   : > { %3621 = vmatprep.subr.bf16.mxu1 %v6664_v61  ;;  %v6720_v16 = vld [vmem:[%s8506_s5 + $0x18] sm:$0xff]  }
 0x23b   : > { %3362 = vmatmul.mubr.bf16.gmra.mrb[60].mxu0 %v2005_v14  ;;  %3599 = vmatmul.mubr.bf16.gmra.mrb[60].mxu1 %v2005_v14  ;;  %v6722_v61 = vld [vmem:[%s8506_s5 + $0x98] sm:$0xff]   ;;  %v6725_v14 = vld [vmem:[%s8506_s5 + $0xe0] sm:$0xff]  }
 0x23c   : > { %3385 = vmatpush1.bf16.msra.mxu0 %v6659_v12  ;;  %3400 = vmatprep.mubr.bf16.mxu0 %v7776_v59  ;;  %v6723_v12 = vld [vmem:[%s8506_s5 + $0x60] sm:$0xff]  }
 0x23d   : > { %3622 = vmatpush1.bf16.msra.mxu1 %v6662_v15  ;;  %3637 = vmatprep.mubr.bf16.mxu1 %v7776_v59  ;;  %v6674_v59 = vld [vmem:[%s8504_s3 + $0x548] ss:$16 sps:$4 sm:$0xff]   ;;  %v6724_v15 = vld [vmem:[%s8506_s5 + $0x20] sm:$0xff]  }
 0x23e   : > { %3386 = vmatprep.subr.bf16.mxu0 %v6667_v17  ;;  %3623 = vmatprep.subr.bf16.mxu1 %v6670_v20  ;;  %v6726_v17 = vld [vmem:[%s8506_s5 + $0xa0] sm:$0xff]   ;;  %v6727_v20 = vld [vmem:[%s8506_s5 + $0x68] sm:$0xff]  }
 0x240   : > { %3387 = vmatpush1.bf16.msra.mxu0 %v6665_v56  ;;  %v6729_v56 = vld [vmem:[%s8506_s5 + $0xe8] sm:$0xff]  }
 0x241   : > { %3624 = vmatpush1.bf16.msra.mxu1 %v6668_v29  ;;  %3388 = vmatprep.subr.bf16.mxu0 %v6673_v21  ;;  %v6728_v29 = vld [vmem:[%s8506_s5 + $0x28] sm:$0xff]  }
 0x242   : > { %3625 = vmatprep.subr.bf16.mxu1 %v6676_v22  ;;  %v6730_v21 = vld [vmem:[%s8506_s5 + $0xa8] sm:$0xff]   ;;  %v6731_v22 = vld [vmem:[%s8506_s5 + $0x70] sm:$0xff]  }
 0x244   : > { %3389 = vmatpush1.bf16.msra.mxu0 %v6671_v24  ;;  %v6733_v24 = vld [vmem:[%s8506_s5 + $0xf0] sm:$0xff]  }
 0x245   : > { %3626 = vmatpush1.bf16.msra.mxu1 %v6674_v59  ;;  %3390 = vmatprep.subr.bf16.mxu0 %v6679_v27  ;;  %v6732_v59 = vld [vmem:[%s8506_s5 + $0x30] sm:$0xff]  }
 0x246   : > { %3627 = vmatprep.subr.bf16.mxu1 %v6682_v4  ;;  %v6734_v27 = vld [vmem:[%s8506_s5 + $0xb0] sm:$0xff]   ;;  %v6735_v4 = vld [vmem:[%s8506_s5 + $0x78] sm:$0xff]  }
 0x248   : > { %3391 = vmatpush1.bf16.msra.mxu0 %v6677_v30  ;;  %v6737_v30 = vld [vmem:[%s8506_s5 + $0xf8] sm:$0xff]  }
 0x249   : > { %3628 = vmatpush1.bf16.msra.mxu1 %v6680_v33  ;;  %3392 = vmatprep.subr.bf16.mxu0 %v6685_v34  ;;  %v6736_v33 = vld [vmem:[%s8506_s5 + $0x38] sm:$0xff]  }
 0x24a   : > { %3629 = vmatprep.subr.bf16.mxu1 %v6688_v39  ;;  %v6738_v34 = vld [vmem:[%s8506_s5 + $0xb8] sm:$0xff]  }
 0x24c   : > { %3393 = vmatpush1.bf16.msra.mxu0 %v6683_v2 }
 0x24d   : > { %3630 = vmatpush1.bf16.msra.mxu1 %v6686_v53  ;;  %3394 = vmatprep.subr.bf16.mxu0 %v6691_v19 }
 0x24e   : > { %3631 = vmatprep.subr.bf16.mxu1 %v6694_v58 }
 0x250   : > { %3395 = vmatpush1.bf16.msra.mxu0 %v6689_v18 }
 0x251   : > { %3632 = vmatpush1.bf16.msra.mxu1 %v6692_v46  ;;  %3396 = vmatprep.subr.bf16.mxu0 %v6697_v44 }
 0x252   : > { %3633 = vmatprep.subr.bf16.mxu1 %v6700_v45 }
 0x254   : > { %3397 = vmatpush1.bf16.msra.mxu0 %v6695_v13 }
 0x255   : > { %3634 = vmatpush1.bf16.msra.mxu1 %v6698_v47  ;;  %3398 = vmatprep.subr.bf16.mxu0 %v6703_v48 }
 0x256   : > { %3635 = vmatprep.subr.bf16.mxu1 %v6706_v50 }
 0x258   : > { %3399 = vmatpush1.bf16.msra.mxu0 %v6701_v51 }
 0x259   : > { %3636 = vmatpush1.bf16.msra.mxu1 %v6704_v25  ;;  %6205 = vmatprep.subr.bf16.mxu0 %v6707_v35 }
 0x25b   : > { %3401 = vmatmul.mubr.bf16.vlgmr.msra.gmra.mrb[40].mxu0 %v2032_v55 }
 0x25c   : > { %3638 = vmatmul.mubr.bf16.vlgmr.msra.gmra.mrb[40].mxu1 %v2032_v55  ;;  %3410 = vmatprep.mubr.bf16.mxu0 %v7823_v23  ;;  %v8320_v55 = vld [vmem:[%s8505_s4] ss:$0 sm:$0xff] }
 0x25d   : > { %3647 = vmatprep.mubr.bf16.mxu1 %v7823_v23  ;;  %v2045_v23 = vsel %vm2029_vm15, %v2040_v9, %v2044_v36  ;;  %6206 = vmatpush3.bf16.msra.mxu0 %v6708_v3 }
 0x25e   : > { %6207 = vmatprep.subr.bf16.mxu0 %v6711_v37 }
 0x261   : > { %6208 = vmatpush3.bf16.msra.mxu0 %v6712_v54 }
 0x262   : > { %6209 = vmatprep.subr.bf16.mxu0 %v6715_v10 }
 0x263   : > { %3411 = vmatmul.mubr.bf16.gmra.mrb[44].mxu0 %v2037_v28 }
 0x264   : > { %3648 = vmatmul.mubr.bf16.gmra.mrb[44].mxu1 %v2037_v28  ;;  %3420 = vmatprep.mubr.bf16.mxu0 %v7866_v5 }
 0x265   : > { %3657 = vmatprep.mubr.bf16.mxu1 %v7866_v5  ;;  %6210 = vmatpush3.bf16.msra.mxu0 %v6716_v42 }
 0x266   : > { %6211 = vmatprep.subr.bf16.mxu0 %v6719_v40 }
 0x269   : > { %6212 = vmatpush3.bf16.msra.mxu0 %v6720_v16 }
 0x26a   : > { %6213 = vmatprep.subr.bf16.mxu0 %v6723_v12 }
 0x26b   : > { %3421 = vmatmul.mubr.bf16.gmra.mrb[48].mxu0 %v2041_v38 }
 0x26c   : > { %3658 = vmatmul.mubr.bf16.gmra.mrb[48].mxu1 %v2041_v38  ;;  %3430 = vmatprep.mubr.bf16.mxu0 %v7894_v41 }
 0x26d   : > { %3667 = vmatprep.mubr.bf16.mxu1 %v7894_v41  ;;  %6214 = vmatpush3.bf16.msra.mxu0 %v6724_v15 }
 0x26e   : > { %6215 = vmatprep.subr.bf16.mxu0 %v6727_v20 }
 0x271   : > { %6216 = vmatpush3.bf16.msra.mxu0 %v6728_v29 }
 0x272   : > { %6217 = vmatprep.subr.bf16.mxu0 %v6731_v22 }
 0x273   : > { %3431 = vmatmul.mubr.bf16.gmra.mrb[52].mxu0 %v2045_v23 }
 0x274   : > { %3668 = vmatmul.mubr.bf16.gmra.mrb[52].mxu1 %v2045_v23  ;;  %3440 = vmatprep.mubr.bf16.mxu0 %v7880_v31 }
 0x275   : > { %3677 = vmatprep.mubr.bf16.mxu1 %v7880_v31  ;;  %v6709_v31 = vld [vmem:[%s8506_s5 + $0xc0] sm:$0xff]   ;;  %6218 = vmatpush3.bf16.msra.mxu0 %v6732_v59 }
 0x276   : > { %6227 = vmatprep.subr.bf16.mxu1 %v6709_v31  ;;  %6219 = vmatprep.subr.bf16.mxu0 %v6735_v4 }
 0x277   : > { %6228 = vmatpush3.bf16.msra.mxu1 %v6710_v32 }
 0x278   : > { %6229 = vmatprep.subr.bf16.mxu1 %v6713_v6 }
 0x279   : > { %6220 = vmatpush3.bf16.msra.mxu0 %v6736_v33 }
 0x27b   : > { %3441 = vmatmul.mubr.bf16.gmra.mrb[64].mxu0 %v2044_v36  ;;  %6230 = vmatpush3.bf16.msra.mxu1 %v6714_v7 }
 0x27c   : > { %3678 = vmatmul.mubr.bf16.gmra.mrb[64].mxu1 %v2044_v36  ;;  %6231 = vmatprep.subr.bf16.mxu1 %v6717_v26 }
 0x27f   : > { %6232 = vmatpush3.bf16.msra.mxu1 %v6718_v11 }
 0x280   : > { %6233 = vmatprep.subr.bf16.mxu1 %v6721_v49 }
 0x283   : > { %6234 = vmatpush3.bf16.msra.mxu1 %v6722_v61 }
 0x284   : > { %6235 = vmatprep.subr.bf16.mxu1 %v6725_v14 }
 0x287   : > { %6236 = vmatpush3.bf16.msra.mxu1 %v6726_v17 }
 0x288   : > { %6237 = vmatprep.subr.bf16.mxu1 %v6729_v56 }
 0x28b   : > { %6238 = vmatpush3.bf16.msra.mxu1 %v6730_v21 }
 0x28c   : > { %6239 = vmatprep.subr.bf16.mxu1 %v6733_v24 }
 0x28f   : > { %6240 = vmatpush3.bf16.msra.mxu1 %v6734_v27 }
 0x290   : > { %6241 = vmatprep.subr.bf16.mxu1 %v6737_v30 }
 0x293   : > { %6242 = vmatpush3.bf16.msra.mxu1 %v6738_v34 }
 0x2cd   : > { %v3284_v8 = vpop.f32.mrb[56].mxu0  ;;  %v3521_v5 = vpop.f32.mrb[56].mxu1 }
 0x2ce   : > { %v3285_v60 = vpop.f32.mrb[57].mxu0  ;;  %v3522_v62 = vpop.f32.mrb[57].mxu1 }
 0x2cf   : > { %v3286_v63 = vpop.f32.mrb[58].mxu0  ;;  %v3523_v0 = vpop.f32.mrb[58].mxu1 }
 0x2d0   : > { %v3287_v1 = vpop.f32.mrb[59].mxu0  ;;  %v3524_v41 = vpop.f32.mrb[59].mxu1 }
 0x30e   : > { %v3363_v39 = vpop.f32.mrb[60].mxu0  ;;  %v3600_v2 = vpop.f32.mrb[60].mxu1 }
 0x30f   : > { %v3364_v53 = vpop.f32.mrb[61].mxu0  ;;  %v3601_v19 = vpop.f32.mrb[61].mxu1 }
 0x310   : > { %v3365_v58 = vpop.f32.mrb[62].mxu0  ;;  %v3602_v18 = vpop.f32.mrb[62].mxu1 }
 0x311   : > { %v3366_v46 = vpop.f32.mrb[63].mxu0  ;;  %v3603_v44 = vpop.f32.mrb[63].mxu1 }
 0x32e   : > { %v3402_v45 = vpop.f32.mrb[40].mxu0 }
 0x32f   : > { %v3639_v13 = vpop.f32.mrb[40].mxu1  ;;  %v3404_v47 = vpop.f32.mrb[41].mxu0 }
 0x330   : > { %v3684_v48 = vmax.f32 %v3402_v45, %v3404_v47  ;;  %v3641_v50 = vpop.f32.mrb[41].mxu1  ;;  %v3406_v51 = vpop.f32.mrb[42].mxu0 }
 0x331   : > { %v3692_v25 = vmax.f32 %v3639_v13, %v3641_v50  ;;  %v3643_v52 = vpop.f32.mrb[42].mxu1  ;;  %v3408_v43 = vpop.f32.mrb[43].mxu0 }
 0x332   : > { %v3685_v57 = vmax.f32 %v3406_v51, %v3408_v43  ;;  %v3645_v28 = vpop.f32.mrb[43].mxu1 }
 0x333   : > { %v3700_v9 = vmax.f32 %v3684_v48, %v3692_v25  ;;  %v3693_v38 = vmax.f32 %v3643_v52, %v3645_v28 }
 0x335   : > { %v8323_v36 = vadd.f32 %v8320_v55, %v3700_v9  ;;  %v3701_v23 = vmax.f32 %v3685_v57, %v3693_v38 }
 0x336   : > { %v3412_v8 = vpop.f32.mrb[44].mxu0 }
 0x337   : > { %v3731_v5 = vmin.f32 %v8323_v36, 0.0  ;;  %v8327_v60 = vadd.f32 %v8320_v55, %v3701_v23  ;;  %v3649_v62 = vpop.f32.mrb[44].mxu1  ;;  %v3414_v63 = vpop.f32.mrb[45].mxu0  ;;  %vm3723_vm0 = vcmp.gt.f32.partialorder %v8323_v36, 0.0 }
 0x338   : > { %v3686_v0 = vmax.f32 %v3412_v8, %v3414_v63  ;;  %v3651_v1 = vpop.f32.mrb[45].mxu1  ;;  %v3416_v41 = vpop.f32.mrb[46].mxu0 }
 0x339   : > { %v3739_v35 = vmul.f32 1.442695, %v3731_v5  ;;  %v3732_v3 = vmin.f32 %v8327_v60, 0.0  ;;  %v3694_v31 = vmax.f32 %v3649_v62, %v3651_v1  ;;  %v3653_v32 = vpop.f32.mrb[46].mxu1  ;;  %v3418_v37 = vpop.f32.mrb[47].mxu0  ;;  %vm3724_vm5 = vcmp.gt.f32.partialorder %v8327_v60, 0.0 }
 0x33a   : > { %v3687_v6 = vmax.f32 %v3416_v41, %v3418_v37  ;;  %v3655_v54 = vpop.f32.mrb[47].mxu1 }
 0x33b   : > { %6967 = vpow2.f32 %v3739_v35  ;;  %v3741_v7 = vmul.f32 1.442695, %v3732_v3  ;;  %v3702_v10 = vmax.f32 %v3686_v0, %v3694_v31  ;;  %v3695_v26 = vmax.f32 %v3653_v32, %v3655_v54 }
 0x33d   : > { %6969 = vpow2.f32 %v3741_v7  ;;  %v8331_v42 = vadd.f32 %v8320_v55, %v3702_v10  ;;  %v3703_v11 = vmax.f32 %v3687_v6, %v3695_v26 }
 0x33e   : > { %v3422_v40 = vpop.f32.mrb[48].mxu0 }
 0x33f   : > { %v3733_v49 = vmin.f32 %v8331_v42, 0.0  ;;  %v8335_v16 = vadd.f32 %v8320_v55, %v3703_v11  ;;  %v3659_v61 = vpop.f32.mrb[48].mxu1  ;;  %v3424_v12 = vpop.f32.mrb[49].mxu0  ;;  %vm3725_vm7 = vcmp.gt.f32.partialorder %v8331_v42, 0.0 }
 0x340   : > { %v3688_v14 = vmax.f32 %v3422_v40, %v3424_v12  ;;  %v3661_v15 = vpop.f32.mrb[49].mxu1  ;;  %v3426_v17 = vpop.f32.mrb[50].mxu0 }
 0x341   : > { %v3743_v20 = vmul.f32 1.442695, %v3733_v49  ;;  %v3734_v56 = vmin.f32 %v8335_v16, 0.0  ;;  %v3696_v29 = vmax.f32 %v3659_v61, %v3661_v15  ;;  %v3663_v21 = vpop.f32.mrb[50].mxu1  ;;  %v3428_v22 = vpop.f32.mrb[51].mxu0  ;;  %vm3726_vm8 = vcmp.gt.f32.partialorder %v8335_v16, 0.0 }
 0x342   : > { %v3689_v24 = vmax.f32 %v3426_v17, %v3428_v22  ;;  %v3665_v59 = vpop.f32.mrb[51].mxu1 }
 0x343   : > { %6971 = vpow2.f32 %v3743_v20  ;;  %v3745_v27 = vmul.f32 1.442695, %v3734_v56  ;;  %v3704_v4 = vmax.f32 %v3688_v14, %v3696_v29  ;;  %v3697_v30 = vmax.f32 %v3663_v21, %v3665_v59 }
 0x345   : > { %v6968_v33 = vpop.eup %6967  ;;  %6973 = vpow2.f32 %v3745_v27  ;;  %v8339_v34 = vadd.f32 %v8320_v55, %v3704_v4  ;;  %v3705_v39 = vmax.f32 %v3689_v24, %v3697_v30 }
 0x346   : > { %v5998_v2 = vadd.f32 -1.0, %v6968_v33  ;;  %v3432_v53 = vpop.f32.mrb[52].mxu0 }
 0x347   : > { %v6970_v19 = vpop.eup %6969  ;;  %v3735_v58 = vmin.f32 %v8339_v34, 0.0  ;;  %v8343_v18 = vadd.f32 %v8320_v55, %v3705_v39  ;;  %v3669_v46 = vpop.f32.mrb[52].mxu1  ;;  %vm3727_vm11 = vcmp.gt.f32.partialorder %v8339_v34, 0.0 }
 0x348   : > { %v3434_v44 = vpop.f32.mrb[53].mxu0  ;;  %v3763_v45 = vmul.f32 1.6732632, %v5998_v2  ;;  %v5999_v13 = vadd.f32 -1.0, %v6970_v19  ;;  %v3671_v48 = vpop.f32.mrb[53].mxu1 }
 0x349   : > { %v3690_v47 = vmax.f32 %v3432_v53, %v3434_v44  ;;  %v3436_v50 = vpop.f32.mrb[54].mxu0  ;;  %v3747_v51 = vmul.f32 1.442695, %v3735_v58  ;;  %v3736_v25 = vmin.f32 %v8343_v18, 0.0  ;;  %v3698_v52 = vmax.f32 %v3669_v46, %v3671_v48  ;;  %v3673_v43 = vpop.f32.mrb[54].mxu1 }
 0x34a   : > { %v3438_v57 = vpop.f32.mrb[55].mxu0  ;;  %v3771_v28 = vsel %vm3723_vm0, %v8323_v36, %v3763_v45  ;;  %v3764_v9 = vmul.f32 1.6732632, %v5999_v13  ;;  %v3675_v23 = vpop.f32.mrb[55].mxu1  ;;  %vm3728_vm12 = vcmp.gt.f32.partialorder %v8343_v18, 0.0 }
 0x34b   : > { %v3691_v38 = vmax.f32 %v3436_v50, %v3438_v57  ;;  %v3779_v8 = vmul.f32 1.050701, %v3771_v28  ;;  %6975 = vpow2.f32 %v3747_v51  ;;  %v3749_v5 = vmul.f32 1.442695, %v3736_v25 }
 0x34c   : > { %v3706_v62 = vmax.f32 %v3690_v47, %v3698_v52  ;;  %v3772_v63 = vsel %vm3724_vm5, %v8327_v60, %v3764_v9  ;;  %v3699_v0 = vmax.f32 %v3673_v43, %v3675_v23 }
 0x34d   : > { %v6972_v1 = vpop.eup %6971  ;;  %v6193_v41 = vpack.c.bf16 %v3779_v8, %v3779_v8  ;;  %v3780_v35 = vmul.f32 1.050701, %v3772_v63  ;;  %6977 = vpow2.f32 %v3749_v5 }
 0x34e   : > { %v8351_v3 = vadd.f32 %v8320_v55, %v3706_v62  ;;  %v6000_v36 = vadd.f32 -1.0, %v6972_v1  ;;  %v3707_v31 = vmax.f32 %v3691_v38, %v3699_v0  ;;  %v3442_v32 = vpop.f32.mrb[64].mxu0 }
 0x34f   : > { %v6974_v37 = vpop.eup %6973  ;;  %v3811_v6 = vunpack.c.l.b16 %v6193_v41  ;;  %v6194_v54 = vpack.c.bf16 %v3780_v35, %v3780_v35  ;;  %v3679_v10 = vpop.f32.mrb[64].mxu1 }
 0x350   : > { %v3737_v7 = vmin.f32 %v8351_v3, 0.0  ;;  %v3443_v26 = vpop.f32.mrb[65].mxu0  ;;  %v3765_v60 = vmul.f32 1.6732632, %v6000_v36  ;;  %v6001_v11 = vadd.f32 -1.0, %v6974_v37  ;;  %v8356_v40 = vadd.f32 %v8320_v55, %v3707_v31  ;;  %v3680_v49 = vpop.f32.mrb[65].mxu1 }
 0x351   : > { %v3444_v61 = vpop.f32.mrb[66].mxu0  ;;  %v3842_v12 = vrot.slane %v3811_v6, 1  ;;  %v3858_v14 = vrot.slane %v3811_v6, 2  ;;  %v3812_v15 = vunpack.c.l.b16 %v6194_v54  ;;  %v3681_v17 = vpop.f32.mrb[66].mxu1  ;;  %v3874_v56 = vrot.slane %v3811_v6, 3 }
 0x352   : > { %v3445_v20 = vpop.f32.mrb[67].mxu0  ;;  %v3773_v29 = vsel %vm3725_vm7, %v8331_v42, %v3765_v60  ;;  %v3766_v21 = vmul.f32 1.6732632, %v6001_v11  ;;  %v3751_v22 = vmul.f32 1.442695, %v3737_v7  ;;  %v3682_v24 = vpop.f32.mrb[67].mxu1 }
 0x353   : > { %v3819_v59 = vrot.slane %v3812_v15, 7  ;;  %v3859_v27 = vrot.slane %v3812_v15, 1  ;;  %v3875_v4 = vrot.slane %v3812_v15, 2  ;;  %v3781_v55 = vmul.f32 1.050701, %v3773_v29 }
 0x354   : > { %v3774_v30 = vsel %vm3726_vm8, %v8335_v16, %v3766_v21  ;;  %6979 = vpow2.f32 %v3751_v22  ;;  %v3738_v33 = vmin.f32 %v8356_v40, 0.0  ;;  %v3843_v39 = vsel %vm3820_vm6, %v3812_v15, %v3842_v12 }
 0x355   : > { %v6976_v2 = vpop.eup %6975  ;;  %v6195_v53 = vpack.c.bf16 %v3781_v55, %v3781_v55  ;;  %v3821_v19 = vsel %vm3820_vm6, %v3819_v59, %v3811_v6  ;;  %v3860_v42 = vsel %vm3820_vm6, %v3859_v27, %v3858_v14  ;;  %v3782_v58 = vmul.f32 1.050701, %v3774_v30 }
 0x356   : > { %v6002_v46 = vadd.f32 -1.0, %v6976_v2  ;;  %v3753_v44 = vmul.f32 1.442695, %v3738_v33  ;;  %v3876_v45 = vsel %vm3820_vm6, %v3875_v4, %v3874_v56  ;;  %vm3729_vm15 = vcmp.gt.f32.partialorder %v8351_v3, 0.0 }
 0x357   : > { %v6978_v13 = vpop.eup %6977  ;;  %v3813_v47 = vunpack.c.l.b16 %v6195_v53  ;;  %v6196_v16 = vpack.c.bf16 %v3782_v58, %v3782_v58  ;;  %vm3730_vm1 = vcmp.gt.f32.partialorder %v8356_v40, 0.0 }
 0x358   : > { %v3767_v48 = vmul.f32 1.6732632, %v6002_v46  ;;  %v6003_v50 = vadd.f32 -1.0, %v6978_v13  ;;  %6981 = vpow2.f32 %v3753_v44 }
 0x359   : > { %v3822_v51 = vrot.slane %v3813_v47, 6  ;;  %v3844_v25 = vrot.slane %v3813_v47, 7  ;;  %v3861_v52 = vsel %vm3823_vm9, %v3813_v47, %v3860_v42  ;;  %v3877_v43 = vrot.slane %v3813_v47, 1 }
 0x35a   : > { %v3814_v57 = vunpack.c.l.b16 %v6196_v16  ;;  %v3775_v28 = vsel %vm3727_vm11, %v8339_v34, %v3767_v48  ;;  %v3768_v9 = vmul.f32 1.6732632, %v6003_v50 }
 0x35b   : > { %v3824_v38 = vsel %vm3823_vm9, %v3822_v51, %v3821_v19  ;;  %v3783_v23 = vmul.f32 1.050701, %v3775_v28  ;;  %v3845_v8 = vsel %vm3823_vm9, %v3844_v25, %v3843_v39  ;;  %v3878_v5 = vsel %vm3823_vm9, %v3877_v43, %v3876_v45 }
 0x35c   : > { %v3825_v62 = vrot.slane %v3814_v57, 5  ;;  %v3862_v63 = vrot.slane %v3814_v57, 7  ;;  %v3776_v0 = vsel %vm3728_vm12, %v8343_v18, %v3768_v9  ;;  %v3846_v1 = vrot.slane %v3814_v57, 6 }
 0x35d   : > { %v6197_v41 = vpack.c.bf16 %v3783_v23, %v3783_v23  ;;  %v3784_v35 = vmul.f32 1.050701, %v3776_v0  ;;  %v3879_v36 = vsel %vm3826_vm10, %v3814_v57, %v3878_v5  ;;  %v6739_v5 = vld [vmem:[#allocation4] sm:$0xff]   ;;  %v6741_v0 = vld [vmem:[#allocation4 + $0x10] sm:$0xff]  }
 0x35e   : > { %v6980_v34 = vpop.eup %6979  ;;  %v3847_v31 = vsel %vm3826_vm10, %v3846_v1, %v3845_v8  ;;  %v3827_v32 = vsel %vm3826_vm10, %v3825_v62, %v3824_v38  ;;  %v3863_v37 = vsel %vm3826_vm10, %v3862_v63, %v3861_v52  ;;  %v7130_v62 = vmov 0.0   ;;  %v6740_v63 = vld [vmem:[#allocation4 + $0x8] sm:$0xff]   ;;  %v6742_v1 = vld [vmem:[#allocation4 + $0x18] sm:$0xff]  }
 0x35f   : > { %v3815_v6 = vunpack.c.l.b16 %v6197_v41  ;;  %v6198_v54 = vpack.c.bf16 %v3784_v35, %v3784_v35  ;;  %v6004_v7 = vadd.f32 -1.0, %v6980_v34  ;;  %6280 = vmatprep.subr.bf16.mxu0 %v7130_v62  ;;  %v6743_v41 = vld [vmem:[#allocation4 + $0x20] sm:$0xff]   ;;  %v6744_v35 = vld [vmem:[#allocation4 + $0x28] sm:$0xff]   ;;  %v6746_v34 = vld [vmem:[#allocation4 + $0x38] sm:$0xff]  }
 0x361   : > { %v3828_v10 = vrot.slane %v3815_v6, 4  ;;  %v3864_v26 = vrot.slane %v3815_v6, 6  ;;  %v3816_v18 = vunpack.c.l.b16 %v6198_v54  ;;  %v3769_v60 = vmul.f32 1.6732632, %v6004_v7  ;;  %v6755_v54 = vld [vmem:[%s8510_s9 + $0x24] ss:$8 sps:$4 sm:$0xff]  }
 0x362   : > { %v6982_v11 = vpop.eup %6981  ;;  %v3848_v49 = vrot.slane %v3815_v6, 5  ;;  %v3880_v61 = vrot.slane %v3815_v6, 7  ;;  %v6750_v6 = vld [vmem:[%s8510_s9 + $0x10] ss:$8 sps:$4 sm:$0xff]   ;;  %v6753_v7 = vld [vmem:[%s8510_s9 + $0x20] ss:$8 sps:$4 sm:$0xff]  }
 0x363   : > { %v3831_v12 = vrot.slane %v3816_v18, 3  ;;  %v3866_v14 = vrot.slane %v3816_v18, 5  ;;  %v3777_v15 = vsel %vm3729_vm15, %v8351_v3, %v3769_v60  ;;  %v6005_v17 = vadd.f32 -1.0, %v6982_v11  ;;  %v6759_v60 = vld [vmem:[%s8510_s9 + $0x40] ss:$8 sps:$4 sm:$0xff]  }
 0x364   : > { %v3785_v20 = vmul.f32 1.050701, %v3777_v15  ;;  %v3849_v56 = vsel %vm3829_vm13, %v3848_v49, %v3847_v31  ;;  %v3850_v29 = vrot.slane %v3816_v18, 4  ;;  %v3881_v21 = vsel %vm3829_vm13, %v3880_v61, %v3879_v36  ;;  %v6745_v36 = vld [vmem:[#allocation4 + $0x30] sm:$0xff]   ;;  %v6747_v31 = vld [vmem:[%s8510_s9] ss:$8 sps:$4 sm:$0xff]  }
 0x365   : > { %v3770_v22 = vmul.f32 1.6732632, %v6005_v17  ;;  %v3882_v24 = vrot.slane %v3816_v18, 6  ;;  %v3830_v59 = vsel %vm3829_vm13, %v3828_v10, %v3827_v32  ;;  %v3865_v27 = vsel %vm3829_vm13, %v3864_v26, %v3863_v37  ;;  %v6749_v32 = vld [vmem:[%s8510_s9 + $0x4] ss:$8 sps:$4 sm:$0xff]  }
 0x366   : > { %v6199_v4 = vpack.c.bf16 %v3785_v20, %v3785_v20  ;;  %v3851_v55 = vsel %vm3832_vm14, %v3850_v29, %v3849_v56  ;;  %v3833_v30 = vsel %vm3832_vm14, %v3831_v12, %v3830_v59  ;;  %v3867_v3 = vsel %vm3832_vm14, %v3866_v14, %v3865_v27  ;;  %v6752_v37 = vld [vmem:[%s8510_s9 + $0x14] ss:$8 sps:$4 sm:$0xff]   ;;  %4463 = vmatprep.subr.bf16.mxu1 %v6749_v32  ;;  %v6756_v26 = vld [vmem:[%s8510_s9 + $0x30] ss:$8 sps:$4 sm:$0xff]   ;;  %v6761_v18 = vld [vmem:[%s8510_s9 + $0x44] ss:$8 sps:$4 sm:$0xff]  }
 0x367   : > { %v3778_v33 = vsel %vm3730_vm1, %v8356_v40, %v3770_v22  ;;  %v3883_v39 = vsel %vm3832_vm14, %v3882_v24, %v3881_v21  ;;  %v6758_v10 = vld [vmem:[%s8510_s9 + $0x34] ss:$8 sps:$4 sm:$0xff]   ;;  %v6762_v49 = vld [vmem:[%s8510_s9 + $0x50] ss:$8 sps:$4 sm:$0xff]   ;;  %v6767_v61 = vld [vmem:[%s8510_s9 + $0x64] ss:$8 sps:$4 sm:$0xff]  }
 0x368   : > { %v3817_v2 = vunpack.c.l.b16 %v6199_v4  ;;  %v3786_v53 = vmul.f32 1.050701, %v3778_v33  ;;  %v6764_v11 = vld [vmem:[%s8510_s9 + $0x54] ss:$8 sps:$4 sm:$0xff]   ;;  %v6765_v12 = vld [vmem:[%s8510_s9 + $0x60] ss:$8 sps:$4 sm:$0xff]  }
 0x369   : > { %v6014_v17 = vld [vmem:[%s8507_s6] ss:$0 sm:$0xff] }
 0x36a   : > { %v3834_v19 = vrot.slane %v3817_v2, 2  ;;  %v3868_v42 = vrot.slane %v3817_v2, 4  ;;  %v6200_v58 = vpack.c.bf16 %v3786_v53, %v3786_v53  ;;  %v3852_v46 = vrot.slane %v3817_v2, 3  ;;  %v6782_v32 = vld [vmem:[#allocation6 + $0x44] ss:$28 sps:$4 sm:$0xff]  }
 0x36b   : > { %v3884_v44 = vrot.slane %v3817_v2, 5 }
 0x36c   : > { %v3818_v45 = vunpack.c.l.b16 %v6200_v58  ;;  %v3853_v13 = vsel %vm3835_vm2, %v3852_v46, %v3851_v55  ;;  %v3836_v47 = vsel %vm3835_vm2, %v3834_v19, %v3833_v30  ;;  %v3869_v16 = vsel %vm3835_vm2, %v3868_v42, %v3867_v3  ;;  %v6770_v58 = vld [vmem:[%s8510_s9 + $0x74] ss:$8 sps:$4 sm:$0xff]   ;;  %v6768_v46 = vld [vmem:[%s8510_s9 + $0x70] ss:$8 sps:$4 sm:$0xff]  }
 0x36d   : > { %v3885_v48 = vsel %vm3835_vm2, %v3884_v44, %v3883_v39  ;;  %v7132_v44 = vmov 0  }
 0x36e   : > { %v3854_v50 = vrot.slane %v3818_v45, 2  ;;  %v3886_v51 = vrot.slane %v3818_v45, 4  ;;  %v3837_v25 = vrot.slane %v3818_v45, 1  ;;  %v3870_v40 = vrot.slane %v3818_v45, 3  ;;  %v6771_v45 = vld [vmem:[#allocation6] ss:$28 sps:$4 sm:$0xff]  }
 0x370   : > { %v3855_v52 = vsel %vm3838_vm3, %v3854_v50, %v3853_v13  ;;  %v3887_v43 = vsel %vm3838_vm3, %v3886_v51, %v3885_v48  ;;  %v3839_v57 = vsel %vm3838_vm3, %v3837_v25, %v3836_v47  ;;  %v3871_v28 = vsel %vm3838_vm3, %v3870_v40, %v3869_v16  ;;  %v6773_v13 = vld [vmem:[#allocation6 + $0x4] ss:$28 sps:$4 sm:$0xff]   ;;  %v6776_v47 = vld [vmem:[#allocation6 + $0xc] ss:$28 sps:$4 sm:$0xff]   ;;  %v6779_v16 = vld [vmem:[#allocation6 + $0x3c] ss:$28 sps:$4 sm:$0xff]  }
 0x371   : > { %v3856_v9 = vpack.c.b16 %v3855_v52, %v3855_v52  ;;  %v3888_v38 = vpack.c.b16 %v3887_v43, %v3887_v43  ;;  %v3840_v23 = vpack.c.b16 %v3839_v57, %v3839_v57  ;;  %v3872_v8 = vpack.c.b16 %v3871_v28, %v3871_v28  ;;  %v6777_v48 = vld [vmem:[#allocation6 + $0x38] ss:$28 sps:$4 sm:$0xff]   ;;  %v6783_v51 = vld [vmem:[#allocation6 + $0x70] ss:$28 sps:$4 sm:$0xff]   ;;  %v6789_v40 = vld [vmem:[#allocation6 + $0xa8] ss:$28 sps:$4 sm:$0xff]  }
 0x372   : > { %v6785_v50 = vld [vmem:[#allocation6 + $0x74] ss:$28 sps:$4 sm:$0xff]   ;;  %v6791_v25 = vld [vmem:[#allocation6 + $0xac] ss:$28 sps:$4 sm:$0xff]   ;;  %v6797_v52 = vld [vmem:[#allocation6 + $0xe4] ss:$28 sps:$4 sm:$0xff]  }
 0x373   : > { %4185 = vmatprep.mubr.bf16.mxu0 %v3856_v9  ;;  %4225 = vmatprep.mubr.bf16.mxu1 %v3888_v38  ;;  %v6795_v43 = vld [vmem:[#allocation6 + $0xe0] ss:$28 sps:$4 sm:$0xff]   ;;  %v6801_v28 = vld [vmem:[#allocation6 + $0x118] ss:$28 sps:$4 sm:$0xff]   ;;  %v6807_v38 = vld [vmem:[#allocation6 + $0x150] ss:$28 sps:$4 sm:$0xff]  }
 0x374   : > { %4186 = vmatmul.mubr.bf16.vlgmr.msra.gmra.mrb[68].mxu0 %v3840_v23  ;;  %4226 = vmatmul.mubr.bf16.vlgmr.msra.gmra.mrb[68].mxu1 %v3872_v8  ;;  %v6803_v57 = vld [vmem:[#allocation6 + $0x11c] ss:$28 sps:$4 sm:$0xff]   ;;  %v6809_v9 = vld [vmem:[#allocation6 + $0x154] ss:$28 sps:$4 sm:$0xff]   ;;  %v6815_v23 = vld [vmem:[#allocation6 + $0x18c] ss:$28 sps:$4 sm:$0xff]  }
 0x375   : > { %6281 = vmatpush3.bf16.msra.mxu0 %v6739_v5  ;;  %6296 = vmatprep.mubr.msk.bf16.mxu0 %vm7131_vm4, %v7130_v62  ;;  %v6813_v8 = vld [vmem:[#allocation6 + $0x188] ss:$28 sps:$4 sm:$0xff]  }
 0x376   : > { %6282 = vmatprep.subr.bf16.mxu0 %v7130_v62  ;;  %4464 = vmatpush1.bf16.msra.mxu1 %v6747_v31  ;;  %v6821_v5 = vld [vmem:[#allocation6 + $0x1c4] ss:$28 sps:$4 sm:$0xff]  }
 0x377   : > { %4465 = vmatprep.subr.bf16.mxu1 %v6752_v37  ;;  %4495 = vmatprep.mubr.bf16.mxu1 %v7132_v44  ;;  %v6780_v37 = vld [vmem:[#allocation6 + $0x40] ss:$28 sps:$4 sm:$0xff]   ;;  %v6857_v44 = vld [vmem:[#allocation6 + $0x314] ss:$28 sps:$4 sm:$0xff]  }
 0x379   : > { %6283 = vmatpush3.bf16.msra.mxu0 %v6740_v63  ;;  %v6048_v63 = vld [vmem:[%s8509_s8] ss:$0 sm:$0xff] }
 0x37a   : > { %6284 = vmatprep.subr.bf16.mxu0 %v7130_v62  ;;  %4466 = vmatpush1.bf16.msra.mxu1 %v6750_v6  ;;  %v6788_v6 = vld [vmem:[#allocation6 + $0x7c] ss:$28 sps:$4 sm:$0xff]  }
 0x37b   : > { %4467 = vmatprep.subr.bf16.mxu1 %v6755_v54  ;;  %v6786_v54 = vld [vmem:[#allocation6 + $0x78] ss:$28 sps:$4 sm:$0xff]  }
 0x37d   : > { %6285 = vmatpush3.bf16.msra.mxu0 %v6741_v0 }
 0x37e   : > { %6286 = vmatprep.subr.bf16.mxu0 %v7130_v62  ;;  %4468 = vmatpush1.bf16.msra.mxu1 %v6753_v7  ;;  %v6794_v7 = vld [vmem:[#allocation6 + $0xb4] ss:$28 sps:$4 sm:$0xff]  }
 0x37f   : > { %4469 = vmatprep.subr.bf16.mxu1 %v6758_v10  ;;  %v6792_v10 = vld [vmem:[#allocation6 + $0xb0] ss:$28 sps:$4 sm:$0xff]  }
 0x381   : > { %6287 = vmatpush3.bf16.msra.mxu0 %v6742_v1 }
 0x382   : > { %6288 = vmatprep.subr.bf16.mxu0 %v7130_v62  ;;  %4470 = vmatpush1.bf16.msra.mxu1 %v6756_v26  ;;  %v6800_v26 = vld [vmem:[#allocation6 + $0xec] ss:$28 sps:$4 sm:$0xff]  }
 0x383   : > { %4471 = vmatprep.subr.bf16.mxu1 %v6761_v18  ;;  %v6798_v18 = vld [vmem:[#allocation6 + $0xe8] ss:$28 sps:$4 sm:$0xff]  }
 0x385   : > { %6289 = vmatpush3.bf16.msra.mxu0 %v6743_v41 }
 0x386   : > { %6290 = vmatprep.subr.bf16.mxu0 %v7130_v62  ;;  %4472 = vmatpush1.bf16.msra.mxu1 %v6759_v60  ;;  %v6806_v60 = vld [vmem:[#allocation6 + $0x124] ss:$28 sps:$4 sm:$0xff]  }
 0x387   : > { %4473 = vmatprep.subr.bf16.mxu1 %v6764_v11  ;;  %v6804_v11 = vld [vmem:[#allocation6 + $0x120] ss:$28 sps:$4 sm:$0xff]  }
 0x389   : > { %6291 = vmatpush3.bf16.msra.mxu0 %v6744_v35 }
 0x38a   : > { %6292 = vmatprep.subr.bf16.mxu0 %v7130_v62  ;;  %4474 = vmatpush1.bf16.msra.mxu1 %v6762_v49  ;;  %v6812_v49 = vld [vmem:[#allocation6 + $0x15c] ss:$28 sps:$4 sm:$0xff]  }
 0x38b   : > { %4475 = vmatprep.subr.bf16.mxu1 %v6767_v61  ;;  %v6810_v61 = vld [vmem:[#allocation6 + $0x158] ss:$28 sps:$4 sm:$0xff]  }
 0x38d   : > { %6293 = vmatpush3.bf16.msra.mxu0 %v6745_v36  ;;  %v6774_v36 = vld [vmem:[#allocation6 + $0x8] ss:$28 sps:$4 sm:$0xff]  }
 0x38e   : > { %6294 = vmatprep.subr.bf16.mxu0 %v7130_v62  ;;  %4476 = vmatpush1.bf16.msra.mxu1 %v6765_v12  ;;  %v6819_v62 = vld [vmem:[#allocation6 + $0x1c0] ss:$28 sps:$4 sm:$0xff]   ;;  %v6818_v12 = vld [vmem:[#allocation6 + $0x194] ss:$28 sps:$4 sm:$0xff]  }
 0x38f   : > { %4477 = vmatprep.subr.bf16.mxu1 %v6770_v58  ;;  %v6849_v58 = vld [vmem:[#allocation6 + $0x2d8] ss:$28 sps:$4 sm:$0xff]  }
 0x391   : > { %6295 = vmatpush3.bf16.msra.mxu0 %v6746_v34 }
 0x392   : > { %4478 = vmatpush1.bf16.msra.mxu1 %v6768_v46  ;;  %5263 = vmatprep.subr.bf16.mxu0 %v6773_v13  ;;  %v6852_v46 = vld [vmem:[#allocation6 + $0x2e0] ss:$28 sps:$4 sm:$0xff]   ;;  %v6855_v13 = vld [vmem:[#allocation6 + $0x310] ss:$28 sps:$4 sm:$0xff]  }
 0x393   : > { %5304 = vmatprep.subr.bf16.mxu1 %v6776_v47  ;;  %v6858_v47 = vld [vmem:[#allocation6 + $0x318] ss:$28 sps:$4 sm:$0xff]  }
 0x447   : > { %v6221_v14 = vpop.f32.mrb[68].mxu0  ;;  %v6243_v15 = vpop.f32.mrb[68].mxu1 }
 0x448   : > { %v6222_v20 = vpop.f32.mrb[69].mxu0  ;;  %v6244_v56 = vpop.f32.mrb[69].mxu1 }
 0x449   : > { %v6223_v29 = vadd.f32 %v6222_v20, %v6221_v14  ;;  %v6245_v21 = vadd.f32 %v6244_v56, %v6243_v15  ;;  %v6224_v22 = vpop.f32.mrb[70].mxu0  ;;  %v6246_v24 = vpop.f32.mrb[70].mxu1  ;;  %v6816_v14 = vld [vmem:[#allocation6 + $0x190] ss:$28 sps:$4 sm:$0xff]   ;;  %v6827_v20 = vld [vmem:[#allocation6 + $0x1fc] ss:$28 sps:$4 sm:$0xff]  }
 0x44a   : > { %v6225_v59 = vpop.f32.mrb[71].mxu0  ;;  %v6247_v27 = vpop.f32.mrb[71].mxu1  ;;  %v6824_v15 = vld [vmem:[#allocation6 + $0x1cc] ss:$28 sps:$4 sm:$0xff]   ;;  %v6830_v56 = vld [vmem:[#allocation6 + $0x204] ss:$28 sps:$4 sm:$0xff]  }
 0x44b   : > { %v4188_v4 = vadd.f32 %v6223_v29, %v6014_v17  ;;  %v6822_v17 = vld [vmem:[#allocation6 + $0x1c8] ss:$28 sps:$4 sm:$0xff]   ;;  %v6825_v29 = vld [vmem:[#allocation6 + $0x1f8] ss:$28 sps:$4 sm:$0xff]   ;;  %v6831_v59 = vld [vmem:[#allocation6 + $0x230] ss:$28 sps:$4 sm:$0xff]  }
 0x44c   : > { %v6833_v22 = vld [vmem:[#allocation6 + $0x234] ss:$28 sps:$4 sm:$0xff]   ;;  %v6836_v24 = vld [vmem:[#allocation6 + $0x23c] ss:$28 sps:$4 sm:$0xff]  }
 0x44d   : > { %v4228_v55 = vadd.f32 %v6245_v21, %v4188_v4  ;;  %v6828_v21 = vld [vmem:[#allocation6 + $0x200] ss:$28 sps:$4 sm:$0xff]   ;;  %v6834_v27 = vld [vmem:[#allocation6 + $0x238] ss:$28 sps:$4 sm:$0xff]   ;;  %v6839_v4 = vld [vmem:[#allocation6 + $0x26c] ss:$28 sps:$4 sm:$0xff]  }
 0x44f   : > { %v4234_v30 = vmin.f32 %v4228_v55, 0.0  ;;  %vm4233_vm0 = vcmp.gt.f32.partialorder %v4228_v55, 0.0 }
 0x451   : > { %v4235_v3 = vmul.f32 1.442695, %v4234_v30  ;;  %v6837_v30 = vld [vmem:[#allocation6 + $0x268] ss:$28 sps:$4 sm:$0xff]  }
 0x453   : > { %6983 = vpow2.f32 %v4235_v3  ;;  %v6840_v3 = vld [vmem:[#allocation6 + $0x270] ss:$28 sps:$4 sm:$0xff]  }
 0x45d   : > { %v6984_v33 = vpop.eup %6983 }
 0x45e   : > { %v6047_v39 = vadd.f32 -1.0, %v6984_v33  ;;  %v6845_v33 = vld [vmem:[#allocation6 + $0x2a4] ss:$28 sps:$4 sm:$0xff]  }
 0x460   : > { %v4238_v2 = vmul.f32 1.6732632, %v6047_v39  ;;  %v6848_v39 = vld [vmem:[#allocation6 + $0x2ac] ss:$28 sps:$4 sm:$0xff]  }
 0x462   : > { %v4239_v53 = vsel %vm4233_vm0, %v4228_v55, %v4238_v2  ;;  %v6842_v55 = vld [vmem:[#allocation6 + $0x274] ss:$28 sps:$4 sm:$0xff]   ;;  %v6843_v2 = vld [vmem:[#allocation6 + $0x2a0] ss:$28 sps:$4 sm:$0xff]  }
 0x463   : > { %v4240_v19 = vmul.f32 1.050701, %v4239_v53  ;;  %v6846_v53 = vld [vmem:[#allocation6 + $0x2a8] ss:$28 sps:$4 sm:$0xff]  }
 0x465   : > { %v4241_v42 = vpack.c.bf16 %v4240_v19, %v4240_v19  ;;  %v6851_v19 = vld [vmem:[#allocation6 + $0x2dc] ss:$28 sps:$4 sm:$0xff]  }
 0x467   : > { %6297 = vmatmul.mubr.bf16.vlgmr.msra.gmra.mrb[72].mxu0 %v4241_v42  ;;  %v6854_v42 = vld [vmem:[#allocation6 + $0x2e4] ss:$28 sps:$4 sm:$0xff]  }
 0x468   : > { %5264 = vmatpush1.bf16.msra.mxu0 %v6771_v45  ;;  %v6860_v45 = vld [vmem:[#allocation6 + $0x31c] ss:$28 sps:$4 sm:$0xff]  }
 0x469   : > { %5265 = vmatprep.subr.bf16.mxu0 %v6779_v16  ;;  %v6863_v16 = vld [vmem:[#allocation6 + $0x34c] ss:$28 sps:$4 sm:$0xff]  }
 0x46c   : > { %5266 = vmatpush1.bf16.msra.mxu0 %v6777_v48  ;;  %v6866_v48 = vld [vmem:[#allocation6 + $0x354] ss:$28 sps:$4 sm:$0xff]  }
 0x46d   : > { %5267 = vmatprep.subr.bf16.mxu0 %v6785_v50  ;;  %v6861_v50 = vld [vmem:[#allocation6 + $0x348] ss:$28 sps:$4 sm:$0xff]  }
 0x470   : > { %5268 = vmatpush1.bf16.msra.mxu0 %v6783_v51  ;;  %v6864_v51 = vld [vmem:[#allocation6 + $0x350] ss:$28 sps:$4 sm:$0xff]  }
 0x471   : > { %5269 = vmatprep.subr.bf16.mxu0 %v6791_v25  ;;  %v6869_v25 = vld [vmem:[#allocation6 + $0x14] ss:$28 sps:$4 sm:$0xff]  }
 0x474   : > { %5270 = vmatpush1.bf16.msra.mxu0 %v6789_v40  ;;  %v6870_v40 = vld [vmem:[#allocation6 + $0x1d8] ss:$28 sps:$4 sm:$0xff]  }
 0x475   : > { %5271 = vmatprep.subr.bf16.mxu0 %v6797_v52  ;;  %v4373_v52 = vlaneseq }
 0x478   : > { %5272 = vmatpush1.bf16.msra.mxu0 %v6795_v43  ;;  %v8450_v43 = vshrl.u32 %v4373_v52, 7  ;;  %v6913_v52 = vld [vmem:[#allocation6 + $0x240] ss:$28 sps:$4 sm:$0xff]  }
 0x479   : > { %5273 = vmatprep.subr.bf16.mxu0 %v6803_v57 }
 0x47a   : > { %v4375_v57 = vsub.s32 0, %v8450_v43 }
 0x47c   : > { %5274 = vmatpush1.bf16.msra.mxu0 %v6801_v28  ;;  %v4371_v28 = vld [vmem:[%s8511_s10] sm:$0x3] }
 0x47d   : > { %5275 = vmatprep.subr.bf16.mxu0 %v6809_v9  ;;  %v4379_v9 = vsub.s32 1, %v8450_v43 }
 0x480   : > { %5276 = vmatpush1.bf16.msra.mxu0 %v6807_v38  ;;  %v4376_v38 = vrot.slane %v4371_v28, %v4375_v57 }
 0x481   : > { %5277 = vmatprep.subr.bf16.mxu0 %v6815_v23  ;;  %v4380_v23 = vrot.slane %v4371_v28, %v4379_v9  ;;  %v6918_v28 = vld [vmem:[#allocation6 + $0x27c] ss:$28 sps:$4 sm:$0xff]  }
 0x484   : > { %5278 = vmatpush1.bf16.msra.mxu0 %v6813_v8 }
 0x485   : > { %5279 = vmatprep.subr.bf16.mxu0 %v6821_v5 }
 0x488   : > { %5280 = vmatpush1.bf16.msra.mxu0 %v6819_v62 }
 0x489   : > { %5281 = vmatprep.subr.bf16.mxu0 %v6827_v20  ;;  %v6876_v20 = vld [vmem:[#allocation6 + $0x50] ss:$28 sps:$4 sm:$0xff]  }
 0x48c   : > { %5282 = vmatpush1.bf16.msra.mxu0 %v6825_v29  ;;  %v6880_v29 = vld [vmem:[#allocation6 + $0x248] ss:$28 sps:$4 sm:$0xff]  }
 0x48d   : > { %5283 = vmatprep.subr.bf16.mxu0 %v6833_v22  ;;  %v6881_v22 = vld [vmem:[#allocation6 + $0x88] ss:$28 sps:$4 sm:$0xff]  }
 0x490   : > { %5284 = vmatpush1.bf16.msra.mxu0 %v6831_v59  ;;  %v6885_v59 = vld [vmem:[#allocation6 + $0x280] ss:$28 sps:$4 sm:$0xff]  }
 0x491   : > { %5285 = vmatprep.subr.bf16.mxu0 %v6839_v4  ;;  %v6886_v4 = vld [vmem:[#allocation6 + $0xc0] ss:$28 sps:$4 sm:$0xff]  }
 0x494   : > { %5286 = vmatpush1.bf16.msra.mxu0 %v6837_v30  ;;  %v6890_v30 = vld [vmem:[#allocation6 + $0x2b8] ss:$28 sps:$4 sm:$0xff]  }
 0x495   : > { %5287 = vmatprep.subr.bf16.mxu0 %v6845_v33  ;;  %v6891_v33 = vld [vmem:[#allocation6 + $0xf8] ss:$28 sps:$4 sm:$0xff]  }
 0x498   : > { %5288 = vmatpush1.bf16.msra.mxu0 %v6843_v2  ;;  %v6895_v2 = vld [vmem:[#allocation6 + $0x2f0] ss:$28 sps:$4 sm:$0xff]  }
 0x499   : > { %5289 = vmatprep.subr.bf16.mxu0 %v6851_v19  ;;  %v6896_v19 = vld [vmem:[#allocation6 + $0x130] ss:$28 sps:$4 sm:$0xff]  }
 0x49c   : > { %5290 = vmatpush1.bf16.msra.mxu0 %v6849_v58  ;;  %v6900_v58 = vld [vmem:[#allocation6 + $0x328] ss:$28 sps:$4 sm:$0xff]  }
 0x49d   : > { %5291 = vmatprep.subr.bf16.mxu0 %v6857_v44  ;;  %v6901_v44 = vld [vmem:[#allocation6 + $0x168] ss:$28 sps:$4 sm:$0xff]  }
 0x4a0   : > { %5292 = vmatpush1.bf16.msra.mxu0 %v6855_v13  ;;  %v6905_v13 = vld [vmem:[#allocation6 + $0x360] ss:$28 sps:$4 sm:$0xff]  }
 0x4a1   : > { %5293 = vmatprep.subr.bf16.mxu0 %v6863_v16  ;;  %v6906_v16 = vld [vmem:[#allocation6 + $0x1a0] ss:$28 sps:$4 sm:$0xff]  }
 0x4a4   : > { %5294 = vmatpush1.bf16.msra.mxu0 %v6861_v50  ;;  %v6907_v50 = vld [vmem:[#allocation6 + $0x1d0] ss:$28 sps:$4 sm:$0xff]  }
 0x4a5   : > { %5345 = vmatprep.subr.bf16.mxu0 %v6869_v25  ;;  %v6910_v25 = vld [vmem:[#allocation6 + $0x208] ss:$28 sps:$4 sm:$0xff]  }
 0x53a   : > { %v4347_v0 = vpop.f32.mrb[72].mxu0 }
 0x53b   : > { %v4348_v1 = vadd.f32 %v6048_v63, %v4347_v0  ;;  %v6298_v41 = vpop.f32.mrb[73].mxu0 }
 0x53c   : > { %v4350_v35 = vpop.f32.mrb[74].mxu0 }
 0x53d   : > { %4353 = vst [vmem:[%s522_s22] sm:$0xff] %v4348_v1  ;;  %v4354_v34 = vpack.c.bf16 %v4348_v1, %v4348_v1  ;;  %v6299_v31 = vpop.f32.mrb[75].mxu0 }
 0x53f   : > { %4496 = vmatmul.mubr.bf16.vlgmr.msra.gmra.mrb[72].mxu1 %v4354_v34 }
 0x540   : > { %5305 = vmatpush1.bf16.msra.mxu1 %v6774_v36 }
 0x541   : > { %5306 = vmatprep.subr.bf16.mxu1 %v6782_v32 }
 0x544   : > { %5307 = vmatpush1.bf16.msra.mxu1 %v6780_v37 }
 0x545   : > { %5308 = vmatprep.subr.bf16.mxu1 %v6788_v6 }
 0x548   : > { %5309 = vmatpush1.bf16.msra.mxu1 %v6786_v54 }
 0x549   : > { %5310 = vmatprep.subr.bf16.mxu1 %v6794_v7 }
 0x54c   : > { %5311 = vmatpush1.bf16.msra.mxu1 %v6792_v10 }
 0x54d   : > { %5312 = vmatprep.subr.bf16.mxu1 %v6800_v26 }
 0x550   : > { %5313 = vmatpush1.bf16.msra.mxu1 %v6798_v18 }
 0x551   : > { %5314 = vmatprep.subr.bf16.mxu1 %v6806_v60 }
 0x554   : > { %5315 = vmatpush1.bf16.msra.mxu1 %v6804_v11 }
 0x555   : > { %5316 = vmatprep.subr.bf16.mxu1 %v6812_v49  ;;  %v6867_v49 = vld [vmem:[#allocation6 + $0x10] ss:$28 sps:$4 sm:$0xff]  }
 0x558   : > { %5317 = vmatpush1.bf16.msra.mxu1 %v6810_v61  ;;  %v6871_v61 = vld [vmem:[#allocation6 + $0x18] ss:$28 sps:$4 sm:$0xff]  }
 0x559   : > { %5318 = vmatprep.subr.bf16.mxu1 %v6818_v12 }
 0x55c   : > { %5319 = vmatpush1.bf16.msra.mxu1 %v6816_v14  ;;  %v6874_v14 = vld [vmem:[#allocation6 + $0x4c] ss:$28 sps:$4 sm:$0xff]  }
 0x55d   : > { %5320 = vmatprep.subr.bf16.mxu1 %v6824_v15  ;;  %v6875_v15 = vld [vmem:[#allocation6 + $0x210] ss:$28 sps:$4 sm:$0xff]  }
 0x560   : > { %5321 = vmatpush1.bf16.msra.mxu1 %v6822_v17  ;;  %v6872_v17 = vld [vmem:[#allocation6 + $0x48] ss:$28 sps:$4 sm:$0xff]  }
 0x561   : > { %5322 = vmatprep.subr.bf16.mxu1 %v6830_v56  ;;  %v6879_v56 = vld [vmem:[#allocation6 + $0x84] ss:$28 sps:$4 sm:$0xff]  }
 0x564   : > { %5323 = vmatpush1.bf16.msra.mxu1 %v6828_v21  ;;  %v6877_v21 = vld [vmem:[#allocation6 + $0x80] ss:$28 sps:$4 sm:$0xff]  }
 0x565   : > { %5324 = vmatprep.subr.bf16.mxu1 %v6836_v24  ;;  %v6884_v24 = vld [vmem:[#allocation6 + $0xbc] ss:$28 sps:$4 sm:$0xff]  }
 0x568   : > { %5325 = vmatpush1.bf16.msra.mxu1 %v6834_v27  ;;  %v6882_v27 = vld [vmem:[#allocation6 + $0xb8] ss:$28 sps:$4 sm:$0xff]  }
 0x569   : > { %5326 = vmatprep.subr.bf16.mxu1 %v6842_v55  ;;  %v6889_v55 = vld [vmem:[#allocation6 + $0xf4] ss:$28 sps:$4 sm:$0xff]  }
 0x56c   : > { %5327 = vmatpush1.bf16.msra.mxu1 %v6840_v3  ;;  %v6887_v3 = vld [vmem:[#allocation6 + $0xf0] ss:$28 sps:$4 sm:$0xff]  }
 0x56d   : > { %5328 = vmatprep.subr.bf16.mxu1 %v6848_v39  ;;  %v6894_v39 = vld [vmem:[#allocation6 + $0x12c] ss:$28 sps:$4 sm:$0xff]  }
 0x570   : > { %5329 = vmatpush1.bf16.msra.mxu1 %v6846_v53  ;;  %v6892_v53 = vld [vmem:[#allocation6 + $0x128] ss:$28 sps:$4 sm:$0xff]  }
 0x571   : > { %5330 = vmatprep.subr.bf16.mxu1 %v6854_v42  ;;  %v6899_v42 = vld [vmem:[#allocation6 + $0x164] ss:$28 sps:$4 sm:$0xff]  }
 0x574   : > { %5331 = vmatpush1.bf16.msra.mxu1 %v6852_v46  ;;  %v6897_v46 = vld [vmem:[#allocation6 + $0x160] ss:$28 sps:$4 sm:$0xff]  }
 0x575   : > { %5332 = vmatprep.subr.bf16.mxu1 %v6860_v45  ;;  %v6904_v45 = vld [vmem:[#allocation6 + $0x19c] ss:$28 sps:$4 sm:$0xff]  }
 0x578   : > { %5333 = vmatpush1.bf16.msra.mxu1 %v6858_v47  ;;  %v6902_v47 = vld [vmem:[#allocation6 + $0x198] ss:$28 sps:$4 sm:$0xff]  }
 0x579   : > { %5334 = vmatprep.subr.bf16.mxu1 %v6866_v48  ;;  %v6909_v48 = vld [vmem:[#allocation6 + $0x1d4] ss:$28 sps:$4 sm:$0xff]  }
 0x57c   : > { %5335 = vmatpush1.bf16.msra.mxu1 %v6864_v51  ;;  %v6912_v51 = vld [vmem:[#allocation6 + $0x20c] ss:$28 sps:$4 sm:$0xff]  }
 0x57d   : > { %6258 = vmatprep.subr.bf16.mxu1 %v6870_v40  ;;  %v6915_v40 = vld [vmem:[#allocation6 + $0x244] ss:$28 sps:$4 sm:$0xff]  }
 0x612   : > { %v4497_v8 = vpop.f32.mrb[72].mxu1 }
 0x613   : > { %v4498_v5 = vadd.f32 %v4497_v8, %v4376_v38  ;;  %v4499_v62 = vpop.f32.mrb[73].mxu1  ;;  %v6916_v38 = vld [vmem:[#allocation6 + $0x278] ss:$28 sps:$4 sm:$0xff]   ;;  %v6919_v8 = vld [vmem:[#allocation6 + $0x2b0] ss:$28 sps:$4 sm:$0xff]  }
 0x614   : > { %v4500_v63 = vadd.f32 %v4499_v62, %v4380_v23  ;;  %v4501_v0 = vpop.f32.mrb[74].mxu1  ;;  %v6921_v23 = vld [vmem:[#allocation6 + $0x2b4] ss:$28 sps:$4 sm:$0xff]   ;;  %v6922_v62 = vld [vmem:[#allocation6 + $0x2e8] ss:$28 sps:$4 sm:$0xff]  }
 0x615   : > { %v4506_v1 = vmin.f32 %v4498_v5, 0.0  ;;  %v4502_v41 = vpop.f32.mrb[75].mxu1  ;;  %vm4504_vm5 = vcmp.gt.f32.partialorder %v4498_v5, 0.0  ;;  %v6925_v0 = vld [vmem:[#allocation6 + $0x320] ss:$28 sps:$4 sm:$0xff]  }
 0x616   : > { %v4507_v35 = vmin.f32 %v4500_v63, 0.0  ;;  %vm4505_vm6 = vcmp.gt.f32.partialorder %v4500_v63, 0.0  ;;  %v6928_v41 = vld [vmem:[#allocation6 + $0x358] ss:$28 sps:$4 sm:$0xff]  }
 0x617   : > { %v4508_v36 = vmul.f32 1.442695, %v4506_v1  ;;  %v6930_v1 = vld [vmem:[#allocation6 + $0x35c] ss:$28 sps:$4 sm:$0xff]  }
 0x618   : > { %v4510_v34 = vmul.f32 1.442695, %v4507_v35  ;;  %v4662_v35 = vsub.s32 2, %v8450_v43 }
 0x619   : > { %6985 = vpow2.f32 %v4508_v36  ;;  %v8471_v36 = vld [vmem:[%s8530_s26] sm:$0xff] }
 0x61a   : > { %6987 = vpow2.f32 %v4510_v34  ;;  %v4666_v34 = vsub.s32 3, %v8450_v43 }
 0x623   : > { %v6986_v31 = vpop.eup %6985 }
 0x624   : > { %v6988_v32 = vpop.eup %6987  ;;  %v6073_v37 = vadd.f32 -1.0, %v6986_v31  ;;  %v4655_v31 = vrot.slane %v8471_v36, %v4375_v57 }
 0x625   : > { %v6074_v6 = vadd.f32 -1.0, %v6988_v32  ;;  %v4663_v32 = vrot.slane %v8471_v36, %v4662_v35 }
 0x626   : > { %v4514_v54 = vmul.f32 1.6732632, %v6073_v37  ;;  %v4659_v37 = vrot.slane %v8471_v36, %v4379_v9 }
 0x627   : > { %v4515_v7 = vmul.f32 1.6732632, %v6074_v6  ;;  %v4667_v6 = vrot.slane %v8471_v36, %v4666_v34 }
 0x628   : > { %v4516_v10 = vsel %vm4504_vm5, %v4498_v5, %v4514_v54  ;;  %v6924_v5 = vld [vmem:[#allocation6 + $0x2ec] ss:$28 sps:$4 sm:$0xff]  }
 0x629   : > { %v4518_v26 = vmul.f32 1.050701, %v4516_v10  ;;  %v4517_v18 = vsel %vm4505_vm6, %v4500_v63, %v4515_v7  ;;  %v6927_v63 = vld [vmem:[#allocation6 + $0x324] ss:$28 sps:$4 sm:$0xff]  }
 0x62a   : > { %v4519_v60 = vmul.f32 1.050701, %v4517_v18 }
 0x62b   : > { %v8461_v12 = vpack.c.bf16 %v4518_v26, %v4518_v26 }
 0x62c   : > { %v4521_v11 = vpack.c.bf16 %v4519_v60, %v4519_v60 }
 0x62e   : > { %5295 = vmatprep.mubr.bf16.mxu0 %v4521_v11  ;;  %5336 = vmatprep.mubr.bf16.mxu1 %v4521_v11 }
 0x62f   : > { %5296 = vmatmul.mubr.bf16.vlgmr.msra.gmra.mrb[76].mxu0 %v8461_v12  ;;  %5337 = vmatmul.mubr.bf16.vlgmr.msra.gmra.mrb[76].mxu1 %v8461_v12 }
 0x630   : > { %5346 = vmatpush1.bf16.msra.mxu0 %v6867_v49  ;;  %6259 = vmatpush3.bf16.msra.mxu1 %v6871_v61 }
 0x631   : > { %5377 = vmatprep.mubr.bf16.mxu0 %v4521_v11  ;;  %5418 = vmatprep.mubr.bf16.mxu1 %v4521_v11 }
 0x632   : > { %5347 = vmatprep.subr.bf16.mxu0 %v6874_v14  ;;  %6260 = vmatprep.subr.bf16.mxu1 %v6875_v15 }
 0x634   : > { %5348 = vmatpush1.bf16.msra.mxu0 %v6872_v17  ;;  %6261 = vmatpush3.bf16.msra.mxu1 %v6876_v20 }
 0x635   : > { %5349 = vmatprep.subr.bf16.mxu0 %v6879_v56  ;;  %6262 = vmatprep.subr.bf16.mxu1 %v6880_v29 }
 0x638   : > { %5350 = vmatpush1.bf16.msra.mxu0 %v6877_v21  ;;  %6263 = vmatpush3.bf16.msra.mxu1 %v6881_v22 }
 0x639   : > { %5351 = vmatprep.subr.bf16.mxu0 %v6884_v24  ;;  %6264 = vmatprep.subr.bf16.mxu1 %v6885_v59 }
 0x63c   : > { %5352 = vmatpush1.bf16.msra.mxu0 %v6882_v27  ;;  %6265 = vmatpush3.bf16.msra.mxu1 %v6886_v4 }
 0x63d   : > { %5353 = vmatprep.subr.bf16.mxu0 %v6889_v55  ;;  %6266 = vmatprep.subr.bf16.mxu1 %v6890_v30 }
 0x640   : > { %5354 = vmatpush1.bf16.msra.mxu0 %v6887_v3  ;;  %6267 = vmatpush3.bf16.msra.mxu1 %v6891_v33 }
 0x641   : > { %5355 = vmatprep.subr.bf16.mxu0 %v6894_v39  ;;  %6268 = vmatprep.subr.bf16.mxu1 %v6895_v2 }
 0x644   : > { %5356 = vmatpush1.bf16.msra.mxu0 %v6892_v53  ;;  %6269 = vmatpush3.bf16.msra.mxu1 %v6896_v19 }
 0x645   : > { %5357 = vmatprep.subr.bf16.mxu0 %v6899_v42  ;;  %6270 = vmatprep.subr.bf16.mxu1 %v6900_v58  ;;  %v4678_v42 = vsub.s32 6, %v8450_v43 }
 0x648   : > { %5358 = vmatpush1.bf16.msra.mxu0 %v6897_v46  ;;  %6271 = vmatpush3.bf16.msra.mxu1 %v6901_v44  ;;  %v4679_v44 = vrot.slane %v8471_v36, %v4678_v42 }
 0x649   : > { %5359 = vmatprep.subr.bf16.mxu0 %v6904_v45  ;;  %6272 = vmatprep.subr.bf16.mxu1 %v6905_v13 }
 0x64c   : > { %5360 = vmatpush1.bf16.msra.mxu0 %v6902_v47  ;;  %6273 = vmatpush3.bf16.msra.mxu1 %v6906_v16 }
 0x64d   : > { %5361 = vmatprep.subr.bf16.mxu0 %v6909_v48 }
 0x64f   : > { %5419 = vmatmul.mubr.bf16.vlgmr.msra.gmra.mrb[80].mxu1 %v8461_v12 }
 0x650   : > { %5362 = vmatpush1.bf16.msra.mxu0 %v6907_v50 }
 0x651   : > { %5363 = vmatprep.subr.bf16.mxu0 %v6912_v51 }
 0x654   : > { %5364 = vmatpush1.bf16.msra.mxu0 %v6910_v25 }
 0x655   : > { %5365 = vmatprep.subr.bf16.mxu0 %v6915_v40 }
 0x658   : > { %5366 = vmatpush1.bf16.msra.mxu0 %v6913_v52 }
 0x659   : > { %5367 = vmatprep.subr.bf16.mxu0 %v6918_v28 }
 0x65c   : > { %5368 = vmatpush1.bf16.msra.mxu0 %v6916_v38 }
 0x65d   : > { %5369 = vmatprep.subr.bf16.mxu0 %v6921_v23 }
 0x660   : > { %5370 = vmatpush1.bf16.msra.mxu0 %v6919_v8 }
 0x661   : > { %5371 = vmatprep.subr.bf16.mxu0 %v6924_v5 }
 0x664   : > { %5372 = vmatpush1.bf16.msra.mxu0 %v6922_v62 }
 0x665   : > { %5373 = vmatprep.subr.bf16.mxu0 %v6927_v63 }
 0x668   : > { %5374 = vmatpush1.bf16.msra.mxu0 %v6925_v0 }
 0x669   : > { %5375 = vmatprep.subr.bf16.mxu0 %v6930_v1 }
 0x66c   : > { %5376 = vmatpush1.bf16.msra.mxu0 %v6928_v41 }
 0x66f   : > { %5378 = vmatmul.mubr.bf16.vlgmr.msra.gmra.mrb[80].mxu0 %v8461_v12 }
 0x702   : > { %v5297_v54 = vpop.f32.mrb[76].mxu0  ;;  %v5338_v7 = vpop.f32.mrb[76].mxu1 }
 0x703   : > { %v5298_v10 = vadd.f32 %v5297_v54, %v4655_v31  ;;  %v5339_v26 = vadd.f32 %v5338_v7, %v4663_v32  ;;  %v5299_v18 = vpop.f32.mrb[77].mxu0  ;;  %v5340_v60 = vpop.f32.mrb[77].mxu1  ;;  %v4670_v32 = vsub.s32 4, %v8450_v43 }
 0x704   : > { %v5300_v11 = vadd.f32 %v5299_v18, %v4659_v37  ;;  %v5341_v49 = vadd.f32 %v5340_v60, %v4667_v6  ;;  %v5301_v61 = vpop.f32.mrb[78].mxu0  ;;  %v5342_v12 = vpop.f32.mrb[78].mxu1  ;;  %v4674_v37 = vsub.s32 5, %v8450_v43 }
 0x705   : > { %v5426_v14 = vand.u32 2147483647, %v5298_v10  ;;  %v5428_v57 = vand.u32 2147483647, %v5339_v26  ;;  %v5302_v29 = vpop.f32.mrb[79].mxu0  ;;  %v5343_v9 = vpop.f32.mrb[79].mxu1  ;;  %v4671_v6 = vrot.slane %v8471_v36, %v4670_v32 }
 0x706   : > { %v5427_v15 = vand.u32 2147483647, %v5300_v11  ;;  %v5429_v17 = vand.u32 2147483647, %v5341_v49  ;;  %vm5468_vm7 = vcmp.ge.f32.partialorder %v5298_v10, 0.0  ;;  %vm5470_vm8 = vcmp.ge.f32.partialorder %v5339_v26, 0.0 }
 0x707   : > { %v5433_v20 = vsub.f32 0.0, %v5426_v14  ;;  %v5435_v56 = vsub.f32 0.0, %v5428_v57  ;;  %vm5469_vm9 = vcmp.ge.f32.partialorder %v5300_v11, 0.0  ;;  %vm5471_vm10 = vcmp.ge.f32.partialorder %v5341_v49, 0.0 }
 0x708   : > { %v5434_v21 = vsub.f32 0.0, %v5427_v15  ;;  %v5436_v22 = vsub.f32 0.0, %v5429_v17  ;;  %v4675_v54 = vrot.slane %v8471_v36, %v4674_v37 }
 0x709   : > { %v5440_v24 = vmul.f32 1.442695, %v5433_v20  ;;  %v5444_v59 = vmul.f32 1.442695, %v5435_v56 }
 0x70a   : > { %v5442_v27 = vmul.f32 1.442695, %v5434_v21  ;;  %v5446_v4 = vmul.f32 1.442695, %v5436_v22 }
 0x70b   : > { %6989 = vpow2.f32 %v5440_v24 }
 0x70c   : > { %6991 = vpow2.f32 %v5444_v59 }
 0x70d   : > { %6993 = vpow2.f32 %v5442_v27 }
 0x70e   : > { %6995 = vpow2.f32 %v5446_v4 }
 0x715   : > { %v6990_v55 = vpop.eup %6989 }
 0x716   : > { %v6992_v30 = vpop.eup %6991  ;;  %v5454_v3 = vadd.f32 1.0, %v6990_v55 }
 0x717   : > { %v6994_v33 = vpop.eup %6993  ;;  %v5456_v39 = vadd.f32 1.0, %v6992_v30 }
 0x718   : > { %v6996_v2 = vpop.eup %6995  ;;  %6997 = vrcp.f32 %v5454_v3  ;;  %v5455_v53 = vadd.f32 1.0, %v6994_v33 }
 0x719   : > { %6999 = vrcp.f32 %v5456_v39  ;;  %v5457_v19 = vadd.f32 1.0, %v6996_v2 }
 0x71a   : > { %7001 = vrcp.f32 %v5455_v53 }
 0x71b   : > { %7003 = vrcp.f32 %v5457_v19 }
 0x722   : > { %v6998_v58 = vpop.eup %6997  ;;  %v6274_v46 = vpop.f32.mrb[80].mxu1 }
 0x723   : > { %v7000_v45 = vpop.eup %6999  ;;  %v5475_v13 = vsub.f32 1.0, %v6998_v58  ;;  %v6275_v47 = vpop.f32.mrb[81].mxu1 }
 0x724   : > { %v7002_v16 = vpop.eup %7001  ;;  %v5477_v48 = vsub.f32 1.0, %v7000_v45  ;;  %v6276_v50 = vadd.f32 %v6275_v47, %v6274_v46  ;;  %v6277_v51 = vpop.f32.mrb[82].mxu1 }
 0x725   : > { %v7004_v25 = vpop.eup %7003  ;;  %v5482_v40 = vsel %vm5468_vm7, %v6998_v58, %v5475_v13  ;;  %v5476_v52 = vsub.f32 1.0, %v7002_v16  ;;  %v6278_v28 = vpop.f32.mrb[83].mxu1 }
 0x726   : > { %v5484_v38 = vsel %vm5470_vm8, %v7000_v45, %v5477_v48  ;;  %v5478_v23 = vsub.f32 1.0, %v7004_v25  ;;  %v5421_v8 = vadd.f32 %v6276_v50, %v4679_v44 }
 0x727   : > { %v5483_v5 = vsel %vm5469_vm9, %v7002_v16, %v5476_v52 }
 0x728   : > { %v6201_v62 = vpack.c.bf16 %v5483_v5, %v5482_v40  ;;  %v5485_v63 = vsel %vm5471_vm10, %v7004_v25, %v5478_v23  ;;  %v5432_v0 = vand.u32 2147483647, %v5421_v8  ;;  %vm5474_vm11 = vcmp.ge.f32.partialorder %v5421_v8, 0.0 }
 0x729   : > { %v6202_v1 = vpack.c.bf16 %v5485_v63, %v5484_v38 }
 0x72a   : > { %5518 = vst [vmem:[%s8488_s15] sm:$0xff] %v6201_v62  ;;  %v5439_v41 = vsub.f32 0.0, %v5432_v0 }
 0x72b   : > { %5519 = vst [vmem:[%s8488_s15 + $0x8] sm:$0xff] %v6202_v1 }
 0x72c   : > { %v5452_v35 = vmul.f32 1.442695, %v5439_v41 }
 0x72e   : > { %7005 = vpow2.f32 %v5452_v35 }
 0x738   : > { %v7006_v34 = vpop.eup %7005 }
 0x739   : > { %v5460_v31 = vadd.f32 1.0, %v7006_v34 }
 0x73b   : > { %7007 = vrcp.f32 %v5460_v31 }
 0x742   : > { %v5379_v7 = vpop.f32.mrb[80].mxu0 }
 0x743   : > { %v5380_v10 = vadd.f32 %v5379_v7, %v4671_v6  ;;  %v5381_v26 = vpop.f32.mrb[81].mxu0 }
 0x744   : > { %v5382_v18 = vadd.f32 %v5381_v26, %v4675_v54  ;;  %v5383_v60 = vpop.f32.mrb[82].mxu0 }
 0x745   : > { %v7008_v11 = vpop.eup %7007  ;;  %v5430_v49 = vand.u32 2147483647, %v5380_v10  ;;  %v5384_v61 = vpop.f32.mrb[83].mxu0  ;;  %vm5472_vm12 = vcmp.ge.f32.partialorder %v5380_v10, 0.0 }
 0x746   : > { %v5481_v12 = vsub.f32 1.0, %v7008_v11  ;;  %v5431_v14 = vand.u32 2147483647, %v5382_v18  ;;  %vm5473_vm13 = vcmp.ge.f32.partialorder %v5382_v18, 0.0 }
 0x747   : > { %v5437_v57 = vsub.f32 0.0, %v5430_v49 }
 0x748   : > { %v5488_v15 = vsel %vm5474_vm11, %v7008_v11, %v5481_v12  ;;  %v5438_v17 = vsub.f32 0.0, %v5431_v14 }
 0x749   : > { %v6204_v43 = vpack.c.bf16 %v5488_v15, %v5488_v15  ;;  %v5448_v20 = vmul.f32 1.442695, %v5437_v57 }
 0x74a   : > { %v5450_v56 = vmul.f32 1.442695, %v5438_v17 }
 0x74b   : > { %5521 = vst [vmem:[%s8488_s15 + $0x18] sm:$0xf] %v6204_v43  ;;  %7009 = vpow2.f32 %v5448_v20 }
 0x74c   : > { %7011 = vpow2.f32 %v5450_v56 }
 0x755   : > { %v7010_v36 = vpop.eup %7009 }
 0x756   : > { %v7012_v29 = vpop.eup %7011  ;;  %v5458_v9 = vadd.f32 1.0, %v7010_v36 }
 0x757   : > { %v5459_v21 = vadd.f32 1.0, %v7012_v29 }
 0x758   : > { %7013 = vrcp.f32 %v5458_v9 }
 0x759   : > { %7015 = vrcp.f32 %v5459_v21 }
 0x762   : > { %v7014_v22 = vpop.eup %7013 }
 0x763   : > { %v7016_v24 = vpop.eup %7015  ;;  %v5479_v59 = vsub.f32 1.0, %v7014_v22 }
 0x764   : > { %v5480_v27 = vsub.f32 1.0, %v7016_v24 }
 0x765   : > { %v5486_v4 = vsel %vm5472_vm12, %v7014_v22, %v5479_v59 }
 0x766   : > { %v5487_v55 = vsel %vm5473_vm13, %v7016_v24, %v5480_v27 }
 0x767   : > { %v6203_v30 = vpack.c.bf16 %v5487_v55, %v5486_v4 }
 0x769   : > { %5520 = vst [vmem:[%s8488_s15 + $0x10] sm:$0xff] %v6203_v30 }
 0x76a PF: > { %s8532_s16 = sld [smem:[#allocation9_spill]] }
 0x770   : > { %s27_s29 = sadd.s32 1, %s8532_s16  }
 0x771   : > { %p24_p13 = scmp.ge.s32.totalorder %s27_s29, 4  }
 0x773   :  { %26 = sbr.rel (!%p24_p13) target bundleno = 5 (0x5), region = 127 }
 0x77a   :  { %5557 = vsyncpa [#allocation3], 1 }
 0x77b   :  { %5559 = vsyncpa [#allocation3 + $0x1], 1 }
 0x77c   :  { %5560 = vsyncpa [#allocation5], 1 }

</bundles_post_ra>
